<compile_context>
chip_gen: v5e
topology: v5e:2x2
jax: 0.10.0
libtpu: 0.0.40
codegen_flags: <defaults>
</compile_context>

<pallas_src>
import functools

import jax
import jax.numpy as jnp
from jax.experimental import pallas as pl
from jax.experimental.pallas import tpu as pltpu

_COMPUTE_DTYPE = jnp.bfloat16          # native MXU dtype on all generations


# -----------------------------------------------------------------------------
# VMEM budget / tiling helpers
# -----------------------------------------------------------------------------
@functools.lru_cache(maxsize=None)
def _vmem_limit_bytes():
    """Scoped VMEM budget: ~3/4 of physical, capped at 96 MiB (v7x-safe)."""
    phys = 128 << 20
    try:
        info = pltpu.get_tpu_info()
        phys = int(getattr(info, "vmem_capacity_bytes", phys) or phys)
    except Exception:
        pass
    return int(min(96 << 20, (phys * 3) // 4))


def _round_up(x, m):
    return (x + m - 1) // m * m


def _row_tile(m, target):
    """Largest divisor of m that is <= target, preferring multiples of 8."""
    if m <= target:
        return m
    best = None
    for t in range(min(target, m), 0, -1):
        if m % t == 0:
            if t % 8 == 0:
                return t
            if best is None:
                best = t
    return best or m


def _col_tile(n, target):
    """Lane-dense column tile: a multiple of 128 dividing n, else full n."""
    if n <= 128 or n % 128 != 0:
        return n
    t = min(target - target % 128, n)
    if t < 128:
        t = 128
    for cand in range(t, 127, -128):
        if n % cand == 0:
            return cand
    return n


def _pick_tiles(M, N, K, *, in_itemsize, out_itemsize, has_ln, has_residual,
                vmem_limit):
    """Pick (tm, tn) as large as the VMEM budget allows (double buffering)."""
    budget = int(vmem_limit * 0.7)
    tm_target, tn_target = 512, 1024
    while True:
        tm = _row_tile(M, tm_target)
        tn = _col_tile(N, tn_target)
        need = 2 * (tm * K + K * tn) * in_itemsize      # double-buffered x & w
        need += 2 * tm * tn * out_itemsize              # double-buffered out
        if has_residual:
            need += 2 * tm * tn * in_itemsize
        if has_ln:
            need += tm * K * in_itemsize                # LN scratch
        need += 4 * tm * max(tn, K) * 4                 # f32 temporaries slack
        if need <= budget:
            return tm, tn
        if tn > 128 and tn_target > 128:
            tn_target //= 2
        elif tm > 8 and tm_target > 8:
            tm_target //= 2
        else:
            return tm, tn


# -----------------------------------------------------------------------------
# Pallas kernels
# -----------------------------------------------------------------------------
def _fused_linear_kernel(*refs, has_ln, has_bias, has_residual, activation, eps,
                         ln_cached):
    """One (tm, tn) output tile of: act(LN?(x) @ w + b?) + residual?."""
    it = iter(refs)
    x_ref = next(it)
    g_ref = next(it) if has_ln else None
    bln_ref = next(it) if has_ln else None
    w_ref = next(it)
    b_ref = next(it) if has_bias else None
    r_ref = next(it) if has_residual else None
    o_ref = next(it)
    xln_ref = next(it) if (has_ln and ln_cached) else None

    def _layer_norm(xf):
        mean = jnp.mean(xf, axis=-1, keepdims=True)
        xc = xf - mean
        var = jnp.mean(xc * xc, axis=-1, keepdims=True)
        y = xc * jax.lax.rsqrt(var + eps)
        return y * g_ref[...].astype(jnp.float32) + bln_ref[...].astype(jnp.float32)

    if has_ln and ln_cached:
        # LN of the (tm, K) row slab computed only on the first column tile;
        # later column tiles reuse the bf16 LN result held in VMEM scratch.
        @pl.when(pl.program_id(1) == 0)
        def _():
            xln_ref[...] = _layer_norm(
                x_ref[...].astype(jnp.float32)).astype(xln_ref.dtype)
        xm = xln_ref[...]
    elif has_ln:
        xm = _layer_norm(x_ref[...].astype(jnp.float32)).astype(w_ref.dtype)
    else:
        xm = x_ref[...].astype(w_ref.dtype)

    # bf16 x bf16 -> f32 accumulate on the MXU.
    y = jnp.dot(xm, w_ref[...], preferred_element_type=jnp.float32)
    if has_bias:
        y = y + b_ref[...].astype(jnp.float32)
    if activation == "quickgelu":
        y = y * jax.nn.sigmoid(1.702 * y)               # QuickGELU (EUP sigmoid)
    if has_residual:
        y = y + r_ref[...].astype(jnp.float32)
    o_ref[...] = y.astype(o_ref.dtype)


def _layernorm_kernel(x_ref, g_ref, b_ref, o_ref, *, eps):
    x = x_ref[...].astype(jnp.float32)
    mean = jnp.mean(x, axis=-1, keepdims=True)
    xc = x - mean
    var = jnp.mean(xc * xc, axis=-1, keepdims=True)
    y = xc * jax.lax.rsqrt(var + eps)
    y = y * g_ref[...].astype(jnp.float32) + b_ref[...].astype(jnp.float32)
    o_ref[...] = y.astype(o_ref.dtype)


def _attention_heads_body(q_all, k_all, v_all, o_ref, *, heads, hd, valid_len,
                          masked):
    """softmax(q @ k^T) @ v for `heads` heads packed along the column axis.
    The head-dim scale is pre-folded into the q columns of in_proj."""
    Lp = q_all.shape[0]
    bias = None
    if masked:
        # (1, Lp) additive key-padding bias, shared across heads.
        col = jax.lax.broadcasted_iota(jnp.int32, (1, Lp), 1)
        bias = jnp.where(col < valid_len, 0.0, -jnp.inf).astype(jnp.float32)
    for h in range(heads):                              # static unroll
        lo = h * hd
        q = q_all[:, lo:lo + hd]
        k = k_all[:, lo:lo + hd]
        v = v_all[:, lo:lo + hd]
        s = jax.lax.dot_general(q, k, (((1,), (1,)), ((), ())),
                                preferred_element_type=jnp.float32)   # (Lp, Lp)
        if masked:
            s = s + bias
        m = jnp.max(s, axis=-1, keepdims=True)
        p = jnp.exp(s - m)
        denom = jnp.sum(p, axis=-1, keepdims=True)
        p = p * pl.reciprocal(denom, approx=True)       # EUP reciprocal
        o = jnp.dot(p.astype(v.dtype), v, preferred_element_type=jnp.float32)
        o_ref[:, lo:lo + hd] = o.astype(o_ref.dtype)


def _attention_split_kernel(q_ref, k_ref, v_ref, o_ref, *, heads, hd, valid_len,
                            masked):
    _attention_heads_body(q_ref[...], k_ref[...], v_ref[...], o_ref,
                          heads=heads, hd=hd, valid_len=valid_len, masked=masked)


def _attention_fused_kernel(qkv_ref, o_ref, *, heads, hd, valid_len, masked):
    qkv = qkv_ref[...]
    C = heads * hd
    _attention_heads_body(qkv[:, :C], qkv[:, C:2 * C], qkv[:, 2 * C:], o_ref,
                          heads=heads, hd=hd, valid_len=valid_len, masked=masked)


# -----------------------------------------------------------------------------
# Pallas wrappers
# -----------------------------------------------------------------------------
def fused_linear(x, w, b=None, *, gamma=None, beta=None, residual=None,
                 activation=None, eps=1e-5, out_dtype=None):
    """o = act(LN?(x) @ w + b?) + residual?  tiled over an (M, N) grid."""
    M, K = x.shape
    Kw, N = w.shape
    assert Kw == K
    out_dtype = out_dtype or x.dtype
    has_ln = gamma is not None
    has_bias = b is not None
    has_residual = residual is not None

    vmem_limit = _vmem_limit_bytes()
    tm, tn = _pick_tiles(M, N, K,
                         in_itemsize=x.dtype.itemsize,
                         out_itemsize=jnp.dtype(out_dtype).itemsize,
                         has_ln=has_ln, has_residual=has_residual,
                         vmem_limit=vmem_limit)
    gi, gj = M // tm, N // tn
    ln_cached = has_ln and gj > 1
    # Weight-stationary ordering when the weight panel dominates HBM traffic
    # and would otherwise be re-streamed gi times.
    weight_outer = (not has_ln) and gi > 1 and N >= M

    if weight_outer:
        grid = (gj, gi)
        x_map = lambda j, i: (i, 0)
        w_map = lambda j, i: (0, j)
        b_map = lambda j, i: (0, j)
        r_map = lambda j, i: (i, j)
        o_map = lambda j, i: (i, j)
        sem = ("parallel", "parallel")
    else:
        grid = (gi, gj)
        x_map = lambda i, j: (i, 0)
        w_map = lambda i, j: (0, j)
        b_map = lambda i, j: (0, j)
        r_map = lambda i, j: (i, j)
        o_map = lambda i, j: (i, j)
        # j must be iterated in order when the LN scratch is reused across it.
        sem = ("parallel", "arbitrary") if ln_cached else ("parallel", "parallel")

    in_specs = [pl.BlockSpec((tm, K), x_map)]
    args = [x]
    if has_ln:
        ln_map = lambda *_: (0, 0)
        in_specs += [pl.BlockSpec((1, K), ln_map), pl.BlockSpec((1, K), ln_map)]
        args += [gamma.reshape(1, K), beta.reshape(1, K)]
    in_specs.append(pl.BlockSpec((K, tn), w_map))
    args.append(w)
    if has_bias:
        in_specs.append(pl.BlockSpec((1, tn), b_map))
        args.append(b.reshape(1, N))
    if has_residual:
        in_specs.append(pl.BlockSpec((tm, tn), r_map))
        args.append(residual)

    scratch_shapes = [pltpu.VMEM((tm, K), w.dtype)] if ln_cached else []

    kernel = functools.partial(
        _fused_linear_kernel, has_ln=has_ln, has_bias=has_bias,
        has_residual=has_residual, activation=activation, eps=eps,
        ln_cached=ln_cached)

    bytes_io = (M * K * x.dtype.itemsize
                + K * N * w.dtype.itemsize
                + M * N * jnp.dtype(out_dtype).itemsize
                + (M * N * residual.dtype.itemsize if has_residual else 0))
    cost = pl.CostEstimate(flops=2 * M * N * K,
                           transcendentals=(M * N if activation else 0),
                           bytes_accessed=int(bytes_io))

    return pl.pallas_call(
        kernel,
        out_shape=jax.ShapeDtypeStruct((M, N), out_dtype),
        grid=grid,
        in_specs=in_specs,
        out_specs=pl.BlockSpec((tm, tn), o_map),
        scratch_shapes=scratch_shapes,
        compiler_params=pltpu.CompilerParams(
            dimension_semantics=sem,
            vmem_limit_bytes=vmem_limit),
        cost_estimate=cost,
    )(*args)


def pallas_layernorm(x, g, b, *, eps=1e-5, out_dtype=None):
    """Standalone LayerNorm (used only for ln_pre), tiled over rows."""
    M, D = x.shape
    tm = _row_tile(M, 512)
    out_dtype = out_dtype or x.dtype
    return pl.pallas_call(
        functools.partial(_layernorm_kernel, eps=eps),
        out_shape=jax.ShapeDtypeStruct((M, D), out_dtype),
        grid=(M // tm,),
        in_specs=[pl.BlockSpec((tm, D), lambda i: (i, 0)),
                  pl.BlockSpec((1, D), lambda i: (0, 0)),
                  pl.BlockSpec((1, D), lambda i: (0, 0))],
        out_specs=pl.BlockSpec((tm, D), lambda i: (i, 0)),
        compiler_params=pltpu.CompilerParams(
            dimension_semantics=("parallel",),
            vmem_limit_bytes=_vmem_limit_bytes()),
    )(x, g.reshape(1, D), b.reshape(1, D))


def pallas_attention(qkv3d, *, heads, valid_len):
    """qkv3d: (B, Lp, 3C) -> (B, Lp, C).  Heads are indexed via column
    BlockSpecs; the per-head output goes straight into its column range of a
    (B, Lp, C) buffer, so no head split/merge transposes are needed."""
    B, Lp, threeC = qkv3d.shape
    C = threeC // 3
    hd = C // heads
    masked = (valid_len != Lp)
    vmem_limit = _vmem_limit_bytes()
    isz = qkv3d.dtype.itemsize
    cost = pl.CostEstimate(flops=4 * B * Lp * Lp * C,
                           transcendentals=B * heads * Lp * Lp,
                           bytes_accessed=int(4 * B * Lp * C * isz))

    # Smallest head group whose column width is lane-aligned (multiple of 128).
    hpg = None
    for cand in range(1, heads + 1):
        if heads % cand == 0 and (cand * hd) % 128 == 0:
            hpg = cand
            break

    if hpg is not None:
        G = heads // hpg
        Cg = hpg * hd
        kernel = functools.partial(_attention_split_kernel, heads=hpg, hd=hd,
                                   valid_len=valid_len, masked=masked)
        in_specs = [
            pl.BlockSpec((None, Lp, Cg), lambda b, g: (b, 0, g)),            # q
            pl.BlockSpec((None, Lp, Cg), lambda b, g: (b, 0, G + g)),        # k
            pl.BlockSpec((None, Lp, Cg), lambda b, g: (b, 0, 2 * G + g)),    # v
        ]
        return pl.pallas_call(
            kernel,
            out_shape=jax.ShapeDtypeStruct((B, Lp, C), qkv3d.dtype),
            grid=(B, G),
            in_specs=in_specs,
            out_specs=pl.BlockSpec((None, Lp, Cg), lambda b, g: (b, 0, g)),
            compiler_params=pltpu.CompilerParams(
                dimension_semantics=("parallel", "parallel"),
                vmem_limit_bytes=vmem_limit),
            cost_estimate=cost,
        )(qkv3d, qkv3d, qkv3d)

    # Fallback for head widths that cannot be lane-aligned (tiny test dims):
    # process all heads of one batch element per grid step from the full slab.
    kernel = functools.partial(_attention_fused_kernel, heads=heads, hd=hd,
                               valid_len=valid_len, masked=masked)
    return pl.pallas_call(
        kernel,
        out_shape=jax.ShapeDtypeStruct((B, Lp, C), qkv3d.dtype),
        grid=(B,),
        in_specs=[pl.BlockSpec((None, Lp, threeC), lambda b: (b, 0, 0))],
        out_specs=pl.BlockSpec((None, Lp, C), lambda b: (b, 0, 0)),
        compiler_params=pltpu.CompilerParams(
            dimension_semantics=("parallel",),
            vmem_limit_bytes=vmem_limit),
        cost_estimate=cost,
    )(qkv3d)


# -----------------------------------------------------------------------------
# Glue: im2col patch extraction (strided conv -> matmul)
# -----------------------------------------------------------------------------
def im2col(x, p, s):
    """(N, C, H, W) -> (N, P, C*p*p); patches row-major (ny, nx), per-patch
    flattening (C, p, p) to match torch conv weight.reshape(O, -1)."""
    N, C, H, W = x.shape
    ny = (H - p) // s + 1
    nx = (W - p) // s + 1
    iy = (jnp.arange(ny) * s)[:, None] + jnp.arange(p)[None, :]
    ix = (jnp.arange(nx) * s)[:, None] + jnp.arange(p)[None, :]
    patches = x[:, :, iy[:, None, :, None], ix[None, :, None, :]]  # (N,C,ny,nx,p,p)
    patches = jnp.transpose(patches, (0, 2, 3, 1, 4, 5))
    return patches.reshape(N, ny * nx, C * p * p)


# -----------------------------------------------------------------------------
# Parameters
# -----------------------------------------------------------------------------
def init_params(key, *, patch_size, width, layers, heads, output_dim,
                num_patches, num_cls):
    scale = width ** (-0.5)
    ks = jax.random.split(key, 8 + layers)
    p = {}
    p["conv1_w"] = 0.02 * jax.random.normal(ks[0], (width, 3, patch_size, patch_size), jnp.float32)
    p["conv1a_w"] = 0.02 * jax.random.normal(ks[1], (width, 1, patch_size, patch_size), jnp.float32)
    p["class_embedding"] = scale * jax.random.normal(ks[2], (num_cls, width), jnp.float32)
    p["positional_embedding"] = scale * jax.random.normal(ks[3], (num_patches + num_cls, width), jnp.float32)
    p["ln_pre_g"] = jnp.ones((width,), jnp.float32)
    p["ln_pre_b"] = jnp.zeros((width,), jnp.float32)
    p["ln_post_g"] = jnp.ones((width,), jnp.float32)
    p["ln_post_b"] = jnp.zeros((width,), jnp.float32)
    p["proj"] = scale * jax.random.normal(ks[4], (width, output_dim), jnp.float32)
    blocks = []
    for li in range(layers):
        bk = jax.random.split(ks[8 + li], 4)
        blocks.append({
            "ln1_g": jnp.ones((width,), jnp.float32),
            "ln1_b": jnp.zeros((width,), jnp.float32),
            "ln2_g": jnp.ones((width,), jnp.float32),
            "ln2_b": jnp.zeros((width,), jnp.float32),
            # stored pre-transposed (in, out) == torch weight.T
            "in_proj_w_t": 0.02 * jax.random.normal(bk[0], (width, 3 * width), jnp.float32),
            "in_proj_b": jnp.zeros((3 * width,), jnp.float32),
            "out_proj_w_t": 0.02 * jax.random.normal(bk[1], (width, width), jnp.float32),
            "out_proj_b": jnp.zeros((width,), jnp.float32),
            "fc_w_t": 0.02 * jax.random.normal(bk[2], (width, 4 * width), jnp.float32),
            "fc_b": jnp.zeros((4 * width,), jnp.float32),
            "cproj_w_t": 0.02 * jax.random.normal(bk[3], (4 * width, width), jnp.float32),
            "cproj_b": jnp.zeros((width,), jnp.float32),
        })
    p["blocks"] = blocks
    return p


def prepare_params(p, *, heads, compute_dtype=_COMPUTE_DTYPE):
    """Fold the attention q-scale into in_proj, pre-concat the two patch convs
    into one matmul weight, and cast matmul operands to the compute dtype."""
    width = p["conv1_w"].shape[0]
    head_scale = (width // heads) ** (-0.5)
    dp = {
        "patch_w_t": jnp.concatenate(
            [p["conv1_w"].reshape(width, -1),
             p["conv1a_w"].reshape(width, -1)], axis=-1).T.astype(compute_dtype),
        "class_embedding": p["class_embedding"],
        "positional_embedding": p["positional_embedding"],
        "ln_pre_g": p["ln_pre_g"], "ln_pre_b": p["ln_pre_b"],
        "ln_post_g": p["ln_post_g"], "ln_post_b": p["ln_post_b"],
        "proj": p["proj"].astype(compute_dtype),
    }
    qscale = jnp.concatenate([jnp.full((width,), head_scale, jnp.float32),
                              jnp.ones((2 * width,), jnp.float32)])
    blocks = []
    for bp in p["blocks"]:
        blocks.append({
            "ln1_g": bp["ln1_g"], "ln1_b": bp["ln1_b"],
            "ln2_g": bp["ln2_g"], "ln2_b": bp["ln2_b"],
            "in_proj_w_t": (bp["in_proj_w_t"] * qscale[None, :]).astype(compute_dtype),
            "in_proj_b": bp["in_proj_b"] * qscale,
            "out_proj_w_t": bp["out_proj_w_t"].astype(compute_dtype),
            "out_proj_b": bp["out_proj_b"],
            "fc_w_t": bp["fc_w_t"].astype(compute_dtype),
            "fc_b": bp["fc_b"],
            "cproj_w_t": bp["cproj_w_t"].astype(compute_dtype),
            "cproj_b": bp["cproj_b"],
        })
    dp["blocks"] = blocks
    return dp


# -----------------------------------------------------------------------------
# Model
# -----------------------------------------------------------------------------
def residual_attention_block(x2d, bp, *, batch, seq_pad, valid_len, heads):
    """x2d: (batch*seq_pad, C) bf16 residual stream."""
    C = x2d.shape[-1]
    # ln_1 fused into the QKV projection (q-scale already folded into weights).
    qkv = fused_linear(x2d, bp["in_proj_w_t"], bp["in_proj_b"],
                       gamma=bp["ln1_g"], beta=bp["ln1_b"])          # (M, 3C)
    # Heads handled entirely inside the attention kernel via column BlockSpecs;
    # reshapes below only split/merge the leading (batch, seq) axes (free).
    o = pallas_attention(qkv.reshape(batch, seq_pad, 3 * C),
                         heads=heads, valid_len=valid_len)            # (B, Lp, C)
    # out_proj with the residual add folded in.
    x2d = fused_linear(o.reshape(batch * seq_pad, C),
                       bp["out_proj_w_t"], bp["out_proj_b"], residual=x2d)
    # ln_2 fused into c_fc + QuickGELU; residual folded into c_proj.
    h = fused_linear(x2d, bp["fc_w_t"], bp["fc_b"],
                     gamma=bp["ln2_g"], beta=bp["ln2_b"], activation="quickgelu")
    x2d = fused_linear(h, bp["cproj_w_t"], bp["cproj_b"], residual=x2d)
    return x2d


def vision_transformer_forward(params, x, alpha, *, patch_size, stride_size,
                               heads, num_cls):
    N = x.shape[0]
    width = params["patch_w_t"].shape[1]

    # Patch embedding: conv1(x) + conv1_alpha(alpha) == im2col concat + 1 matmul.
    px = im2col(x, patch_size, stride_size)        # (N, P, 3*p*p)
    pa = im2col(alpha, patch_size, stride_size)    # (N, P, p*p)
    patches = jnp.concatenate([px, pa], axis=-1).astype(_COMPUTE_DTYPE)
    P = patches.shape[1]
    emb = fused_linear(patches.reshape(N * P, -1), params["patch_w_t"],
                       out_dtype=jnp.float32).reshape(N, P, width)

    # [cls tokens | patch tokens] + positional embedding; pad seq to mult of 16
    # (bf16 packs 16 rows per sublane vreg).
    cls = jnp.broadcast_to(params["class_embedding"][None], (N, num_cls, width))
    tokens = jnp.concatenate([cls, emb], axis=1) + params["positional_embedding"][None]
    L = tokens.shape[1]
    Lp = _round_up(L, 16)
    tokens = jnp.pad(tokens, ((0, 0), (0, Lp - L), (0, 0)))

    # ln_pre -> bf16 residual stream (N*Lp, width).
    x2d = pallas_layernorm(tokens.reshape(N * Lp, width),
                           params["ln_pre_g"], params["ln_pre_b"],
                           out_dtype=_COMPUTE_DTYPE)

    for bp in params["blocks"]:
        x2d = residual_attention_block(x2d, bp, batch=N, seq_pad=Lp,
                                       valid_len=L, heads=heads)

    # ln_post fused with the output projection.
    out = fused_linear(x2d, params["proj"],
                       gamma=params["ln_post_g"], beta=params["ln_post_b"],
                       out_dtype=jnp.float32)
    out_dim = params["proj"].shape[1]
    return out.reshape(N, Lp, out_dim)[:, :L]


# -----------------------------------------------------------------------------
# Main
# -----------------------------------------------------------------------------
if __name__ == "__main__":
    input_resolution = (16, 16)
    patch_size = 4
    stride_size = 4
    width = 32
    layers = 2
    heads = 4
    output_dim = 16
    num_cls = 1
    batch = 2

    num_x = (input_resolution[1] - patch_size) // stride_size + 1
    num_y = (input_resolution[0] - patch_size) // stride_size + 1
    num_patches = num_x * num_y

    key = jax.random.PRNGKey(0)
    kp, kx, ka = jax.random.split(key, 3)

    raw = init_params(kp, patch_size=patch_size, width=width, layers=layers,
                      heads=heads, output_dim=output_dim,
                      num_patches=num_patches, num_cls=num_cls)
    params = prepare_params(raw, heads=heads)

    x = jax.random.normal(kx, (batch, 3, *input_resolution), jnp.float32)
    alpha = jax.random.normal(ka, (batch, 1, *input_resolution), jnp.float32)

    fwd = jax.jit(functools.partial(vision_transformer_forward,
                                    patch_size=patch_size, stride_size=stride_size,
                                    heads=heads, num_cls=num_cls))
    out = fwd(params, x, alpha)
    jax.block_until_ready(out)

    expected = (batch, num_patches + num_cls, output_dim)
    assert out.shape == expected, (out.shape, expected)
    assert bool(jnp.all(jnp.isfinite(out)))
    print("KERNEL_OK")
</pallas_src>

<mosaic_0001>
module attributes {stable_mosaic.version = 11 : i64} {
  func.func @_fused_linear_kernel(%arg0: i32, %arg1: i32, %arg2: memref<32x64xbf16, #tpu.memory_space<vmem>>, %arg3: memref<64x32xbf16, #tpu.memory_space<vmem>>, %arg4: memref<32x32xf32, #tpu.memory_space<vmem>>) attributes {dimension_semantics = [#tpu.dimension_semantics<parallel>, #tpu.dimension_semantics<parallel>], iteration_bounds = array<i64: 1, 1>, scalar_prefetch = 0 : i64, scratch_operands = 0 : i64, tpu.core_type = #tpu.core_type<tc>, window_params = [{transform_indices = @transform_0, window_bounds = array<i64: 32, 64>}, {transform_indices = @transform_1, window_bounds = array<i64: 64, 32>}, {transform_indices = @transform_2, window_bounds = array<i64: 32, 32>}]} {
    %c0 = arith.constant 0 : index
    %c0_0 = arith.constant 0 : index
    %0 = vector.load %arg2[%c0, %c0_0] : memref<32x64xbf16, #tpu.memory_space<vmem>>, vector<32x64xbf16>
    %c0_1 = arith.constant 0 : index
    %c0_2 = arith.constant 0 : index
    %1 = vector.load %arg3[%c0_1, %c0_2] : memref<64x32xbf16, #tpu.memory_space<vmem>>, vector<64x32xbf16>
    %cst = arith.constant dense<0.000000e+00> : vector<32x32xf32>
    %2 = tpu.matmul %0, %1, %cst {dimension_numbers = #tpu.dot_dimension_numbers<[1], [0], [0], [1], [0, 0, 1, 1], [], []>} : vector<32x64xbf16>, vector<64x32xbf16>, vector<32x32xf32> -> vector<32x32xf32>
    %c0_3 = arith.constant 0 : index
    %c0_4 = arith.constant 0 : index
    %3 = vector.load %arg4[%c0_3, %c0_4] : memref<32x32xf32, #tpu.memory_space<vmem>>, vector<32x32xf32>
    tpu.vector_store %arg4[%c0_3, %c0_4], %2 {strides = array<i32>} : memref<32x32xf32, #tpu.memory_space<vmem>>, vector<32x32xf32>,
    return
  }
  func.func @transform_0(%arg0: i32, %arg1: i32) -> (i32, i32) {
    %c0_i32 = arith.constant 0 : i32
    %c0_i32_0 = arith.constant 0 : i32
    return %arg0, %c0_i32 : i32, i32
  }
  func.func @transform_1(%arg0: i32, %arg1: i32) -> (i32, i32) {
    %c0_i32 = arith.constant 0 : i32
    %c0_i32_0 = arith.constant 0 : i32
    return %c0_i32, %arg1 : i32, i32
  }
  func.func @transform_2(%arg0: i32, %arg1: i32) -> (i32, i32) {
    %c0_i32 = arith.constant 0 : i32
    return %arg0, %arg1 : i32, i32
  }
}

module attributes {stable_mosaic.version = 11 : i64} {
  func.func @_layernorm_kernel(%arg0: i32, %arg1: memref<64x32xf32, #tpu.memory_space<vmem>>, %arg2: memref<1x32xf32, #tpu.memory_space<vmem>>, %arg3: memref<1x32xf32, #tpu.memory_space<vmem>>, %arg4: memref<64x32xbf16, #tpu.memory_space<vmem>>) attributes {dimension_semantics = [#tpu.dimension_semantics<parallel>], iteration_bounds = array<i64: 1>, scalar_prefetch = 0 : i64, scratch_operands = 0 : i64, tpu.core_type = #tpu.core_type<tc>, window_params = [{transform_indices = @transform_0, window_bounds = array<i64: 64, 32>}, {pipeline_mode = #tpu.pipeline_mode<synchronous>, transform_indices = @transform_1, window_bounds = array<i64: 1, 32>}, {pipeline_mode = #tpu.pipeline_mode<synchronous>, transform_indices = @transform_2, window_bounds = array<i64: 1, 32>}, {transform_indices = @transform_3, window_bounds = array<i64: 64, 32>}]} {
    %c0 = arith.constant 0 : index
    %c0_0 = arith.constant 0 : index
    %0 = vector.load %arg1[%c0, %c0_0] : memref<64x32xf32, #tpu.memory_space<vmem>>, vector<64x32xf32>
    %cst = arith.constant dense<0.000000e+00> : vector<64xf32>
    %1 = vector.multi_reduction <add>, %0, %cst [1] : vector<64x32xf32> to vector<64xf32>
    %2 = vector.shape_cast %1 : vector<64xf32> to vector<64x1xf32>
    %cst_1 = arith.constant 3.200000e+01 : f32
    %3 = vector.broadcast %cst_1 : f32 to vector<64x1xf32>
    %4 = arith.divf %2, %3 : vector<64x1xf32>
    %5 = vector.broadcast %4 : vector<64x1xf32> to vector<64x32xf32>
    %6 = arith.subf %0, %5 : vector<64x32xf32>
    %7 = arith.mulf %6, %6 : vector<64x32xf32>
    %cst_2 = arith.constant dense<0.000000e+00> : vector<64xf32>
    %8 = vector.multi_reduction <add>, %7, %cst_2 [1] : vector<64x32xf32> to vector<64xf32>
    %9 = vector.shape_cast %8 : vector<64xf32> to vector<64x1xf32>
    %cst_3 = arith.constant 3.200000e+01 : f32
    %10 = vector.broadcast %cst_3 : f32 to vector<64x1xf32>
    %11 = arith.divf %9, %10 : vector<64x1xf32>
    %cst_4 = arith.constant 9.99999974E-6 : f32
    %12 = vector.broadcast %cst_4 : f32 to vector<64x1xf32>
    %13 = arith.addf %11, %12 : vector<64x1xf32>
    %14 = math.rsqrt %13 : vector<64x1xf32>
    %15 = vector.broadcast %14 : vector<64x1xf32> to vector<64x32xf32>
    %16 = arith.mulf %6, %15 : vector<64x32xf32>
    %c0_5 = arith.constant 0 : index
    %c0_6 = arith.constant 0 : index
    %17 = vector.load %arg2[%c0_5, %c0_6] : memref<1x32xf32, #tpu.memory_space<vmem>>, vector<1x32xf32>
    %18 = vector.broadcast %17 : vector<1x32xf32> to vector<64x32xf32>
    %19 = arith.mulf %16, %18 : vector<64x32xf32>
    %c0_7 = arith.constant 0 : index
    %c0_8 = arith.constant 0 : index
    %20 = vector.load %arg3[%c0_7, %c0_8] : memref<1x32xf32, #tpu.memory_space<vmem>>, vector<1x32xf32>
    %21 = vector.broadcast %20 : vector<1x32xf32> to vector<64x32xf32>
    %22 = arith.addf %19, %21 : vector<64x32xf32>
    %23 = arith.truncf %22 : vector<64x32xf32> to vector<64x32xbf16>
    %c0_9 = arith.constant 0 : index
    %c0_10 = arith.constant 0 : index
    %24 = vector.load %arg4[%c0_9, %c0_10] : memref<64x32xbf16, #tpu.memory_space<vmem>>, vector<64x32xbf16>
    tpu.vector_store %arg4[%c0_9, %c0_10], %23 {strides = array<i32>} : memref<64x32xbf16, #tpu.memory_space<vmem>>, vector<64x32xbf16>,
    return
  }
  func.func @transform_0(%arg0: i32) -> (i32, i32) {
    %c0_i32 = arith.constant 0 : i32
    %c0_i32_0 = arith.constant 0 : i32
    return %arg0, %c0_i32 : i32, i32
  }
  func.func @transform_1(%arg0: i32) -> (i32, i32) {
    %c0_i32 = arith.constant 0 : i32
    %c0_i32_0 = arith.constant 0 : i32
    %c0_i32_1 = arith.constant 0 : i32
    return %c0_i32, %c0_i32_0 : i32, i32
  }
  func.func @transform_2(%arg0: i32) -> (i32, i32) {
    %c0_i32 = arith.constant 0 : i32
    %c0_i32_0 = arith.constant 0 : i32
    %c0_i32_1 = arith.constant 0 : i32
    return %c0_i32, %c0_i32_0 : i32, i32
  }
  func.func @transform_3(%arg0: i32) -> (i32, i32) {
    %c0_i32 = arith.constant 0 : i32
    %c0_i32_0 = arith.constant 0 : i32
    return %arg0, %c0_i32 : i32, i32
  }
}

module attributes {stable_mosaic.version = 11 : i64} {
  func.func @_fused_linear_kernel(%arg0: i32, %arg1: i32, %arg2: memref<64x32xbf16, #tpu.memory_space<vmem>>, %arg3: memref<1x32xf32, #tpu.memory_space<vmem>>, %arg4: memref<1x32xf32, #tpu.memory_space<vmem>>, %arg5: memref<32x96xbf16, #tpu.memory_space<vmem>>, %arg6: memref<1x96xf32, #tpu.memory_space<vmem>>, %arg7: memref<64x96xbf16, #tpu.memory_space<vmem>>) attributes {dimension_semantics = [#tpu.dimension_semantics<parallel>, #tpu.dimension_semantics<parallel>], iteration_bounds = array<i64: 1, 1>, scalar_prefetch = 0 : i64, scratch_operands = 0 : i64, tpu.core_type = #tpu.core_type<tc>, window_params = [{transform_indices = @transform_0, window_bounds = array<i64: 64, 32>}, {pipeline_mode = #tpu.pipeline_mode<synchronous>, transform_indices = @transform_1, window_bounds = array<i64: 1, 32>}, {pipeline_mode = #tpu.pipeline_mode<synchronous>, transform_indices = @transform_2, window_bounds = array<i64: 1, 32>}, {transform_indices = @transform_3, window_bounds = array<i64: 32, 96>}, {transform_indices = @transform_4, window_bounds = array<i64: 1, 96>}, {transform_indices = @transform_5, window_bounds = array<i64: 64, 96>}]} {
    %c0 = arith.constant 0 : index
    %c0_0 = arith.constant 0 : index
    %0 = vector.load %arg2[%c0, %c0_0] : memref<64x32xbf16, #tpu.memory_space<vmem>>, vector<64x32xbf16>
    %1 = arith.extf %0 : vector<64x32xbf16> to vector<64x32xf32>
    %cst = arith.constant dense<0.000000e+00> : vector<64xf32>
    %2 = vector.multi_reduction <add>, %1, %cst [1] : vector<64x32xf32> to vector<64xf32>
    %3 = vector.shape_cast %2 : vector<64xf32> to vector<64x1xf32>
    %cst_1 = arith.constant 3.200000e+01 : f32
    %4 = vector.broadcast %cst_1 : f32 to vector<64x1xf32>
    %5 = arith.divf %3, %4 : vector<64x1xf32>
    %6 = vector.broadcast %5 : vector<64x1xf32> to vector<64x32xf32>
    %7 = arith.subf %1, %6 : vector<64x32xf32>
    %8 = arith.mulf %7, %7 : vector<64x32xf32>
    %cst_2 = arith.constant dense<0.000000e+00> : vector<64xf32>
    %9 = vector.multi_reduction <add>, %8, %cst_2 [1] : vector<64x32xf32> to vector<64xf32>
    %10 = vector.shape_cast %9 : vector<64xf32> to vector<64x1xf32>
    %cst_3 = arith.constant 3.200000e+01 : f32
    %11 = vector.broadcast %cst_3 : f32 to vector<64x1xf32>
    %12 = arith.divf %10, %11 : vector<64x1xf32>
    %cst_4 = arith.constant 9.99999974E-6 : f32
    %13 = vector.broadcast %cst_4 : f32 to vector<64x1xf32>
    %14 = arith.addf %12, %13 : vector<64x1xf32>
    %15 = math.rsqrt %14 : vector<64x1xf32>
    %16 = vector.broadcast %15 : vector<64x1xf32> to vector<64x32xf32>
    %17 = arith.mulf %7, %16 : vector<64x32xf32>
    %c0_5 = arith.constant 0 : index
    %c0_6 = arith.constant 0 : index
    %18 = vector.load %arg3[%c0_5, %c0_6] : memref<1x32xf32, #tpu.memory_space<vmem>>, vector<1x32xf32>
    %19 = vector.broadcast %18 : vector<1x32xf32> to vector<64x32xf32>
    %20 = arith.mulf %17, %19 : vector<64x32xf32>
    %c0_7 = arith.constant 0 : index
    %c0_8 = arith.constant 0 : index
    %21 = vector.load %arg4[%c0_7, %c0_8] : memref<1x32xf32, #tpu.memory_space<vmem>>, vector<1x32xf32>
    %22 = vector.broadcast %21 : vector<1x32xf32> to vector<64x32xf32>
    %23 = arith.addf %20, %22 : vector<64x32xf32>
    %24 = arith.truncf %23 : vector<64x32xf32> to vector<64x32xbf16>
    %c0_9 = arith.constant 0 : index
    %c0_10 = arith.constant 0 : index
    %25 = vector.load %arg5[%c0_9, %c0_10] : memref<32x96xbf16, #tpu.memory_space<vmem>>, vector<32x96xbf16>
    %cst_11 = arith.constant dense<0.000000e+00> : vector<64x96xf32>
    %26 = tpu.matmul %24, %25, %cst_11 {dimension_numbers = #tpu.dot_dimension_numbers<[1], [0], [0], [1], [0, 0, 1, 1], [], []>} : vector<64x32xbf16>, vector<32x96xbf16>, vector<64x96xf32> -> vector<64x96xf32>
    %c0_12 = arith.constant 0 : index
    %c0_13 = arith.constant 0 : index
    %27 = vector.load %arg6[%c0_12, %c0_13] : memref<1x96xf32, #tpu.memory_space<vmem>>, vector<1x96xf32>
    %28 = vector.broadcast %27 : vector<1x96xf32> to vector<64x96xf32>
    %29 = arith.addf %26, %28 : vector<64x96xf32>
    %30 = arith.truncf %29 : vector<64x96xf32> to vector<64x96xbf16>
    %c0_14 = arith.constant 0 : index
    %c0_15 = arith.constant 0 : index
    %31 = vector.load %arg7[%c0_14, %c0_15] : memref<64x96xbf16, #tpu.memory_space<vmem>>, vector<64x96xbf16>
    tpu.vector_store %arg7[%c0_14, %c0_15], %30 {strides = array<i32>} : memref<64x96xbf16, #tpu.memory_space<vmem>>, vector<64x96xbf16>,
    return
  }
  func.func @transform_0(%arg0: i32, %arg1: i32) -> (i32, i32) {
    %c0_i32 = arith.constant 0 : i32
    %c0_i32_0 = arith.constant 0 : i32
    return %arg0, %c0_i32 : i32, i32
  }
  func.func @transform_1(%arg0: i32, %arg1: i32) -> (i32, i32) {
    %c0_i32 = arith.constant 0 : i32
    %c0_i32_0 = arith.constant 0 : i32
    %c0_i32_1 = arith.constant 0 : i32
    return %c0_i32, %c0_i32_0 : i32, i32
  }
  func.func @transform_2(%arg0: i32, %arg1: i32) -> (i32, i32) {
    %c0_i32 = arith.constant 0 : i32
    %c0_i32_0 = arith.constant 0 : i32
    %c0_i32_1 = arith.constant 0 : i32
    return %c0_i32, %c0_i32_0 : i32, i32
  }
  func.func @transform_3(%arg0: i32, %arg1: i32) -> (i32, i32) {
    %c0_i32 = arith.constant 0 : i32
    %c0_i32_0 = arith.constant 0 : i32
    return %c0_i32, %arg1 : i32, i32
  }
  func.func @transform_4(%arg0: i32, %arg1: i32) -> (i32, i32) {
    %c0_i32 = arith.constant 0 : i32
    %c0_i32_0 = arith.constant 0 : i32
    return %c0_i32, %arg1 : i32, i32
  }
  func.func @transform_5(%arg0: i32, %arg1: i32) -> (i32, i32) {
    %c0_i32 = arith.constant 0 : i32
    return %arg0, %arg1 : i32, i32
  }
}

module attributes {stable_mosaic.version = 11 : i64} {
  func.func @_attention_fused_kernel(%arg0: i32, %arg1: memref<1x32x96xbf16, #tpu.memory_space<vmem>>, %arg2: memref<1x32x32xbf16, #tpu.memory_space<vmem>>) attributes {dimension_semantics = [#tpu.dimension_semantics<parallel>], iteration_bounds = array<i64: 2>, scalar_prefetch = 0 : i64, scratch_operands = 0 : i64, tpu.core_type = #tpu.core_type<tc>, window_params = [{transform_indices = @transform_0, window_bounds = array<i64: 1, 32, 96>}, {transform_indices = @transform_1, window_bounds = array<i64: 1, 32, 32>}]} {
    %c0 = arith.constant 0 : index
    %c0_0 = arith.constant 0 : index
    %c0_1 = arith.constant 0 : index
    %0 = vector.load %arg1[%c0, %c0_0, %c0_1] : memref<1x32x96xbf16, #tpu.memory_space<vmem>>, vector<1x32x96xbf16>
    %1 = vector.shape_cast %0 : vector<1x32x96xbf16> to vector<32x96xbf16>
    %2 = vector.extract_strided_slice %1 {offsets = [0, 0], sizes = [32, 32], strides = [1, 1]} : vector<32x96xbf16> to vector<32x32xbf16>
    %3 = vector.extract_strided_slice %1 {offsets = [0, 32], sizes = [32, 32], strides = [1, 1]} : vector<32x96xbf16> to vector<32x32xbf16>
    %4 = vector.extract_strided_slice %1 {offsets = [0, 64], sizes = [32, 32], strides = [1, 1]} : vector<32x96xbf16> to vector<32x32xbf16>
    %5 = tpu.iota {dimensions = array<i32: 1>} : vector<1x32xi32>
    %c17_i32 = arith.constant 17 : i32
    %6 = vector.broadcast %c17_i32 : i32 to vector<1x32xi32>
    %7 = arith.cmpi slt, %5, %6 : vector<1x32xi32>
    %cst = arith.constant 0.000000e+00 : f32
    %cst_2 = arith.constant 0xFF800000 : f32
    %8 = vector.broadcast %cst : f32 to vector<1x32xf32>
    %9 = vector.broadcast %cst_2 : f32 to vector<1x32xf32>
    %10 = arith.select %7, %8, %9 : vector<1x32xi1>, vector<1x32xf32>
    %11 = vector.extract_strided_slice %2 {offsets = [0, 0], sizes = [32, 8], strides = [1, 1]} : vector<32x32xbf16> to vector<32x8xbf16>
    %12 = vector.extract_strided_slice %3 {offsets = [0, 0], sizes = [32, 8], strides = [1, 1]} : vector<32x32xbf16> to vector<32x8xbf16>
    %13 = vector.extract_strided_slice %4 {offsets = [0, 0], sizes = [32, 8], strides = [1, 1]} : vector<32x32xbf16> to vector<32x8xbf16>
    %cst_3 = arith.constant dense<0.000000e+00> : vector<32x32xf32>
    %14 = tpu.matmul %11, %12, %cst_3 {dimension_numbers = #tpu.dot_dimension_numbers<[1], [1], [0], [0], [0, 0, 1, 0], [], []>} : vector<32x8xbf16>, vector<32x8xbf16>, vector<32x32xf32> -> vector<32x32xf32>
    %15 = vector.broadcast %10 : vector<1x32xf32> to vector<32x32xf32>
    %16 = arith.addf %14, %15 : vector<32x32xf32>
    %cst_4 = arith.constant dense<0xFF800000> : vector<32xf32>
    %17 = vector.multi_reduction <maximumf>, %16, %cst_4 [1] : vector<32x32xf32> to vector<32xf32>
    %18 = vector.shape_cast %17 : vector<32xf32> to vector<32x1xf32>
    %19 = vector.broadcast %18 : vector<32x1xf32> to vector<32x32xf32>
    %20 = arith.subf %16, %19 : vector<32x32xf32>
    %21 = math.exp %20 : vector<32x32xf32>
    %cst_5 = arith.constant dense<0.000000e+00> : vector<32xf32>
    %22 = vector.multi_reduction <add>, %21, %cst_5 [1] : vector<32x32xf32> to vector<32xf32>
    %23 = vector.shape_cast %22 : vector<32xf32> to vector<32x1xf32>
    %24 = tpu.reciprocal %23 {approx = true} : vector<32x1xf32> -> vector<32x1xf32>
    %25 = vector.broadcast %24 : vector<32x1xf32> to vector<32x32xf32>
    %26 = arith.mulf %21, %25 : vector<32x32xf32>
    %27 = arith.truncf %26 : vector<32x32xf32> to vector<32x32xbf16>
    %cst_6 = arith.constant dense<0.000000e+00> : vector<32x8xf32>
    %28 = tpu.matmul %27, %13, %cst_6 {dimension_numbers = #tpu.dot_dimension_numbers<[1], [0], [0], [1], [0, 0, 1, 1], [], []>} : vector<32x32xbf16>, vector<32x8xbf16>, vector<32x8xf32> -> vector<32x8xf32>
    %29 = arith.truncf %28 : vector<32x8xf32> to vector<32x8xbf16>
    %c0_7 = arith.constant 0 : index
    %c0_8 = arith.constant 0 : index
    %c0_9 = arith.constant 0 : index
    %30 = vector.load %arg2[%c0_7, %c0_8, %c0_9] : memref<1x32x32xbf16, #tpu.memory_space<vmem>>, vector<1x32x8xbf16>
    %31 = vector.shape_cast %30 : vector<1x32x8xbf16> to vector<32x8xbf16>
    %32 = vector.shape_cast %29 : vector<32x8xbf16> to vector<1x32x8xbf16>
    tpu.vector_store %arg2[%c0_7, %c0_8, %c0_9], %32 {strides = array<i32>} : memref<1x32x32xbf16, #tpu.memory_space<vmem>>, vector<1x32x8xbf16>,
    %33 = vector.extract_strided_slice %2 {offsets = [0, 8], sizes = [32, 8], strides = [1, 1]} : vector<32x32xbf16> to vector<32x8xbf16>
    %34 = vector.extract_strided_slice %3 {offsets = [0, 8], sizes = [32, 8], strides = [1, 1]} : vector<32x32xbf16> to vector<32x8xbf16>
    %35 = vector.extract_strided_slice %4 {offsets = [0, 8], sizes = [32, 8], strides = [1, 1]} : vector<32x32xbf16> to vector<32x8xbf16>
    %cst_10 = arith.constant dense<0.000000e+00> : vector<32x32xf32>
    %36 = tpu.matmul %33, %34, %cst_10 {dimension_numbers = #tpu.dot_dimension_numbers<[1], [1], [0], [0], [0, 0, 1, 0], [], []>} : vector<32x8xbf16>, vector<32x8xbf16>, vector<32x32xf32> -> vector<32x32xf32>
    %37 = vector.broadcast %10 : vector<1x32xf32> to vector<32x32xf32>
    %38 = arith.addf %36, %37 : vector<32x32xf32>
    %cst_11 = arith.constant dense<0xFF800000> : vector<32xf32>
    %39 = vector.multi_reduction <maximumf>, %38, %cst_11 [1] : vector<32x32xf32> to vector<32xf32>
    %40 = vector.shape_cast %39 : vector<32xf32> to vector<32x1xf32>
    %41 = vector.broadcast %40 : vector<32x1xf32> to vector<32x32xf32>
    %42 = arith.subf %38, %41 : vector<32x32xf32>
    %43 = math.exp %42 : vector<32x32xf32>
    %cst_12 = arith.constant dense<0.000000e+00> : vector<32xf32>
    %44 = vector.multi_reduction <add>, %43, %cst_12 [1] : vector<32x32xf32> to vector<32xf32>
    %45 = vector.shape_cast %44 : vector<32xf32> to vector<32x1xf32>
    %46 = tpu.reciprocal %45 {approx = true} : vector<32x1xf32> -> vector<32x1xf32>
    %47 = vector.broadcast %46 : vector<32x1xf32> to vector<32x32xf32>
    %48 = arith.mulf %43, %47 : vector<32x32xf32>
    %49 = arith.truncf %48 : vector<32x32xf32> to vector<32x32xbf16>
    %cst_13 = arith.constant dense<0.000000e+00> : vector<32x8xf32>
    %50 = tpu.matmul %49, %35, %cst_13 {dimension_numbers = #tpu.dot_dimension_numbers<[1], [0], [0], [1], [0, 0, 1, 1], [], []>} : vector<32x32xbf16>, vector<32x8xbf16>, vector<32x8xf32> -> vector<32x8xf32>
    %51 = arith.truncf %50 : vector<32x8xf32> to vector<32x8xbf16>
    %c0_14 = arith.constant 0 : index
    %c0_15 = arith.constant 0 : index
    %c8 = arith.constant 8 : index
    %52 = vector.load %arg2[%c0_14, %c0_15, %c8] : memref<1x32x32xbf16, #tpu.memory_space<vmem>>, vector<1x32x8xbf16>
    %53 = vector.shape_cast %52 : vector<1x32x8xbf16> to vector<32x8xbf16>
    %54 = vector.shape_cast %51 : vector<32x8xbf16> to vector<1x32x8xbf16>
    tpu.vector_store %arg2[%c0_14, %c0_15, %c8], %54 {strides = array<i32>} : memref<1x32x32xbf16, #tpu.memory_space<vmem>>, vector<1x32x8xbf16>,
    %55 = vector.extract_strided_slice %2 {offsets = [0, 16], sizes = [32, 8], strides = [1, 1]} : vector<32x32xbf16> to vector<32x8xbf16>
    %56 = vector.extract_strided_slice %3 {offsets = [0, 16], sizes = [32, 8], strides = [1, 1]} : vector<32x32xbf16> to vector<32x8xbf16>
    %57 = vector.extract_strided_slice %4 {offsets = [0, 16], sizes = [32, 8], strides = [1, 1]} : vector<32x32xbf16> to vector<32x8xbf16>
    %cst_16 = arith.constant dense<0.000000e+00> : vector<32x32xf32>
    %58 = tpu.matmul %55, %56, %cst_16 {dimension_numbers = #tpu.dot_dimension_numbers<[1], [1], [0], [0], [0, 0, 1, 0], [], []>} : vector<32x8xbf16>, vector<32x8xbf16>, vector<32x32xf32> -> vector<32x32xf32>
    %59 = vector.broadcast %10 : vector<1x32xf32> to vector<32x32xf32>
    %60 = arith.addf %58, %59 : vector<32x32xf32>
    %cst_17 = arith.constant dense<0xFF800000> : vector<32xf32>
    %61 = vector.multi_reduction <maximumf>, %60, %cst_17 [1] : vector<32x32xf32> to vector<32xf32>
    %62 = vector.shape_cast %61 : vector<32xf32> to vector<32x1xf32>
    %63 = vector.broadcast %62 : vector<32x1xf32> to vector<32x32xf32>
    %64 = arith.subf %60, %63 : vector<32x32xf32>
    %65 = math.exp %64 : vector<32x32xf32>
    %cst_18 = arith.constant dense<0.000000e+00> : vector<32xf32>
    %66 = vector.multi_reduction <add>, %65, %cst_18 [1] : vector<32x32xf32> to vector<32xf32>
    %67 = vector.shape_cast %66 : vector<32xf32> to vector<32x1xf32>
    %68 = tpu.reciprocal %67 {approx = true} : vector<32x1xf32> -> vector<32x1xf32>
    %69 = vector.broadcast %68 : vector<32x1xf32> to vector<32x32xf32>
    %70 = arith.mulf %65, %69 : vector<32x32xf32>
    %71 = arith.truncf %70 : vector<32x32xf32> to vector<32x32xbf16>
    %cst_19 = arith.constant dense<0.000000e+00> : vector<32x8xf32>
    %72 = tpu.matmul %71, %57, %cst_19 {dimension_numbers = #tpu.dot_dimension_numbers<[1], [0], [0], [1], [0, 0, 1, 1], [], []>} : vector<32x32xbf16>, vector<32x8xbf16>, vector<32x8xf32> -> vector<32x8xf32>
    %73 = arith.truncf %72 : vector<32x8xf32> to vector<32x8xbf16>
    %c0_20 = arith.constant 0 : index
    %c0_21 = arith.constant 0 : index
    %c16 = arith.constant 16 : index
    %74 = vector.load %arg2[%c0_20, %c0_21, %c16] : memref<1x32x32xbf16, #tpu.memory_space<vmem>>, vector<1x32x8xbf16>
    %75 = vector.shape_cast %74 : vector<1x32x8xbf16> to vector<32x8xbf16>
    %76 = vector.shape_cast %73 : vector<32x8xbf16> to vector<1x32x8xbf16>
    tpu.vector_store %arg2[%c0_20, %c0_21, %c16], %76 {strides = array<i32>} : memref<1x32x32xbf16, #tpu.memory_space<vmem>>, vector<1x32x8xbf16>,
    %77 = vector.extract_strided_slice %2 {offsets = [0, 24], sizes = [32, 8], strides = [1, 1]} : vector<32x32xbf16> to vector<32x8xbf16>
    %78 = vector.extract_strided_slice %3 {offsets = [0, 24], sizes = [32, 8], strides = [1, 1]} : vector<32x32xbf16> to vector<32x8xbf16>
    %79 = vector.extract_strided_slice %4 {offsets = [0, 24], sizes = [32, 8], strides = [1, 1]} : vector<32x32xbf16> to vector<32x8xbf16>
    %cst_22 = arith.constant dense<0.000000e+00> : vector<32x32xf32>
    %80 = tpu.matmul %77, %78, %cst_22 {dimension_numbers = #tpu.dot_dimension_numbers<[1], [1], [0], [0], [0, 0, 1, 0], [], []>} : vector<32x8xbf16>, vector<32x8xbf16>, vector<32x32xf32> -> vector<32x32xf32>
    %81 = vector.broadcast %10 : vector<1x32xf32> to vector<32x32xf32>
    %82 = arith.addf %80, %81 : vector<32x32xf32>
    %cst_23 = arith.constant dense<0xFF800000> : vector<32xf32>
    %83 = vector.multi_reduction <maximumf>, %82, %cst_23 [1] : vector<32x32xf32> to vector<32xf32>
    %84 = vector.shape_cast %83 : vector<32xf32> to vector<32x1xf32>
    %85 = vector.broadcast %84 : vector<32x1xf32> to vector<32x32xf32>
    %86 = arith.subf %82, %85 : vector<32x32xf32>
    %87 = math.exp %86 : vector<32x32xf32>
    %cst_24 = arith.constant dense<0.000000e+00> : vector<32xf32>
    %88 = vector.multi_reduction <add>, %87, %cst_24 [1] : vector<32x32xf32> to vector<32xf32>
    %89 = vector.shape_cast %88 : vector<32xf32> to vector<32x1xf32>
    %90 = tpu.reciprocal %89 {approx = true} : vector<32x1xf32> -> vector<32x1xf32>
    %91 = vector.broadcast %90 : vector<32x1xf32> to vector<32x32xf32>
    %92 = arith.mulf %87, %91 : vector<32x32xf32>
    %93 = arith.truncf %92 : vector<32x32xf32> to vector<32x32xbf16>
    %cst_25 = arith.constant dense<0.000000e+00> : vector<32x8xf32>
    %94 = tpu.matmul %93, %79, %cst_25 {dimension_numbers = #tpu.dot_dimension_numbers<[1], [0], [0], [1], [0, 0, 1, 1], [], []>} : vector<32x32xbf16>, vector<32x8xbf16>, vector<32x8xf32> -> vector<32x8xf32>
    %95 = arith.truncf %94 : vector<32x8xf32> to vector<32x8xbf16>
    %c0_26 = arith.constant 0 : index
    %c0_27 = arith.constant 0 : index
    %c24 = arith.constant 24 : index
    %96 = vector.load %arg2[%c0_26, %c0_27, %c24] : memref<1x32x32xbf16, #tpu.memory_space<vmem>>, vector<1x32x8xbf16>
    %97 = vector.shape_cast %96 : vector<1x32x8xbf16> to vector<32x8xbf16>
    %98 = vector.shape_cast %95 : vector<32x8xbf16> to vector<1x32x8xbf16>
    tpu.vector_store %arg2[%c0_26, %c0_27, %c24], %98 {strides = array<i32>} : memref<1x32x32xbf16, #tpu.memory_space<vmem>>, vector<1x32x8xbf16>,
    return
  }
  func.func @transform_0(%arg0: i32) -> (i32, i32, i32) {
    %c0_i32 = arith.constant 0 : i32
    %c0_i32_0 = arith.constant 0 : i32
    %c0_i32_1 = arith.constant 0 : i32
    return %arg0, %c0_i32, %c0_i32_0 : i32, i32, i32
  }
  func.func @transform_1(%arg0: i32) -> (i32, i32, i32) {
    %c0_i32 = arith.constant 0 : i32
    %c0_i32_0 = arith.constant 0 : i32
    %c0_i32_1 = arith.constant 0 : i32
    return %arg0, %c0_i32, %c0_i32_0 : i32, i32, i32
  }
}

module attributes {stable_mosaic.version = 11 : i64} {
  func.func @_fused_linear_kernel(%arg0: i32, %arg1: i32, %arg2: memref<64x32xbf16, #tpu.memory_space<vmem>>, %arg3: memref<32x32xbf16, #tpu.memory_space<vmem>>, %arg4: memref<1x32xf32, #tpu.memory_space<vmem>>, %arg5: memref<64x32xbf16, #tpu.memory_space<vmem>>, %arg6: memref<64x32xbf16, #tpu.memory_space<vmem>>) attributes {dimension_semantics = [#tpu.dimension_semantics<parallel>, #tpu.dimension_semantics<parallel>], iteration_bounds = array<i64: 1, 1>, scalar_prefetch = 0 : i64, scratch_operands = 0 : i64, tpu.core_type = #tpu.core_type<tc>, window_params = [{transform_indices = @transform_0, window_bounds = array<i64: 64, 32>}, {transform_indices = @transform_1, window_bounds = array<i64: 32, 32>}, {transform_indices = @transform_2, window_bounds = array<i64: 1, 32>}, {transform_indices = @transform_3, window_bounds = array<i64: 64, 32>}, {transform_indices = @transform_4, window_bounds = array<i64: 64, 32>}]} {
    %c0 = arith.constant 0 : index
    %c0_0 = arith.constant 0 : index
    %0 = vector.load %arg2[%c0, %c0_0] : memref<64x32xbf16, #tpu.memory_space<vmem>>, vector<64x32xbf16>
    %c0_1 = arith.constant 0 : index
    %c0_2 = arith.constant 0 : index
    %1 = vector.load %arg3[%c0_1, %c0_2] : memref<32x32xbf16, #tpu.memory_space<vmem>>, vector<32x32xbf16>
    %cst = arith.constant dense<0.000000e+00> : vector<64x32xf32>
    %2 = tpu.matmul %0, %1, %cst {dimension_numbers = #tpu.dot_dimension_numbers<[1], [0], [0], [1], [0, 0, 1, 1], [], []>} : vector<64x32xbf16>, vector<32x32xbf16>, vector<64x32xf32> -> vector<64x32xf32>
    %c0_3 = arith.constant 0 : index
    %c0_4 = arith.constant 0 : index
    %3 = vector.load %arg4[%c0_3, %c0_4] : memref<1x32xf32, #tpu.memory_space<vmem>>, vector<1x32xf32>
    %4 = vector.broadcast %3 : vector<1x32xf32> to vector<64x32xf32>
    %5 = arith.addf %2, %4 : vector<64x32xf32>
    %c0_5 = arith.constant 0 : index
    %c0_6 = arith.constant 0 : index
    %6 = vector.load %arg5[%c0_5, %c0_6] : memref<64x32xbf16, #tpu.memory_space<vmem>>, vector<64x32xbf16>
    %7 = arith.extf %6 : vector<64x32xbf16> to vector<64x32xf32>
    %8 = arith.addf %5, %7 : vector<64x32xf32>
    %9 = arith.truncf %8 : vector<64x32xf32> to vector<64x32xbf16>
    %c0_7 = arith.constant 0 : index
    %c0_8 = arith.constant 0 : index
    %10 = vector.load %arg6[%c0_7, %c0_8] : memref<64x32xbf16, #tpu.memory_space<vmem>>, vector<64x32xbf16>
    tpu.vector_store %arg6[%c0_7, %c0_8], %9 {strides = array<i32>} : memref<64x32xbf16, #tpu.memory_space<vmem>>, vector<64x32xbf16>,
    return
  }
  func.func @transform_0(%arg0: i32, %arg1: i32) -> (i32, i32) {
    %c0_i32 = arith.constant 0 : i32
    %c0_i32_0 = arith.constant 0 : i32
    return %arg0, %c0_i32 : i32, i32
  }
  func.func @transform_1(%arg0: i32, %arg1: i32) -> (i32, i32) {
    %c0_i32 = arith.constant 0 : i32
    %c0_i32_0 = arith.constant 0 : i32
    return %c0_i32, %arg1 : i32, i32
  }
  func.func @transform_2(%arg0: i32, %arg1: i32) -> (i32, i32) {
    %c0_i32 = arith.constant 0 : i32
    %c0_i32_0 = arith.constant 0 : i32
    return %c0_i32, %arg1 : i32, i32
  }
  func.func @transform_3(%arg0: i32, %arg1: i32) -> (i32, i32) {
    %c0_i32 = arith.constant 0 : i32
    return %arg0, %arg1 : i32, i32
  }
  func.func @transform_4(%arg0: i32, %arg1: i32) -> (i32, i32) {
    %c0_i32 = arith.constant 0 : i32
    return %arg0, %arg1 : i32, i32
  }
}

module attributes {stable_mosaic.version = 11 : i64} {
  func.func @_fused_linear_kernel(%arg0: i32, %arg1: i32, %arg2: memref<64x32xbf16, #tpu.memory_space<vmem>>, %arg3: memref<1x32xf32, #tpu.memory_space<vmem>>, %arg4: memref<1x32xf32, #tpu.memory_space<vmem>>, %arg5: memref<32x128xbf16, #tpu.memory_space<vmem>>, %arg6: memref<1x128xf32, #tpu.memory_space<vmem>>, %arg7: memref<64x128xbf16, #tpu.memory_space<vmem>>) attributes {dimension_semantics = [#tpu.dimension_semantics<parallel>, #tpu.dimension_semantics<parallel>], iteration_bounds = array<i64: 1, 1>, scalar_prefetch = 0 : i64, scratch_operands = 0 : i64, tpu.core_type = #tpu.core_type<tc>, window_params = [{transform_indices = @transform_0, window_bounds = array<i64: 64, 32>}, {pipeline_mode = #tpu.pipeline_mode<synchronous>, transform_indices = @transform_1, window_bounds = array<i64: 1, 32>}, {pipeline_mode = #tpu.pipeline_mode<synchronous>, transform_indices = @transform_2, window_bounds = array<i64: 1, 32>}, {transform_indices = @transform_3, window_bounds = array<i64: 32, 128>}, {transform_indices = @transform_4, window_bounds = array<i64: 1, 128>}, {transform_indices = @transform_5, window_bounds = array<i64: 64, 128>}]} {
    %c0 = arith.constant 0 : index
    %c0_0 = arith.constant 0 : index
    %0 = vector.load %arg2[%c0, %c0_0] : memref<64x32xbf16, #tpu.memory_space<vmem>>, vector<64x32xbf16>
    %1 = arith.extf %0 : vector<64x32xbf16> to vector<64x32xf32>
    %cst = arith.constant dense<0.000000e+00> : vector<64xf32>
    %2 = vector.multi_reduction <add>, %1, %cst [1] : vector<64x32xf32> to vector<64xf32>
    %3 = vector.shape_cast %2 : vector<64xf32> to vector<64x1xf32>
    %cst_1 = arith.constant 3.200000e+01 : f32
    %4 = vector.broadcast %cst_1 : f32 to vector<64x1xf32>
    %5 = arith.divf %3, %4 : vector<64x1xf32>
    %6 = vector.broadcast %5 : vector<64x1xf32> to vector<64x32xf32>
    %7 = arith.subf %1, %6 : vector<64x32xf32>
    %8 = arith.mulf %7, %7 : vector<64x32xf32>
    %cst_2 = arith.constant dense<0.000000e+00> : vector<64xf32>
    %9 = vector.multi_reduction <add>, %8, %cst_2 [1] : vector<64x32xf32> to vector<64xf32>
    %10 = vector.shape_cast %9 : vector<64xf32> to vector<64x1xf32>
    %cst_3 = arith.constant 3.200000e+01 : f32
    %11 = vector.broadcast %cst_3 : f32 to vector<64x1xf32>
    %12 = arith.divf %10, %11 : vector<64x1xf32>
    %cst_4 = arith.constant 9.99999974E-6 : f32
    %13 = vector.broadcast %cst_4 : f32 to vector<64x1xf32>
    %14 = arith.addf %12, %13 : vector<64x1xf32>
    %15 = math.rsqrt %14 : vector<64x1xf32>
    %16 = vector.broadcast %15 : vector<64x1xf32> to vector<64x32xf32>
    %17 = arith.mulf %7, %16 : vector<64x32xf32>
    %c0_5 = arith.constant 0 : index
    %c0_6 = arith.constant 0 : index
    %18 = vector.load %arg3[%c0_5, %c0_6] : memref<1x32xf32, #tpu.memory_space<vmem>>, vector<1x32xf32>
    %19 = vector.broadcast %18 : vector<1x32xf32> to vector<64x32xf32>
    %20 = arith.mulf %17, %19 : vector<64x32xf32>
    %c0_7 = arith.constant 0 : index
    %c0_8 = arith.constant 0 : index
    %21 = vector.load %arg4[%c0_7, %c0_8] : memref<1x32xf32, #tpu.memory_space<vmem>>, vector<1x32xf32>
    %22 = vector.broadcast %21 : vector<1x32xf32> to vector<64x32xf32>
    %23 = arith.addf %20, %22 : vector<64x32xf32>
    %24 = arith.truncf %23 : vector<64x32xf32> to vector<64x32xbf16>
    %c0_9 = arith.constant 0 : index
    %c0_10 = arith.constant 0 : index
    %25 = vector.load %arg5[%c0_9, %c0_10] : memref<32x128xbf16, #tpu.memory_space<vmem>>, vector<32x128xbf16>
    %cst_11 = arith.constant dense<0.000000e+00> : vector<64x128xf32>
    %26 = tpu.matmul %24, %25, %cst_11 {dimension_numbers = #tpu.dot_dimension_numbers<[1], [0], [0], [1], [0, 0, 1, 1], [], []>} : vector<64x32xbf16>, vector<32x128xbf16>, vector<64x128xf32> -> vector<64x128xf32>
    %c0_12 = arith.constant 0 : index
    %c0_13 = arith.constant 0 : index
    %27 = vector.load %arg6[%c0_12, %c0_13] : memref<1x128xf32, #tpu.memory_space<vmem>>, vector<1x128xf32>
    %28 = vector.broadcast %27 : vector<1x128xf32> to vector<64x128xf32>
    %29 = arith.addf %26, %28 : vector<64x128xf32>
    %cst_14 = arith.constant 1.702000e+00 : f32
    %30 = vector.broadcast %cst_14 : f32 to vector<64x128xf32>
    %31 = arith.mulf %30, %29 : vector<64x128xf32>
    %32 = arith.negf %31 : vector<64x128xf32>
    %33 = math.exp %32 : vector<64x128xf32>
    %cst_15 = arith.constant 1.000000e+00 : f32
    %34 = vector.broadcast %cst_15 : f32 to vector<64x128xf32>
    %35 = arith.addf %34, %33 : vector<64x128xf32>
    %36 = arith.divf %34, %35 : vector<64x128xf32>
    %37 = arith.mulf %29, %36 : vector<64x128xf32>
    %38 = arith.truncf %37 : vector<64x128xf32> to vector<64x128xbf16>
    %c0_16 = arith.constant 0 : index
    %c0_17 = arith.constant 0 : index
    %39 = vector.load %arg7[%c0_16, %c0_17] : memref<64x128xbf16, #tpu.memory_space<vmem>>, vector<64x128xbf16>
    tpu.vector_store %arg7[%c0_16, %c0_17], %38 {strides = array<i32>} : memref<64x128xbf16, #tpu.memory_space<vmem>>, vector<64x128xbf16>,
    return
  }
  func.func @transform_0(%arg0: i32, %arg1: i32) -> (i32, i32) {
    %c0_i32 = arith.constant 0 : i32
    %c0_i32_0 = arith.constant 0 : i32
    return %arg0, %c0_i32 : i32, i32
  }
  func.func @transform_1(%arg0: i32, %arg1: i32) -> (i32, i32) {
    %c0_i32 = arith.constant 0 : i32
    %c0_i32_0 = arith.constant 0 : i32
    %c0_i32_1 = arith.constant 0 : i32
    return %c0_i32, %c0_i32_0 : i32, i32
  }
  func.func @transform_2(%arg0: i32, %arg1: i32) -> (i32, i32) {
    %c0_i32 = arith.constant 0 : i32
    %c0_i32_0 = arith.constant 0 : i32
    %c0_i32_1 = arith.constant 0 : i32
    return %c0_i32, %c0_i32_0 : i32, i32
  }
  func.func @transform_3(%arg0: i32, %arg1: i32) -> (i32, i32) {
    %c0_i32 = arith.constant 0 : i32
    %c0_i32_0 = arith.constant 0 : i32
    return %c0_i32, %arg1 : i32, i32
  }
  func.func @transform_4(%arg0: i32, %arg1: i32) -> (i32, i32) {
    %c0_i32 = arith.constant 0 : i32
    %c0_i32_0 = arith.constant 0 : i32
    return %c0_i32, %arg1 : i32, i32
  }
  func.func @transform_5(%arg0: i32, %arg1: i32) -> (i32, i32) {
    %c0_i32 = arith.constant 0 : i32
    return %arg0, %arg1 : i32, i32
  }
}

module attributes {stable_mosaic.version = 11 : i64} {
  func.func @_fused_linear_kernel(%arg0: i32, %arg1: i32, %arg2: memref<64x32xbf16, #tpu.memory_space<vmem>>, %arg3: memref<1x32xf32, #tpu.memory_space<vmem>>, %arg4: memref<1x32xf32, #tpu.memory_space<vmem>>, %arg5: memref<32x16xbf16, #tpu.memory_space<vmem>>, %arg6: memref<64x16xf32, #tpu.memory_space<vmem>>) attributes {dimension_semantics = [#tpu.dimension_semantics<parallel>, #tpu.dimension_semantics<parallel>], iteration_bounds = array<i64: 1, 1>, scalar_prefetch = 0 : i64, scratch_operands = 0 : i64, tpu.core_type = #tpu.core_type<tc>, window_params = [{transform_indices = @transform_0, window_bounds = array<i64: 64, 32>}, {pipeline_mode = #tpu.pipeline_mode<synchronous>, transform_indices = @transform_1, window_bounds = array<i64: 1, 32>}, {pipeline_mode = #tpu.pipeline_mode<synchronous>, transform_indices = @transform_2, window_bounds = array<i64: 1, 32>}, {transform_indices = @transform_3, window_bounds = array<i64: 32, 16>}, {transform_indices = @transform_4, window_bounds = array<i64: 64, 16>}]} {
    %c0 = arith.constant 0 : index
    %c0_0 = arith.constant 0 : index
    %0 = vector.load %arg2[%c0, %c0_0] : memref<64x32xbf16, #tpu.memory_space<vmem>>, vector<64x32xbf16>
    %1 = arith.extf %0 : vector<64x32xbf16> to vector<64x32xf32>
    %cst = arith.constant dense<0.000000e+00> : vector<64xf32>
    %2 = vector.multi_reduction <add>, %1, %cst [1] : vector<64x32xf32> to vector<64xf32>
    %3 = vector.shape_cast %2 : vector<64xf32> to vector<64x1xf32>
    %cst_1 = arith.constant 3.200000e+01 : f32
    %4 = vector.broadcast %cst_1 : f32 to vector<64x1xf32>
    %5 = arith.divf %3, %4 : vector<64x1xf32>
    %6 = vector.broadcast %5 : vector<64x1xf32> to vector<64x32xf32>
    %7 = arith.subf %1, %6 : vector<64x32xf32>
    %8 = arith.mulf %7, %7 : vector<64x32xf32>
    %cst_2 = arith.constant dense<0.000000e+00> : vector<64xf32>
    %9 = vector.multi_reduction <add>, %8, %cst_2 [1] : vector<64x32xf32> to vector<64xf32>
    %10 = vector.shape_cast %9 : vector<64xf32> to vector<64x1xf32>
    %cst_3 = arith.constant 3.200000e+01 : f32
    %11 = vector.broadcast %cst_3 : f32 to vector<64x1xf32>
    %12 = arith.divf %10, %11 : vector<64x1xf32>
    %cst_4 = arith.constant 9.99999974E-6 : f32
    %13 = vector.broadcast %cst_4 : f32 to vector<64x1xf32>
    %14 = arith.addf %12, %13 : vector<64x1xf32>
    %15 = math.rsqrt %14 : vector<64x1xf32>
    %16 = vector.broadcast %15 : vector<64x1xf32> to vector<64x32xf32>
    %17 = arith.mulf %7, %16 : vector<64x32xf32>
    %c0_5 = arith.constant 0 : index
    %c0_6 = arith.constant 0 : index
    %18 = vector.load %arg3[%c0_5, %c0_6] : memref<1x32xf32, #tpu.memory_space<vmem>>, vector<1x32xf32>
    %19 = vector.broadcast %18 : vector<1x32xf32> to vector<64x32xf32>
    %20 = arith.mulf %17, %19 : vector<64x32xf32>
    %c0_7 = arith.constant 0 : index
    %c0_8 = arith.constant 0 : index
    %21 = vector.load %arg4[%c0_7, %c0_8] : memref<1x32xf32, #tpu.memory_space<vmem>>, vector<1x32xf32>
    %22 = vector.broadcast %21 : vector<1x32xf32> to vector<64x32xf32>
    %23 = arith.addf %20, %22 : vector<64x32xf32>
    %24 = arith.truncf %23 : vector<64x32xf32> to vector<64x32xbf16>
    %c0_9 = arith.constant 0 : index
    %c0_10 = arith.constant 0 : index
    %25 = vector.load %arg5[%c0_9, %c0_10] : memref<32x16xbf16, #tpu.memory_space<vmem>>, vector<32x16xbf16>
    %cst_11 = arith.constant dense<0.000000e+00> : vector<64x16xf32>
    %26 = tpu.matmul %24, %25, %cst_11 {dimension_numbers = #tpu.dot_dimension_numbers<[1], [0], [0], [1], [0, 0, 1, 1], [], []>} : vector<64x32xbf16>, vector<32x16xbf16>, vector<64x16xf32> -> vector<64x16xf32>
    %c0_12 = arith.constant 0 : index
    %c0_13 = arith.constant 0 : index
    %27 = vector.load %arg6[%c0_12, %c0_13] : memref<64x16xf32, #tpu.memory_space<vmem>>, vector<64x16xf32>
    tpu.vector_store %arg6[%c0_12, %c0_13], %26 {strides = array<i32>} : memref<64x16xf32, #tpu.memory_space<vmem>>, vector<64x16xf32>,
    return
  }
  func.func @transform_0(%arg0: i32, %arg1: i32) -> (i32, i32) {
    %c0_i32 = arith.constant 0 : i32
    %c0_i32_0 = arith.constant 0 : i32
    return %arg0, %c0_i32 : i32, i32
  }
  func.func @transform_1(%arg0: i32, %arg1: i32) -> (i32, i32) {
    %c0_i32 = arith.constant 0 : i32
    %c0_i32_0 = arith.constant 0 : i32
    %c0_i32_1 = arith.constant 0 : i32
    return %c0_i32, %c0_i32_0 : i32, i32
  }
  func.func @transform_2(%arg0: i32, %arg1: i32) -> (i32, i32) {
    %c0_i32 = arith.constant 0 : i32
    %c0_i32_0 = arith.constant 0 : i32
    %c0_i32_1 = arith.constant 0 : i32
    return %c0_i32, %c0_i32_0 : i32, i32
  }
  func.func @transform_3(%arg0: i32, %arg1: i32) -> (i32, i32) {
    %c0_i32 = arith.constant 0 : i32
    %c0_i32_0 = arith.constant 0 : i32
    return %c0_i32, %arg1 : i32, i32
  }
  func.func @transform_4(%arg0: i32, %arg1: i32) -> (i32, i32) {
    %c0_i32 = arith.constant 0 : i32
    return %arg0, %arg1 : i32, i32
  }
}

module attributes {stable_mosaic.version = 11 : i64} {
  func.func @_fused_linear_kernel(%arg0: i32, %arg1: i32, %arg2: memref<64x128xbf16, #tpu.memory_space<vmem>>, %arg3: memref<128x32xbf16, #tpu.memory_space<vmem>>, %arg4: memref<1x32xf32, #tpu.memory_space<vmem>>, %arg5: memref<64x32xbf16, #tpu.memory_space<vmem>>, %arg6: memref<64x32xbf16, #tpu.memory_space<vmem>>) attributes {dimension_semantics = [#tpu.dimension_semantics<parallel>, #tpu.dimension_semantics<parallel>], iteration_bounds = array<i64: 1, 1>, scalar_prefetch = 0 : i64, scratch_operands = 0 : i64, tpu.core_type = #tpu.core_type<tc>, window_params = [{transform_indices = @transform_0, window_bounds = array<i64: 64, 128>}, {transform_indices = @transform_1, window_bounds = array<i64: 128, 32>}, {transform_indices = @transform_2, window_bounds = array<i64: 1, 32>}, {transform_indices = @transform_3, window_bounds = array<i64: 64, 32>}, {transform_indices = @transform_4, window_bounds = array<i64: 64, 32>}]} {
    %c0 = arith.constant 0 : index
    %c0_0 = arith.constant 0 : index
    %0 = vector.load %arg2[%c0, %c0_0] : memref<64x128xbf16, #tpu.memory_space<vmem>>, vector<64x128xbf16>
    %c0_1 = arith.constant 0 : index
    %c0_2 = arith.constant 0 : index
    %1 = vector.load %arg3[%c0_1, %c0_2] : memref<128x32xbf16, #tpu.memory_space<vmem>>, vector<128x32xbf16>
    %cst = arith.constant dense<0.000000e+00> : vector<64x32xf32>
    %2 = tpu.matmul %0, %1, %cst {dimension_numbers = #tpu.dot_dimension_numbers<[1], [0], [0], [1], [0, 0, 1, 1], [], []>} : vector<64x128xbf16>, vector<128x32xbf16>, vector<64x32xf32> -> vector<64x32xf32>
    %c0_3 = arith.constant 0 : index
    %c0_4 = arith.constant 0 : index
    %3 = vector.load %arg4[%c0_3, %c0_4] : memref<1x32xf32, #tpu.memory_space<vmem>>, vector<1x32xf32>
    %4 = vector.broadcast %3 : vector<1x32xf32> to vector<64x32xf32>
    %5 = arith.addf %2, %4 : vector<64x32xf32>
    %c0_5 = arith.constant 0 : index
    %c0_6 = arith.constant 0 : index
    %6 = vector.load %arg5[%c0_5, %c0_6] : memref<64x32xbf16, #tpu.memory_space<vmem>>, vector<64x32xbf16>
    %7 = arith.extf %6 : vector<64x32xbf16> to vector<64x32xf32>
    %8 = arith.addf %5, %7 : vector<64x32xf32>
    %9 = arith.truncf %8 : vector<64x32xf32> to vector<64x32xbf16>
    %c0_7 = arith.constant 0 : index
    %c0_8 = arith.constant 0 : index
    %10 = vector.load %arg6[%c0_7, %c0_8] : memref<64x32xbf16, #tpu.memory_space<vmem>>, vector<64x32xbf16>
    tpu.vector_store %arg6[%c0_7, %c0_8], %9 {strides = array<i32>} : memref<64x32xbf16, #tpu.memory_space<vmem>>, vector<64x32xbf16>,
    return
  }
  func.func @transform_0(%arg0: i32, %arg1: i32) -> (i32, i32) {
    %c0_i32 = arith.constant 0 : i32
    %c0_i32_0 = arith.constant 0 : i32
    return %arg0, %c0_i32 : i32, i32
  }
  func.func @transform_1(%arg0: i32, %arg1: i32) -> (i32, i32) {
    %c0_i32 = arith.constant 0 : i32
    %c0_i32_0 = arith.constant 0 : i32
    return %c0_i32, %arg1 : i32, i32
  }
  func.func @transform_2(%arg0: i32, %arg1: i32) -> (i32, i32) {
    %c0_i32 = arith.constant 0 : i32
    %c0_i32_0 = arith.constant 0 : i32
    return %c0_i32, %arg1 : i32, i32
  }
  func.func @transform_3(%arg0: i32, %arg1: i32) -> (i32, i32) {
    %c0_i32 = arith.constant 0 : i32
    return %arg0, %arg1 : i32, i32
  }
  func.func @transform_4(%arg0: i32, %arg1: i32) -> (i32, i32) {
    %c0_i32 = arith.constant 0 : i32
    return %arg0, %arg1 : i32, i32
  }
}

</mosaic_0001>

<bundles_post_ra>
// kernel: vision_transformer_forward.13
= control target key start
LH: loop header
LB: loop body
LE: loop exit
PB: predicated region body
PF: predicated region fallthrough
CT: control target
= control target key end

     0   :  { %vm58_vm0 = vcmask 523264   ;;  %vm84_vm1 = vcmask 261120   ;;  %s174_s1 = inlined_call_operand.vmem [shape: bf16[64,32], index: 1, kind: input, shape index: {}]   ;;  %s175_s0 = inlined_call_operand.vmem [shape: bf16[32,64], index: 0, kind: input, shape index: {}]   ;;  %s176_s2 = inlined_call_operand.vmem [shape: f32[32,32], index: 2, kind: output, shape index: {}]  }
   0x1   :  { %v124_v0 = vld [vmem:[%s174_s1 + $0x18] sm:$0xff]  ;;  %v123_v1 = vld [vmem:[%s174_s1 + $0x10] sm:$0xff]  ;;  %v122_v2 = vld [vmem:[%s174_s1 + $0x8] sm:$0xff] }
   0x2   :  { %69 = vmatpush.bf16.msra.mxu0 %v124_v0  ;;  %125 = vmatpush.bf16.msra.mxu1 %v124_v0  ;;  %v121_v3 = vld [vmem:[%s174_s1] sm:$0xff]  ;;  %v120_v5 = vld [vmem:[%s175_s0 + $0x8] sm:$0xff] }
   0x3   :  { %v119_v4 = vld [vmem:[%s175_s0] sm:$0xff] }
   0x6   :  { %70 = vmatpush.bf16.msra.mxu0 %v123_v1  ;;  %126 = vmatpush.bf16.msra.mxu1 %v123_v1 }
   0xa   :  { %71 = vmatpush.bf16.msra.mxu0 %v122_v2  ;;  %127 = vmatpush.bf16.msra.mxu1 %v122_v2 }
   0xe   :  { %72 = vmatpush.bf16.msra.mxu0 %v121_v3  ;;  %128 = vmatpush.bf16.msra.mxu1 %v121_v3 }
  0x11   :  { %117 = vmatmul.msk.bf16.vlgmr.msra.gmra.mxu0 %vm58_vm0, %v119_v4  ;;  %118 = vmatmul.msk.bf16.vlgmr.msra.gmra.mxu1 %vm58_vm0, %v120_v5 }
  0x8e   :  { %v74_v6 = vpop.f32.mrf.mxu0  ;;  %v79_v7 = vpop.f32.mrf.mxu1 }
  0x8f   :  { %85 = vst.msk [vmem:[%s176_s2] sm:$0xff] %vm84_vm1, %v74_v6 }
  0x90   :  { %87 = vst.msk [vmem:[%s176_s2 + $0x10] sm:$0xff] %vm84_vm1, %v79_v7 }
  0x96   :  { %v76_v8 = vpop.f32.mrf.mxu0  ;;  %v81_v9 = vpop.f32.mrf.mxu1 }
  0x97   :  { %86 = vst.msk [vmem:[%s176_s2 + $0x8] sm:$0xff] %vm84_vm1, %v76_v8 }
  0x98   :  { %88 = vst.msk [vmem:[%s176_s2 + $0x18] sm:$0xff] %vm84_vm1, %v81_v9 }

// kernel: vision_transformer_forward.14
= control target key start
LH: loop header
LB: loop body
LE: loop exit
PB: predicated region body
PF: predicated region fallthrough
CT: control target
= control target key end

     0   :  { %vm22_vm0 = vcmask 261120   ;;  %v272_v16 = vmov 32.0   ;;  %vm238_vm5 = vcmask 257024   ;;  %s488_s0 = inlined_call_operand.vmem [shape: f32[64,32], index: 0, kind: input, shape index: {}]   ;;  %s489_s1 = inlined_call_operand.vmem [shape: f32[1,32], index: 1, kind: input, shape index: {}]   ;;  %s490_s2 = inlined_call_operand.vmem [shape: f32[1,32], index: 2, kind: input, shape index: {}]   ;;  %s491_s3 = inlined_call_operand.vmem [shape: bf16[64,32], index: 3, kind: output, shape index: {}]  }
   0x1   :  { %v18_v0 = vld [vmem:[%s488_s0 + $0x20] sm:$0xff]  ;;  %v16_v1 = vld [vmem:[%s488_s0 + $0x10] sm:$0xff]  ;;  %v19_v6 = vld [vmem:[%s488_s0 + $0x28] sm:$0xff]  ;;  %254 = vrcp.f32 %v272_v16 }
   0x2   :  { %v14_v2 = vld [vmem:[%s488_s0] sm:$0xff]  ;;  %v35_v3 = vsel %vm22_vm0, %v18_v0, 0.0  ;;  %v29_v4 = vsel %vm22_vm0, %v16_v1, 0.0  ;;  %v17_v7 = vld [vmem:[%s488_s0 + $0x18] sm:$0xff]  ;;  %v15_v8 = vld [vmem:[%s488_s0 + $0x8] sm:$0xff]  ;;  %v38_v9 = vsel %vm22_vm0, %v19_v6, 0.0 }
   0x3   :  { %v23_v5 = vsel %vm22_vm0, %v14_v2, 0.0  ;;  %36 = vadd.xlane.f32.xlu2 %v35_v3  ;;  %30 = vadd.xlane.f32.xlu1 %v29_v4  ;;  %v32_v10 = vsel %vm22_vm0, %v17_v7, 0.0  ;;  %v26_v11 = vsel %vm22_vm0, %v15_v8, 0.0  ;;  %v21_v12 = vld [vmem:[%s488_s0 + $0x38] sm:$0xff]  ;;  %v20_v13 = vld [vmem:[%s488_s0 + $0x30] sm:$0xff] }
   0x4   :  { %24 = vadd.xlane.f32.xlu0 %v23_v5  ;;  %v44_v14 = vsel %vm22_vm0, %v21_v12, 0.0  ;;  %v41_v15 = vsel %vm22_vm0, %v20_v13, 0.0 }
   0x7   :  { %v255_v17 = vpop.eup %254 }
   0x8   :  { %v48_v18 = vmul.f32 32.0, %v255_v17  ;;  %vm52_vm1 = vweird.f32 %v255_v17 }
   0xa   :  { %v49_v19 = vsub.f32 1.0, %v48_v18 }
   0xb   :  { %39 = vadd.xlane.f32.xlu2 %v38_v9  ;;  %33 = vadd.xlane.f32.xlu1 %v32_v10 }
   0xc   :  { %27 = vadd.xlane.f32.xlu0 %v26_v11  ;;  %v50_v20 = vmul.f32 %v255_v17, %v49_v19 }
   0xe   :  { %v51_v21 = vadd.f32 %v255_v17, %v50_v20 }
  0x10   :  { %v325_v22 = vsel %vm52_vm1, %v255_v17, %v51_v21 }
  0x13   :  { %45 = vadd.xlane.f32.xlu1 %v44_v14 }
  0x14   :  { %42 = vadd.xlane.f32.xlu0 %v41_v15 }
  0x76   :  { %v37_v23 = vpop.xlane.xlu2 %36  ;;  %v31_v24 = vpop.xlane.xlu1 %30 }
  0x77   :  { %v56_v25 = vmul.f32 %v325_v22, %v31_v24  ;;  %v25_v26 = vpop.xlane.xlu0 %24  ;;  %v58_v39 = vmul.f32 %v325_v22, %v37_v23 }
  0x78   :  { %v54_v27 = vmul.f32 %v325_v22, %v25_v26 }
  0x79   :  { %v329_v28 = vsub.f32 %v16_v1, %v56_v25  ;;  %v353_v46 = vsub.f32 %v18_v0, %v58_v39 }
  0x7a   :  { %v331_v29 = vsub.f32 %v14_v2, %v54_v27 }
  0x7b   :  { %v72_v30 = vmul.f32 %v329_v28, %v329_v28  ;;  %v74_v55 = vmul.f32 %v353_v46, %v353_v46 }
  0x7c   :  { %v70_v31 = vmul.f32 %v331_v29, %v331_v29 }
  0x7d   :  { %v84_v32 = vsel %vm22_vm0, %v72_v30, 0.0  ;;  %v90_v58 = vsel %vm22_vm0, %v74_v55, 0.0 }
  0x7e   :  { %v40_v33 = vpop.xlane.xlu2 %39  ;;  %85 = vadd.xlane.f32.xlu1 %v84_v32  ;;  %v34_v34 = vpop.xlane.xlu1 %33  ;;  %v78_v35 = vsel %vm22_vm0, %v70_v31, 0.0 }
  0x7f   :  { %v59_v36 = vmul.f32 %v325_v22, %v40_v33  ;;  %v57_v37 = vmul.f32 %v325_v22, %v34_v34  ;;  %79 = vadd.xlane.f32.xlu2 %v78_v35  ;;  %v28_v38 = vpop.xlane.xlu0 %27 }
  0x80   :  { %v55_v40 = vmul.f32 %v325_v22, %v28_v38 }
  0x81   :  { %v343_v41 = vsub.f32 %v19_v6, %v59_v36  ;;  %v345_v42 = vsub.f32 %v17_v7, %v57_v37  ;;  %v393_v37 = vld [vmem:[%s489_s1] ss:$0 sm:$0xff] }
  0x82   :  { %v347_v43 = vsub.f32 %v15_v8, %v55_v40 }
  0x83   :  { %v75_v44 = vmul.f32 %v343_v41, %v343_v41  ;;  %v73_v45 = vmul.f32 %v345_v42, %v345_v42 }
  0x84   :  { %v71_v47 = vmul.f32 %v347_v43, %v347_v43 }
  0x85   :  { %v93_v48 = vsel %vm22_vm0, %v75_v44, 0.0  ;;  %v87_v49 = vsel %vm22_vm0, %v73_v45, 0.0 }
  0x86   :  { %94 = vadd.xlane.f32.xlu1 %v93_v48  ;;  %v81_v50 = vsel %vm22_vm0, %v71_v47, 0.0  ;;  %v46_v51 = vpop.xlane.xlu1 %45  ;;  %v403_v48 = vld [vmem:[%s490_s2] ss:$0 sm:$0xff] }
  0x87   :  { %88 = vadd.xlane.f32.xlu2 %v87_v49  ;;  %82 = vadd.xlane.f32.xlu0 %v81_v50  ;;  %v43_v52 = vpop.xlane.xlu0 %42  ;;  %v61_v54 = vmul.f32 %v325_v22, %v46_v51 }
  0x88   :  { %v60_v53 = vmul.f32 %v325_v22, %v43_v52 }
  0x89   :  { %v366_v57 = vsub.f32 %v21_v12, %v61_v54 }
  0x8a   :  { %v364_v56 = vsub.f32 %v20_v13, %v60_v53 }
  0x8b   :  { %v77_v61 = vmul.f32 %v366_v57, %v366_v57 }
  0x8c   :  { %v76_v59 = vmul.f32 %v364_v56, %v364_v56 }
  0x8d   :  { %v99_v62 = vsel %vm22_vm0, %v77_v61, 0.0 }
  0x8e   :  { %v96_v60 = vsel %vm22_vm0, %v76_v59, 0.0 }
  0x8f   :  { %91 = vadd.xlane.f32.xlu0 %v90_v58  ;;  %97 = vadd.xlane.f32.xlu2 %v96_v60 }
  0x97   :  { %100 = vadd.xlane.f32.xlu0 %v99_v62 }
  0xf1   :  { %v86_v63 = vpop.xlane.xlu1 %85 }
  0xf2   :  { %v104_v0 = vmul.f32 %v86_v63, %v325_v22  ;;  %v80_v1 = vpop.xlane.xlu2 %79 }
  0xf3   :  { %v102_v2 = vmul.f32 %v80_v1, %v325_v22 }
  0xf4   :  { %v112_v3 = vadd.f32 1e-05, %v104_v0 }
  0xf5   :  { %v110_v4 = vadd.f32 1e-05, %v102_v2 }
  0xf6   :  { %256 = vrsqrt.f32 %v112_v3  ;;  %vm144_vm2 = vweird.f32 %v112_v3 }
  0xf7   :  { %258 = vrsqrt.f32 %v110_v4  ;;  %vm124_vm7 = vweird.f32 %v110_v4 }
  0xf9   :  { %v95_v5 = vpop.xlane.xlu1 %94 }
  0xfa   :  { %v107_v6 = vmul.f32 %v95_v5, %v325_v22  ;;  %v89_v7 = vpop.xlane.xlu2 %88  ;;  %v83_v8 = vpop.xlane.xlu0 %82 }
  0xfb   :  { %v105_v9 = vmul.f32 %v89_v7, %v325_v22  ;;  %v103_v10 = vmul.f32 %v83_v8, %v325_v22 }
  0xfc   :  { %v257_v11 = vpop.eup %256  ;;  %v115_v12 = vadd.f32 1e-05, %v107_v6 }
  0xfd   :  { %v259_v13 = vpop.eup %258  ;;  %v139_v14 = vmul.f32 %v257_v11, %v112_v3  ;;  %v380_v15 = vadd.f32 1e-05, %v105_v9  ;;  %v382_v16 = vadd.f32 1e-05, %v103_v10  ;;  %vm145_vm3 = vweird.f32 %v257_v11 }
  0xfe   :  { %v119_v17 = vmul.f32 %v259_v13, %v110_v4  ;;  %260 = vrsqrt.f32 %v115_v12  ;;  %vm125_vm4 = vweird.f32 %v259_v13  ;;  %vm146_vm6 = vmor %vm144_vm2, %vm145_vm3  ;;  %vm174_vm9 = vweird.f32 %v115_v12 }
  0xff   :  { %v140_v18 = vmul.f32 %v257_v11, %v139_v14  ;;  %262 = vrsqrt.f32 %v380_v15  ;;  %vm126_vm8 = vmor %vm124_vm7, %vm125_vm4  ;;  %vm154_vm11 = vweird.f32 %v380_v15  ;;  %vm134_vm15 = vweird.f32 %v382_v16 }
 0x100   :  { %v120_v19 = vmul.f32 %v259_v13, %v119_v17  ;;  %264 = vrsqrt.f32 %v382_v16 }
 0x101   :  { %v141_v20 = vmul.f32 0.5, %v140_v18 }
 0x102   :  { %v121_v21 = vmul.f32 0.5, %v120_v19  ;;  %v98_v23 = vpop.xlane.xlu2 %97  ;;  %v92_v24 = vpop.xlane.xlu0 %91 }
 0x103   :  { %v142_v25 = vsub.f32 1.5, %v141_v20  ;;  %v108_v26 = vmul.f32 %v98_v23, %v325_v22  ;;  %v106_v27 = vmul.f32 %v92_v24, %v325_v22 }
 0x104   :  { %v261_v30 = vpop.eup %260  ;;  %v122_v31 = vsub.f32 1.5, %v121_v21 }
 0x105   :  { %v263_v32 = vpop.eup %262  ;;  %v143_v33 = vmul.f32 %v257_v11, %v142_v25  ;;  %v169_v34 = vmul.f32 %v261_v30, %v115_v12  ;;  %v388_v35 = vadd.f32 1e-05, %v108_v26  ;;  %v397_v40 = vadd.f32 1e-05, %v106_v27 }
 0x106   :  { %v265_v36 = vpop.eup %264  ;;  %v123_v38 = vmul.f32 %v259_v13, %v122_v31  ;;  %v149_v39 = vmul.f32 %v263_v32, %v380_v15  ;;  %vm175_vm10 = vweird.f32 %v261_v30  ;;  %vm155_vm13 = vweird.f32 %v263_v32 }
 0x107   :  { %v147_v44 = vsel %vm146_vm6, %v257_v11, %v143_v33  ;;  %v170_v45 = vmul.f32 %v261_v30, %v169_v34  ;;  %v129_v47 = vmul.f32 %v265_v36, %v382_v16  ;;  %266 = vrsqrt.f32 %v388_v35  ;;  %vm415_vm12 = vmor %vm174_vm9, %vm175_vm10 }
 0x108   :  { %v200_v49 = vmul.f32 %v147_v44, %v329_v28  ;;  %v127_v50 = vsel %vm126_vm8, %v259_v13, %v123_v38  ;;  %v150_v51 = vmul.f32 %v263_v32, %v149_v39  ;;  %268 = vrsqrt.f32 %v397_v40  ;;  %vm156_vm0 = vmor %vm154_vm11, %vm155_vm13 }
 0x109   :  { %v198_v52 = vmul.f32 %v127_v50, %v331_v29  ;;  %v171_v53 = vmul.f32 0.5, %v170_v45  ;;  %v130_v54 = vmul.f32 %v265_v36, %v129_v47  ;;  %vm135_vm14 = vweird.f32 %v265_v36 }
 0x10a   :  { %v212_v55 = vmul.f32 %v393_v37, %v200_v49  ;;  %v151_v58 = vmul.f32 0.5, %v150_v51  ;;  %v101_v59 = vpop.xlane.xlu0 %100  ;;  %vm136_vm1 = vmor %vm134_vm15, %vm135_vm14  ;;  %vm184_vm2 = vweird.f32 %v388_v35  ;;  %vm164_vm7 = vweird.f32 %v397_v40 }
 0x10b   :  { %v210_v60 = vmul.f32 %v393_v37, %v198_v52  ;;  %v172_v28 = vsub.f32 1.5, %v171_v53  ;;  %v131_v61 = vmul.f32 0.5, %v130_v54  ;;  %v109_v62 = vmul.f32 %v101_v59, %v325_v22 }
 0x10c   :  { %v224_v63 = vadd.f32 %v403_v48, %v212_v55  ;;  %v152_v0 = vsub.f32 1.5, %v151_v58 }
 0x10d   :  { %v222_v1 = vadd.f32 %v403_v48, %v210_v60  ;;  %v173_v2 = vmul.f32 %v261_v30, %v172_v28  ;;  %v132_v3 = vsub.f32 1.5, %v131_v61  ;;  %v420_v4 = vadd.f32 1e-05, %v109_v62  ;;  %v267_v5 = vpop.eup %266 }
 0x10e   :  { %v232_v6 = vpack.c.bf16 %v224_v63, %v224_v63  ;;  %v153_v7 = vmul.f32 %v263_v32, %v152_v0  ;;  %v179_v10 = vmul.f32 %v267_v5, %v388_v35  ;;  %v269_v11 = vpop.eup %268  ;;  %vm185_vm3 = vweird.f32 %v267_v5 }
 0x10f   :  { %v230_v22 = vpack.c.bf16 %v222_v1, %v222_v1  ;;  %v177_v8 = vsel %vm415_vm12, %v261_v30, %v173_v2  ;;  %v133_v9 = vmul.f32 %v265_v36, %v132_v3  ;;  %270 = vrsqrt.f32 %v420_v4  ;;  %vm186_vm6 = vmor %vm184_vm2, %vm185_vm3 }
 0x110   :  { %241 = vst.msk [vmem:[%s491_s3 + $0x8] sm:$0xf] %vm238_vm5, %v232_v6  ;;  %v203_v12 = vmul.f32 %v177_v8, %v343_v41  ;;  %v157_v13 = vsel %vm156_vm0, %v263_v32, %v153_v7  ;;  %v180_v16 = vmul.f32 %v267_v5, %v179_v10  ;;  %v159_v17 = vmul.f32 %v269_v11, %v397_v40 }
 0x111   :  { %239 = vst.msk [vmem:[%s491_s3] sm:$0xf] %vm238_vm5, %v230_v22  ;;  %v201_v14 = vmul.f32 %v157_v13, %v345_v42  ;;  %v137_v15 = vsel %vm136_vm1, %v265_v36, %v133_v9  ;;  %vm165_vm4 = vweird.f32 %v269_v11  ;;  %vm194_vm10 = vweird.f32 %v420_v4 }
 0x112   :  { %v215_v18 = vmul.f32 %v393_v37, %v203_v12  ;;  %v199_v41 = vmul.f32 %v137_v15, %v347_v43  ;;  %v181_v20 = vmul.f32 0.5, %v180_v16  ;;  %v160_v21 = vmul.f32 %v269_v11, %v159_v17  ;;  %vm166_vm8 = vmor %vm164_vm7, %vm165_vm4 }
 0x113   :  { %v213_v19 = vmul.f32 %v393_v37, %v201_v14 }
 0x114   :  { %v227_v23 = vadd.f32 %v403_v48, %v215_v18  ;;  %v211_v24 = vmul.f32 %v393_v37, %v199_v41  ;;  %v182_v25 = vsub.f32 1.5, %v181_v20  ;;  %v161_v26 = vmul.f32 0.5, %v160_v21 }
 0x115   :  { %v225_v42 = vadd.f32 %v403_v48, %v213_v19  ;;  %v271_v27 = vpop.eup %270 }
 0x116   :  { %v235_v30 = vpack.c.bf16 %v227_v23, %v227_v23  ;;  %v223_v31 = vadd.f32 %v403_v48, %v211_v24  ;;  %v183_v32 = vmul.f32 %v267_v5, %v182_v25  ;;  %v162_v33 = vsub.f32 1.5, %v161_v26 }
 0x117   :  { %v233_v43 = vpack.c.bf16 %v225_v42, %v225_v42  ;;  %v189_v34 = vmul.f32 %v271_v27, %v420_v4  ;;  %vm195_vm9 = vweird.f32 %v271_v27 }
 0x118   :  { %244 = vst.msk [vmem:[%s491_s3 + $0x14] sm:$0xf] %vm238_vm5, %v235_v30  ;;  %v231_v36 = vpack.c.bf16 %v223_v31, %v223_v31  ;;  %v187_v38 = vsel %vm186_vm6, %v267_v5, %v183_v32  ;;  %v163_v39 = vmul.f32 %v269_v11, %v162_v33  ;;  %vm196_vm11 = vmor %vm194_vm10, %vm195_vm9 }
 0x119   :  { %242 = vst.msk [vmem:[%s491_s3 + $0xc] sm:$0xf] %vm238_vm5, %v233_v43  ;;  %v190_v44 = vmul.f32 %v271_v27, %v189_v34  ;;  %v204_v45 = vmul.f32 %v187_v38, %v364_v56 }
 0x11a   :  { %240 = vst.msk [vmem:[%s491_s3 + $0x4] sm:$0xf] %vm238_vm5, %v231_v36  ;;  %v167_v35 = vsel %vm166_vm8, %v269_v11, %v163_v39 }
 0x11b   :  { %v191_v47 = vmul.f32 0.5, %v190_v44  ;;  %v216_v49 = vmul.f32 %v393_v37, %v204_v45  ;;  %v202_v50 = vmul.f32 %v167_v35, %v353_v46 }
 0x11d   :  { %v192_v51 = vsub.f32 1.5, %v191_v47  ;;  %v228_v40 = vadd.f32 %v403_v48, %v216_v49  ;;  %v214_v52 = vmul.f32 %v393_v37, %v202_v50 }
 0x11f   :  { %v193_v53 = vmul.f32 %v271_v27, %v192_v51  ;;  %v236_v54 = vpack.c.bf16 %v228_v40, %v228_v40  ;;  %v226_v56 = vadd.f32 %v403_v48, %v214_v52 }
 0x121   :  { %v197_v55 = vsel %vm196_vm11, %v271_v27, %v193_v53  ;;  %245 = vst.msk [vmem:[%s491_s3 + $0x18] sm:$0xf] %vm238_vm5, %v236_v54  ;;  %v234_v46 = vpack.c.bf16 %v226_v56, %v226_v56 }
 0x122   :  { %v205_v58 = vmul.f32 %v197_v55, %v366_v57 }
 0x123   :  { %243 = vst.msk [vmem:[%s491_s3 + $0x10] sm:$0xf] %vm238_vm5, %v234_v46 }
 0x124   :  { %v217_v59 = vmul.f32 %v393_v37, %v205_v58 }
 0x126   :  { %v229_v60 = vadd.f32 %v403_v48, %v217_v59 }
 0x128   :  { %v237_v28 = vpack.c.bf16 %v229_v60, %v229_v60 }
 0x12a   :  { %246 = vst.msk [vmem:[%s491_s3 + $0x1c] sm:$0xf] %vm238_vm5, %v237_v28 }

// kernel: vision_transformer_forward.15
= control target key start
LH: loop header
LB: loop body
LE: loop exit
PB: predicated region body
PF: predicated region fallthrough
CT: control target
= control target key end

     0   :  { %vm37_vm0 = vcmask 261120   ;;  %v392_v20 = vmov 32.0   ;;  %s620_s0 = inlined_call_operand.vmem [shape: bf16[64,32], index: 0, kind: input, shape index: {}]   ;;  %s621_s1 = inlined_call_operand.vmem [shape: f32[1,32], index: 1, kind: input, shape index: {}]   ;;  %s622_s2 = inlined_call_operand.vmem [shape: f32[1,32], index: 2, kind: input, shape index: {}]   ;;  %s623_s4 = inlined_call_operand.vmem [shape: f32[1,96], index: 4, kind: input, shape index: {}]   ;;  %s624_s3 = inlined_call_operand.vmem [shape: bf16[32,96], index: 3, kind: input, shape index: {}]   ;;  %s625_s5 = inlined_call_operand.vmem [shape: bf16[64,96], index: 5, kind: output, shape index: {}]  }
   0x1   :  { %v363_v0 = vld [vmem:[%s620_s0 + $0x18] sm:$0xff]   ;;  %v362_v1 = vld [vmem:[%s620_s0 + $0x10] sm:$0xff]   ;;  %v346_v2 = vld [vmem:[%s620_s0] sm:$0xff]   ;;  %374 = vrcp.f32 %v392_v20 }
   0x2   :  { %v359_v3 = vunpack.c.l.bf16 %v363_v0  ;;  %v355_v4 = vunpack.c.l.bf16 %v362_v1  ;;  %v347_v5 = vunpack.c.l.bf16 %v346_v2  ;;  %v360_v9 = vunpack.c.h.bf16 %v363_v0  ;;  %v361_v15 = vld [vmem:[%s620_s0 + $0x8] sm:$0xff]  }
   0x3   :  { %v356_v10 = vunpack.c.h.bf16 %v362_v1  ;;  %v348_v11 = vunpack.c.h.bf16 %v346_v2  ;;  %v351_v16 = vunpack.c.l.bf16 %v361_v15  ;;  %v352_v17 = vunpack.c.h.bf16 %v361_v15 }
   0x4   :  { %v56_v6 = vsel %vm37_vm0, %v359_v3, 0.0  ;;  %v50_v7 = vsel %vm37_vm0, %v355_v4, 0.0  ;;  %v38_v8 = vsel %vm37_vm0, %v347_v5, 0.0  ;;  %v59_v12 = vsel %vm37_vm0, %v360_v9, 0.0 }
   0x5   :  { %57 = vadd.xlane.f32.xlu1 %v56_v6  ;;  %51 = vadd.xlane.f32.xlu0 %v50_v7  ;;  %v53_v13 = vsel %vm37_vm0, %v356_v10, 0.0  ;;  %v41_v14 = vsel %vm37_vm0, %v348_v11, 0.0  ;;  %v44_v18 = vsel %vm37_vm0, %v351_v16, 0.0  ;;  %v47_v19 = vsel %vm37_vm0, %v352_v17, 0.0  ;;  %v344_v7 = vld [vmem:[%s624_s3 + $0x8] sm:$0xff] }
   0x6   :  { %39 = vadd.xlane.f32.xlu2 %v38_v8  ;;  %365 = vmatpush.bf16.msra.mxu2 %v344_v7 }
   0x7   :  { %v375_v21 = vpop.eup %374  ;;  %366 = vmatpush.bf16.msra.mxu3 %v344_v7  ;;  %287 = vmatpush.bf16.msra.mxu0 %v344_v7 }
   0x8   :  { %v63_v22 = vmul.f32 32.0, %v375_v21  ;;  %vm67_vm1 = vweird.f32 %v375_v21  ;;  %364 = vmatpush.bf16.msra.mxu1 %v344_v7 }
   0xa   :  { %v64_v23 = vsub.f32 1.0, %v63_v22 }
   0xc   :  { %v65_v24 = vmul.f32 %v375_v21, %v64_v23 }
   0xd   :  { %60 = vadd.xlane.f32.xlu1 %v59_v12  ;;  %54 = vadd.xlane.f32.xlu0 %v53_v13 }
   0xe   :  { %42 = vadd.xlane.f32.xlu2 %v41_v14  ;;  %v66_v25 = vadd.f32 %v375_v21, %v65_v24 }
  0x10   :  { %v443_v26 = vsel %vm67_vm1, %v375_v21, %v66_v25 }
  0x15   :  { %45 = vadd.xlane.f32.xlu0 %v44_v18  ;;  %48 = vadd.xlane.f32.xlu1 %v47_v19 }
  0x78   :  { %v58_v27 = vpop.xlane.xlu1 %57  ;;  %v52_v28 = vpop.xlane.xlu0 %51 }
  0x79   :  { %v75_v29 = vmul.f32 %v443_v26, %v58_v27  ;;  %v73_v30 = vmul.f32 %v443_v26, %v52_v28  ;;  %v40_v31 = vpop.xlane.xlu2 %39 }
  0x7a   :  { %v69_v40 = vmul.f32 %v443_v26, %v40_v31 }
  0x7b   :  { %v447_v32 = vsub.f32 %v359_v3, %v75_v29  ;;  %v449_v33 = vsub.f32 %v355_v4, %v73_v30 }
  0x7c   :  { %v467_v48 = vsub.f32 %v347_v5, %v69_v40 }
  0x7d   :  { %v91_v34 = vmul.f32 %v447_v32, %v447_v32  ;;  %v89_v35 = vmul.f32 %v449_v33, %v449_v33 }
  0x7e   :  { %v85_v59 = vmul.f32 %v467_v48, %v467_v48 }
  0x7f   :  { %v111_v36 = vsel %vm37_vm0, %v91_v34, 0.0  ;;  %v105_v37 = vsel %vm37_vm0, %v89_v35, 0.0 }
  0x80   :  { %v61_v38 = vpop.xlane.xlu1 %60  ;;  %v55_v39 = vpop.xlane.xlu0 %54  ;;  %112 = vadd.xlane.f32.xlu1 %v111_v36  ;;  %106 = vadd.xlane.f32.xlu2 %v105_v37  ;;  %v93_v63 = vsel %vm37_vm0, %v85_v59, 0.0 }
  0x81   :  { %v76_v41 = vmul.f32 %v443_v26, %v61_v38  ;;  %v74_v42 = vmul.f32 %v443_v26, %v55_v39  ;;  %v43_v43 = vpop.xlane.xlu2 %42 }
  0x82   :  { %v70_v44 = vmul.f32 %v443_v26, %v43_v43 }
  0x83   :  { %v461_v45 = vsub.f32 %v360_v9, %v76_v41  ;;  %v463_v46 = vsub.f32 %v356_v10, %v74_v42  ;;  %v343_v10 = vld [vmem:[%s624_s3] sm:$0xff] }
  0x84   :  { %v465_v47 = vsub.f32 %v348_v11, %v70_v44  ;;  %368 = vmatpush.bf16.msra.mxu2 %v343_v10  ;;  %369 = vmatpush.bf16.msra.mxu3 %v343_v10 }
  0x85   :  { %v90_v49 = vmul.f32 %v463_v46, %v463_v46  ;;  %v92_v50 = vmul.f32 %v461_v45, %v461_v45  ;;  %288 = vmatpush.bf16.msra.mxu0 %v343_v10  ;;  %367 = vmatpush.bf16.msra.mxu1 %v343_v10 }
  0x86   :  { %v86_v51 = vmul.f32 %v465_v47, %v465_v47 }
  0x87   :  { %v108_v52 = vsel %vm37_vm0, %v90_v49, 0.0  ;;  %v114_v53 = vsel %vm37_vm0, %v92_v50, 0.0 }
  0x88   :  { %109 = vadd.xlane.f32.xlu0 %v108_v52  ;;  %v46_v54 = vpop.xlane.xlu0 %45  ;;  %115 = vadd.xlane.f32.xlu2 %v114_v53  ;;  %v96_v55 = vsel %vm37_vm0, %v86_v51, 0.0  ;;  %v49_v56 = vpop.xlane.xlu1 %48 }
  0x89   :  { %v71_v57 = vmul.f32 %v443_v26, %v46_v54  ;;  %97 = vadd.xlane.f32.xlu1 %v96_v55  ;;  %v72_v58 = vmul.f32 %v443_v26, %v49_v56 }
  0x8b   :  { %v482_v60 = vsub.f32 %v351_v16, %v71_v57  ;;  %v484_v61 = vsub.f32 %v352_v17, %v72_v58 }
  0x8d   :  { %v87_v62 = vmul.f32 %v482_v60, %v482_v60  ;;  %v88_v1 = vmul.f32 %v484_v61, %v484_v61 }
  0x8f   :  { %v99_v0 = vsel %vm37_vm0, %v87_v62, 0.0  ;;  %v102_v2 = vsel %vm37_vm0, %v88_v1, 0.0 }
  0x90   :  { %100 = vadd.xlane.f32.xlu2 %v99_v0  ;;  %94 = vadd.xlane.f32.xlu0 %v93_v63 }
  0x98   :  { %103 = vadd.xlane.f32.xlu0 %v102_v2 }
  0xf3   :  { %v113_v3 = vpop.xlane.xlu1 %112  ;;  %v107_v4 = vpop.xlane.xlu2 %106 }
  0xf4   :  { %v123_v5 = vmul.f32 %v113_v3, %v443_v26  ;;  %v121_v6 = vmul.f32 %v107_v4, %v443_v26  ;;  %v540_v3 = vld [vmem:[%s621_s1] ss:$0 sm:$0xff] }
  0xf6   :  { %v131_v8 = vadd.f32 1e-05, %v123_v5  ;;  %v129_v9 = vadd.f32 1e-05, %v121_v6 }
  0xf8   :  { %376 = vrsqrt.f32 %v131_v8  ;;  %vm199_vm2 = vweird.f32 %v131_v8  ;;  %vm179_vm5 = vweird.f32 %v129_v9 }
  0xf9   :  { %378 = vrsqrt.f32 %v129_v9 }
  0xfb   :  { %v110_v11 = vpop.xlane.xlu0 %109  ;;  %v116_v12 = vpop.xlane.xlu2 %115 }
  0xfc   :  { %v122_v13 = vmul.f32 %v110_v11, %v443_v26  ;;  %v98_v14 = vpop.xlane.xlu1 %97  ;;  %v124_v15 = vmul.f32 %v116_v12, %v443_v26 }
  0xfd   :  { %v118_v16 = vmul.f32 %v98_v14, %v443_v26 }
  0xfe   :  { %v377_v17 = vpop.eup %376  ;;  %v130_v18 = vadd.f32 1e-05, %v122_v13  ;;  %v504_v19 = vadd.f32 1e-05, %v124_v15  ;;  %v372_v15 = vld [vmem:[%s622_s2] ss:$0 sm:$0xff] }
  0xff   :  { %v379_v20 = vpop.eup %378  ;;  %v194_v21 = vmul.f32 %v377_v17, %v131_v8  ;;  %v126_v22 = vadd.f32 1e-05, %v118_v16  ;;  %vm200_vm4 = vweird.f32 %v377_v17 }
 0x100   :  { %v174_v23 = vmul.f32 %v379_v20, %v129_v9  ;;  %380 = vrsqrt.f32 %v130_v18  ;;  %vm180_vm3 = vweird.f32 %v379_v20  ;;  %vm189_vm7 = vweird.f32 %v130_v18  ;;  %vm527_vm8 = vmor %vm199_vm2, %vm200_vm4 }
 0x101   :  { %v195_v24 = vmul.f32 %v377_v17, %v194_v21  ;;  %382 = vrsqrt.f32 %v126_v22  ;;  %vm517_vm6 = vmor %vm179_vm5, %vm180_vm3  ;;  %vm149_vm9 = vweird.f32 %v126_v22  ;;  %vm209_vm12 = vweird.f32 %v504_v19 }
 0x102   :  { %v175_v25 = vmul.f32 %v379_v20, %v174_v23  ;;  %384 = vrsqrt.f32 %v504_v19 }
 0x103   :  { %v196_v27 = vmul.f32 0.5, %v195_v24  ;;  %v95_v28 = vpop.xlane.xlu0 %94  ;;  %v101_v29 = vpop.xlane.xlu2 %100 }
 0x104   :  { %v176_v30 = vmul.f32 0.5, %v175_v25  ;;  %v117_v31 = vmul.f32 %v95_v28, %v443_v26  ;;  %v119_v34 = vmul.f32 %v101_v29, %v443_v26 }
 0x105   :  { %v197_v35 = vsub.f32 1.5, %v196_v27 }
 0x106   :  { %v381_v36 = vpop.eup %380  ;;  %v177_v37 = vsub.f32 1.5, %v176_v30  ;;  %v509_v38 = vadd.f32 1e-05, %v117_v31  ;;  %v513_v41 = vadd.f32 1e-05, %v119_v34 }
 0x107   :  { %v511_v39 = vpop.eup %382  ;;  %v184_v40 = vmul.f32 %v381_v36, %v130_v18  ;;  %v198_v43 = vmul.f32 %v377_v17, %v197_v35  ;;  %vm190_vm10 = vweird.f32 %v381_v36 }
 0x108   :  { %v385_v42 = vpop.eup %384  ;;  %v178_v44 = vmul.f32 %v379_v20, %v177_v37  ;;  %v144_v49 = vmul.f32 %v511_v39, %v126_v22  ;;  %386 = vrsqrt.f32 %v509_v38  ;;  %vm150_vm11 = vweird.f32 %v511_v39  ;;  %vm191_vm14 = vmor %vm189_vm7, %vm190_vm10 }
 0x109   :  { %v185_v51 = vmul.f32 %v381_v36, %v184_v40  ;;  %v204_v52 = vmul.f32 %v385_v42, %v504_v19  ;;  %388 = vrsqrt.f32 %v513_v41  ;;  %v202_v59 = vsel %vm527_vm8, %v377_v17, %v198_v43  ;;  %vm549_vm15 = vmor %vm149_vm9, %vm150_vm11 }
 0x10a   :  { %v182_v53 = vsel %vm517_vm6, %v379_v20, %v178_v44  ;;  %v145_v54 = vmul.f32 %v511_v39, %v144_v49  ;;  %vm210_vm13 = vweird.f32 %v385_v42  ;;  %v219_v7 = vmul.f32 %v202_v59, %v447_v32 }
 0x10b   :  { %v186_v56 = vmul.f32 0.5, %v185_v51  ;;  %v205_v57 = vmul.f32 %v385_v42, %v204_v52  ;;  %v104_v58 = vpop.xlane.xlu0 %103  ;;  %v217_v0 = vmul.f32 %v182_v53, %v449_v33  ;;  %vm211_vm1 = vmor %vm209_vm12, %vm210_vm13  ;;  %vm139_vm2 = vweird.f32 %v509_v38 }
 0x10c   :  { %v146_v62 = vmul.f32 0.5, %v145_v54  ;;  %v120_v63 = vmul.f32 %v104_v58, %v443_v26  ;;  %v231_v22 = vmul.f32 %v540_v3, %v219_v7  ;;  %vm159_vm4 = vweird.f32 %v513_v41 }
 0x10d   :  { %v187_v1 = vsub.f32 1.5, %v186_v56  ;;  %v206_v2 = vmul.f32 0.5, %v205_v57  ;;  %v229_v32 = vmul.f32 %v540_v3, %v217_v0  ;;  %vm318_vm11 = vcmask 781312  }
 0x10e   :  { %v387_v4 = vpop.eup %386  ;;  %v147_v5 = vsub.f32 1.5, %v146_v62  ;;  %v128_v6 = vadd.f32 1e-05, %v120_v63 }
 0x10f   :  { %v188_v26 = vmul.f32 %v381_v36, %v187_v1  ;;  %v207_v33 = vsub.f32 1.5, %v206_v2  ;;  %v134_v8 = vmul.f32 %v387_v4, %v509_v38  ;;  %v389_v11 = vpop.eup %388  ;;  %vm140_vm3 = vweird.f32 %v387_v4 }
 0x110   :  { %v148_v9 = vmul.f32 %v511_v39, %v147_v5  ;;  %390 = vrsqrt.f32 %v128_v6  ;;  %v154_v17 = vmul.f32 %v389_v11, %v513_v41  ;;  %v241_v19 = vadd.f32 %v372_v15, %v229_v32  ;;  %vm141_vm5 = vmor %vm139_vm2, %vm140_vm3 }
 0x111   :  { %v192_v12 = vsel %vm191_vm14, %v381_v36, %v188_v26  ;;  %v208_v13 = vmul.f32 %v385_v42, %v207_v33  ;;  %v135_v14 = vmul.f32 %v387_v4, %v134_v8  ;;  %vm160_vm6 = vweird.f32 %v389_v11 }
 0x112   :  { %v218_v16 = vmul.f32 %v192_v12, %v463_v46  ;;  %v152_v18 = vsel %vm549_vm15, %v511_v39, %v148_v9  ;;  %v155_v24 = vmul.f32 %v389_v11, %v154_v17  ;;  %vm161_vm7 = vmor %vm159_vm4, %vm160_vm6  ;;  %vm169_vm9 = vweird.f32 %v128_v6 }
 0x113   :  { %v212_v20 = vsel %vm211_vm1, %v385_v42, %v208_v13  ;;  %v136_v21 = vmul.f32 0.5, %v135_v14  ;;  %v214_v28 = vmul.f32 %v152_v18, %v465_v47 }
 0x114   :  { %v220_v23 = vmul.f32 %v212_v20, %v461_v45  ;;  %v230_v25 = vmul.f32 %v540_v3, %v218_v16  ;;  %v156_v29 = vmul.f32 0.5, %v155_v24  ;;  %v243_v45 = vadd.f32 %v372_v15, %v231_v22 }
 0x115   :  { %v137_v46 = vsub.f32 1.5, %v136_v21  ;;  %v226_v44 = vmul.f32 %v540_v3, %v214_v28 }
 0x116   :  { %v391_v27 = vpop.eup %390  ;;  %v242_v30 = vadd.f32 %v372_v15, %v230_v25  ;;  %v232_v31 = vmul.f32 %v540_v3, %v220_v23  ;;  %v157_v36 = vsub.f32 1.5, %v156_v29 }
 0x117   :  { %v138_v34 = vmul.f32 %v387_v4, %v137_v46  ;;  %v164_v35 = vmul.f32 %v391_v27, %v128_v6  ;;  %vm170_vm8 = vweird.f32 %v391_v27  ;;  %v238_v54 = vadd.f32 %v372_v15, %v226_v44 }
 0x118   :  { %v247_v37 = vpack.c.bf16 %v242_v30, %v241_v19  ;;  %v244_v39 = vadd.f32 %v372_v15, %v232_v31  ;;  %v158_v43 = vmul.f32 %v389_v11, %v157_v36  ;;  %vm171_vm10 = vmor %vm169_vm9, %vm170_vm8 }
 0x119   :  { %v142_v38 = vsel %vm141_vm5, %v387_v4, %v138_v34  ;;  %v165_v40 = vmul.f32 %v391_v27, %v164_v35 }
 0x11a   :  { %v213_v42 = vmul.f32 %v142_v38, %v467_v48  ;;  %341 = vmatmul.msk.bf16.vlgmr.msra.gmra.mxu2 %vm37_vm0, %v247_v37  ;;  %v248_v47 = vpack.c.bf16 %v244_v39, %v243_v45  ;;  %v162_v50 = vsel %vm161_vm7, %v389_v11, %v158_v43 }
 0x11b   :  { %v166_v49 = vmul.f32 0.5, %v165_v40  ;;  %v215_v53 = vmul.f32 %v162_v50, %v482_v60  ;;  %v373_v60 = vld [vmem:[%s623_s4] ss:$0 sm:$0xff] }
 0x11c   :  { %342 = vmatmul.msk.bf16.vlgmr.msra.gmra.mxu3 %vm37_vm0, %v248_v47  ;;  %v225_v51 = vmul.f32 %v540_v3, %v213_v42 }
 0x11d   :  { %v167_v52 = vsub.f32 1.5, %v166_v49  ;;  %v227_v58 = vmul.f32 %v540_v3, %v215_v53 }
 0x11e   :  { %v237_v48 = vadd.f32 %v372_v15, %v225_v51 }
 0x11f   :  { %v168_v55 = vmul.f32 %v391_v27, %v167_v52  ;;  %v239_v62 = vadd.f32 %v372_v15, %v227_v58 }
 0x120   :  { %v245_v56 = vpack.c.bf16 %v238_v54, %v237_v48 }
 0x121   :  { %v172_v57 = vsel %vm171_vm10, %v391_v27, %v168_v55 }
 0x122   :  { %v216_v41 = vmul.f32 %v172_v57, %v484_v61  ;;  %339 = vmatmul.msk.bf16.vlgmr.msra.gmra.mxu0 %vm37_vm0, %v245_v56 }
 0x124   :  { %v228_v59 = vmul.f32 %v540_v3, %v216_v41 }
 0x126   :  { %v240_v63 = vadd.f32 %v372_v15, %v228_v59 }
 0x128   :  { %v246_v0 = vpack.c.bf16 %v240_v63, %v239_v62 }
 0x12a   :  { %340 = vmatmul.msk.bf16.vlgmr.msra.gmra.mxu1 %vm37_vm0, %v246_v0 }
 0x19d   :  { %v300_v1 = vpop.f32.mrf.mxu2 }
 0x19e   :  { %v301_v2 = vadd.f32 %v373_v60, %v300_v1 }
 0x19f   :  { %v305_v4 = vpop.f32.mrf.mxu3  ;;  %v290_v61 = vpop.f32.mrf.mxu0 }
 0x1a0   :  { %v314_v5 = vpack.c.bf16 %v301_v2, %v301_v2  ;;  %v306_v6 = vadd.f32 %v373_v60, %v305_v4  ;;  %v291_v7 = vadd.f32 %v373_v60, %v290_v61 }
 0x1a2   :  { %323 = vst.msk [vmem:[%s625_s5 + $0x10] sm:$0xf] %vm318_vm11, %v314_v5  ;;  %v316_v3 = vpack.c.bf16 %v306_v6, %v306_v6  ;;  %v310_v26 = vpack.c.bf16 %v291_v7, %v291_v7 }
 0x1a4   :  { %325 = vst.msk [vmem:[%s625_s5 + $0x18] sm:$0xf] %vm318_vm11, %v316_v3 }
 0x1a5   :  { %319 = vst.msk [vmem:[%s625_s5] sm:$0xf] %vm318_vm11, %v310_v26  ;;  %v302_v33 = vpop.f32.mrf.mxu2 }
 0x1a6   :  { %v303_v8 = vadd.f32 %v373_v60, %v302_v33 }
 0x1a7   :  { %v307_v9 = vpop.f32.mrf.mxu3  ;;  %v292_v10 = vpop.f32.mrf.mxu0 }
 0x1a8   :  { %v315_v11 = vpack.c.bf16 %v303_v8, %v303_v8  ;;  %v308_v12 = vadd.f32 %v373_v60, %v307_v9  ;;  %v293_v13 = vadd.f32 %v373_v60, %v292_v10  ;;  %v295_v14 = vpop.f32.mrf.mxu1 }
 0x1a9   :  { %v296_v32 = vadd.f32 %v373_v60, %v295_v14 }
 0x1aa   :  { %324 = vst.msk [vmem:[%s625_s5 + $0x14] sm:$0xf] %vm318_vm11, %v315_v11  ;;  %v317_v15 = vpack.c.bf16 %v308_v12, %v308_v12  ;;  %v311_v16 = vpack.c.bf16 %v293_v13, %v293_v13 }
 0x1ab   :  { %v312_v17 = vpack.c.bf16 %v296_v32, %v296_v32 }
 0x1ac   :  { %326 = vst.msk [vmem:[%s625_s5 + $0x1c] sm:$0xf] %vm318_vm11, %v317_v15 }
 0x1ad   :  { %320 = vst.msk [vmem:[%s625_s5 + $0x4] sm:$0xf] %vm318_vm11, %v311_v16 }
 0x1ae   :  { %321 = vst.msk [vmem:[%s625_s5 + $0x8] sm:$0xf] %vm318_vm11, %v312_v17 }
 0x1b0   :  { %v297_v18 = vpop.f32.mrf.mxu1 }
 0x1b1   :  { %v298_v20 = vadd.f32 %v373_v60, %v297_v18 }
 0x1b3   :  { %v313_v21 = vpack.c.bf16 %v298_v20, %v298_v20 }
 0x1b5   :  { %322 = vst.msk [vmem:[%s625_s5 + $0xc] sm:$0xf] %vm318_vm11, %v313_v21 }

// kernel: vision_transformer_forward.16
= control target key start
LH: loop header
LB: loop body
LE: loop exit
PB: predicated region body
PF: predicated region fallthrough
CT: control target
= control target key end

     0   :  { %s896_s6 = smov 0   ;;  %s1112_s0 = inlined_call_operand.vmem [shape: bf16[2,32,96], index: 0, kind: input, shape index: {}]   ;;  %s1113_s1 = inlined_call_operand.vmem [shape: bf16[2,32,32], index: 1, kind: output, shape index: {}]  }
   0x1 LB: > { %s737_s7 = sadd.s32 4294967295, %s869_s6   ;;  %p741_p0 = scmp.ge.s32.totalorder %s869_s6, 1  ;;  %s869_s6 = sphi %s896_s6, %s11_s6  }
   0x2   : > { %p87_p1 = scmp.lt.s32.totalorder %s869_s6, 3 }
   0x4   : > { %p88_p2 = pnand %p741_p0, %p87_p1 }
   0x5   : > { %p107_p3 = scmp.lt.s32.totalorder (!%p88_p2), %s737_s7, 1  ;;  %s871_s12 = smov (!%p88_p2), 96  }
   0x6   : > { %91 = sbr.rel (%p88_p2) target bundleno = 1423 (0x58f), region = 24  ;;  %s872_s13 = smov (!%p88_p2), 88  }
   0x7   : > { %s873_s14 = smov (!%p88_p2), 64   ;;  %s874_s15 = smov (!%p88_p2), 120  }
   0x8   : > { %s875_s16 = smov (!%p88_p2), 80   ;;  %s877_s17 = smov (!%p88_p2), 112  }
   0x9   : > { %s878_s18 = smov (!%p88_p2), 72   ;;  %s879_s19 = smov (!%p88_p2), 104  }
   0xa   : > { %s880_s23 = smov (!%p88_p2), 56   ;;  %s881_s24 = smov (!%p88_p2), 48  }
   0xb   : > { %s1115_s7 = smov (!%p107_p3, %s737_s7), 1  ;;  %vm140_vm0 = vcmask 64512   ;;  %v122_v6 = vlaneseq  ;;  %v876_v8 = vmov -inf   ;;  %vm172_vm2 = vcmask 261120   ;;  %s882_s25 = smov 40  }
   0xc   : > { %s772_s8 = sshll.u32 %s1115_s7, 4  ;;  %vm254_vm3 = vcmask 60416   ;;  %s883_s26 = smov 8   ;;  %vm395_vm4 = vcmask 126016   ;;  %vm536_vm5 = vcmask 191616   ;;  %vm677_vm6 = vcmask 257216  }
   0xd   : > { %s111_s11 = scalar_lea.vmem %s1112_s0, %s772_s8  ;;  %v123_v7 = vand.u32 127, %v122_v6  ;;  %s988_s22 = scalar_lea.vmem %s1113_s1, %s772_s8 }
   0xe   : > { %v912_v0 = vld [vmem:[%s111_s11 + $0x8] sm:$0xff]  ;;  %v915_v1 = vld [vmem:[%s111_s11] sm:$0xff]  ;;  %s884_s27 = smov 16   ;;  %s885_s28 = smov 24  }
   0xf   : > { %138 = vrot.lane.b32.xlu0 %v912_v0, %s871_s12  ;;  %263 = vrot.lane.b32.xlu1 %v915_v1, %s872_s13  ;;  %vm124_vm1 = vcmp.lt.s32.totalorder %v123_v7, 17 }
  0x10   : > { %221 = vrot.lane.b32.xlu2 %v912_v0, %s873_s14  ;;  %v932_v9 = vsel %vm124_vm1, 0.0, %v876_v8 }
  0x17   : > { %136 = vrot.lane.b32.xlu0 %v915_v1, %s871_s12 }
  0x1f   : > { %265 = vrot.lane.b32.xlu0 %v912_v0, %s872_s13 }
  0x27   : > { %261 = vrot.lane.b32.xlu0 %v912_v0, %s874_s15 }
  0x2f   : > { %406 = vrot.lane.b32.xlu0 %v912_v0, %s875_s16 }
  0x6a   : > { %v222_v13 = vpop.permute.xlu2 %221 }
  0x6b   : > { %237 = vmatpush.bf16.msra.mxu1 %v222_v13 }
  0x81   : > { %v139_v2 = vpop.permute.xlu0 %138  ;;  %v264_v23 = vpop.permute.xlu1 %263 }
  0x82   : > { %v151_v3 = vsel %vm140_vm0, %v139_v2, 0  ;;  %v274_v26 = vsel %vm140_vm0, %v264_v23, 0 }
  0x83   : > { %159 = vmatpush.bf16.xpose.msra.mxu0 %v151_v3 }
  0x89   : > { %v137_v4 = vpop.permute.xlu0 %136 }
  0x8a   : > { %v148_v5 = vsel %vm140_vm0, %v137_v4, 0 }
  0x8b   : > { %160 = vmatpush.bf16.xpose.msra.mxu0 %v148_v5 }
  0x91   : > { %v266_v20 = vpop.permute.xlu0 %265 }
  0x92   : > { %754 = vmatmul.msk.bf16.vlgmr.msra.gmra.mxu0 %vm140_vm0, %v915_v1  ;;  %v277_v21 = vsel %vm140_vm0, %v266_v20, 0 }
  0x93   : > { %285 = vmatpush.bf16.xpose.msra.mxu2 %v277_v21 }
  0x99   : > { %v262_v42 = vpop.permute.xlu0 %261 }
  0x9b   : > { %286 = vmatpush.bf16.xpose.msra.mxu2 %v274_v26 }
  0xa1   : > { %v407_v48 = vpop.permute.xlu0 %406 }
  0xa2   : > { %755 = vmatmul.msk.bf16.gmra.mxu0 %vm140_vm0, %v912_v0  ;;  %v418_v49 = vsel %vm140_vm0, %v407_v48, 0 }
 0x10f   : > { %v162_v10 = vpop.f32.mrf.mxu0 }
 0x110   : > { %v163_v11 = vadd.f32 %v162_v10, %v932_v9 }
 0x112   : > { %v173_v12 = vsel %vm172_vm2, %v163_v11, -inf }
 0x113   : > { %174 = vmax.xlane.f32.xlu1 %v173_v12 }
 0x117   : > { %v164_v14 = vpop.f32.mrf.mxu0 }
 0x118   : > { %v165_v15 = vadd.f32 %v164_v14, %v932_v9 }
 0x11a   : > { %v176_v16 = vsel %vm172_vm2, %v165_v15, -inf }
 0x11b   : > { %177 = vmax.xlane.f32.xlu1 %v176_v16 }
 0x11f   : > { %v167_v17 = vpop.f32.mrf.mxu0 }
 0x120   : > { %v168_v18 = vadd.f32 %v167_v17, %v932_v9 }
 0x122   : > { %v179_v19 = vsel %vm172_vm2, %v168_v18, -inf }
 0x123   : > { %180 = vmax.xlane.f32.xlu2 %v179_v19 }
 0x127   : > { %v169_v22 = vpop.f32.mrf.mxu0 }
 0x128   : > { %v170_v24 = vadd.f32 %v169_v22, %v932_v9 }
 0x12a   : > { %v182_v25 = vsel %vm172_vm2, %v170_v24, -inf }
 0x12b   : > { %183 = vmax.xlane.f32.xlu2 %v182_v25 }
 0x134   : > { %259 = vrot.lane.b32.xlu1 %v915_v1, %s874_s15 }
 0x143   : > { %219 = vrot.lane.b32.xlu2 %v915_v1, %s873_s14 }
 0x186   : > { %v175_v27 = vpop.xlane.xlu1 %174 }
 0x187   : > { %v185_v28 = vsub.f32 %v163_v11, %v175_v27 }
 0x189   : > { %v189_v29 = vmul.f32 1.442695, %v185_v28 }
 0x18b   : > { %799 = vpow2.f32 %v189_v29 }
 0x18e   : > { %v178_v30 = vpop.xlane.xlu1 %177 }
 0x18f   : > { %v186_v31 = vsub.f32 %v165_v15, %v178_v30 }
 0x191   : > { %v800_v32 = vpop.eup %799  ;;  %v191_v33 = vmul.f32 1.442695, %v186_v31 }
 0x192   : > { %v197_v34 = vsel %vm172_vm2, %v800_v32, 0.0 }
 0x193   : > { %801 = vpow2.f32 %v191_v33  ;;  %198 = vadd.xlane.f32.xlu2 %v197_v34 }
 0x196   : > { %v181_v35 = vpop.xlane.xlu2 %180 }
 0x197   : > { %v187_v36 = vsub.f32 %v168_v18, %v181_v35 }
 0x199   : > { %v802_v37 = vpop.eup %801  ;;  %v193_v38 = vmul.f32 1.442695, %v187_v36 }
 0x19a   : > { %v200_v39 = vsel %vm172_vm2, %v802_v37, 0.0 }
 0x19b   : > { %803 = vpow2.f32 %v193_v38  ;;  %201 = vadd.xlane.f32.xlu0 %v200_v39 }
 0x19e   : > { %v184_v40 = vpop.xlane.xlu2 %183 }
 0x19f   : > { %v188_v41 = vsub.f32 %v170_v24, %v184_v40 }
 0x1a1   : > { %v804_v43 = vpop.eup %803  ;;  %v195_v44 = vmul.f32 1.442695, %v188_v41 }
 0x1a2   : > { %v203_v45 = vsel %vm172_vm2, %v804_v43, 0.0 }
 0x1a3   : > { %805 = vpow2.f32 %v195_v44  ;;  %204 = vadd.xlane.f32.xlu1 %v203_v45 }
 0x1a6   : > { %v260_v46 = vpop.permute.xlu1 %259  ;;  %v220_v47 = vpop.permute.xlu2 %219 }
 0x1a7   : > { %758 = vmatmul.msk.bf16.vlgmr.msra.gmra.mxu2 %vm140_vm0, %v260_v46  ;;  %238 = vmatpush.bf16.msra.mxu1 %v220_v47 }
 0x1a9   : > { %v806_v50 = vpop.eup %805 }
 0x1aa   : > { %v206_v51 = vsel %vm172_vm2, %v806_v50, 0.0 }
 0x1ab   : > { %426 = vmatpush.bf16.xpose.msrb.mxu1 %v418_v49  ;;  %207 = vadd.xlane.f32.xlu2 %v206_v51 }
 0x1af   : > { %404 = vrot.lane.b32.xlu0 %v915_v1, %s875_s16 }
 0x1b7   : > { %759 = vmatmul.msk.bf16.gmra.mxu2 %vm140_vm0, %v262_v42  ;;  %400 = vrot.lane.b32.xlu0 %v915_v1, %s877_s17 }
 0x1bc   : > { %547 = vrot.lane.b32.xlu1 %v912_v0, %s878_s18 }
 0x1bf   : > { %541 = vrot.lane.b32.xlu0 %v915_v1, %s879_s19 }
 0x1c3   : > { %545 = vrot.lane.b32.xlu2 %v915_v1, %s878_s18 }
 0x1c4   : > { %402 = vrot.lane.b32.xlu1 %v912_v0, %s877_s17 }
 0x1c7   : > { %543 = vrot.lane.b32.xlu0 %v912_v0, %s879_s19 }
 0x206   : > { %v199_v52 = vpop.xlane.xlu2 %198 }
 0x207   : > { %807 = vrcp.f32 %v199_v52 }
 0x20d   : > { %v808_v54 = vpop.eup %807 }
 0x20e   : > { %v202_v53 = vpop.xlane.xlu0 %201  ;;  %v213_v56 = vmul.f32 %v808_v54, %v800_v32 }
 0x20f   : > { %809 = vrcp.f32 %v202_v53 }
 0x215   : > { %v810_v55 = vpop.eup %809 }
 0x216   : > { %v214_v57 = vmul.f32 %v810_v55, %v802_v37  ;;  %v205_v59 = vpop.xlane.xlu1 %204 }
 0x217   : > { %811 = vrcp.f32 %v205_v59 }
 0x218   : > { %v217_v58 = vpack.c.bf16 %v214_v57, %v213_v56 }
 0x21a   : > { %756 = vmatmul.msk.bf16.vlgmr.msra.gmra.mxu1 %vm172_vm2, %v217_v58 }
 0x21d   : > { %v812_v63 = vpop.eup %811 }
 0x21e   : > { %v208_v60 = vpop.xlane.xlu2 %207  ;;  %v215_v3 = vmul.f32 %v812_v63, %v804_v43 }
 0x21f   : > { %813 = vrcp.f32 %v208_v60 }
 0x221   : > { %v405_v61 = vpop.permute.xlu0 %404 }
 0x222   : > { %v415_v62 = vsel %vm140_vm0, %v405_v61, 0 }
 0x223   : > { %427 = vmatpush.bf16.xpose.msrb.mxu1 %v415_v62 }
 0x225   : > { %v814_v2 = vpop.eup %813 }
 0x226   : > { %v216_v4 = vmul.f32 %v814_v2, %v806_v50  ;;  %v546_v12 = vpop.permute.xlu2 %545 }
 0x227   : > { %v556_v17 = vsel %vm140_vm0, %v546_v12, 0 }
 0x228   : > { %v218_v5 = vpack.c.bf16 %v216_v4, %v215_v3 }
 0x229   : > { %v401_v14 = vpop.permute.xlu0 %400 }
 0x22a   : > { %757 = vmatmul.msk.bf16.gmra.mxu1 %vm172_vm2, %v218_v5  ;;  %v288_v6 = vpop.f32.mrf.mxu2 }
 0x22b   : > { %v289_v7 = vadd.f32 %v288_v6, %v932_v9 }
 0x22d   : > { %v298_v8 = vsel %vm172_vm2, %v289_v7, -inf }
 0x22e   : > { %v548_v10 = vpop.permute.xlu1 %547  ;;  %299 = vmax.xlane.f32.xlu2 %v298_v8 }
 0x22f   : > { %v559_v11 = vsel %vm140_vm0, %v548_v10, 0 }
 0x230   : > { %567 = vmatpush.bf16.xpose.msrb.mxu0 %v559_v11 }
 0x231   : > { %v542_v20 = vpop.permute.xlu0 %541 }
 0x232   : > { %v290_v13 = vpop.f32.mrf.mxu2 }
 0x233   : > { %v291_v15 = vadd.f32 %v290_v13, %v932_v9 }
 0x235   : > { %v301_v16 = vsel %vm172_vm2, %v291_v15, -inf }
 0x236   : > { %302 = vmax.xlane.f32.xlu1 %v301_v16  ;;  %v403_v26 = vpop.permute.xlu1 %402 }
 0x238   : > { %568 = vmatpush.bf16.xpose.msrb.mxu0 %v556_v17 }
 0x239   : > { %v544_v25 = vpop.permute.xlu0 %543 }
 0x23a   : > { %v293_v18 = vpop.f32.mrf.mxu2  ;;  %762 = vmatmul.msk.bf16.vlgmr.msrb.gmra.mxu1 %vm140_vm0, %v401_v14 }
 0x23b   : > { %v294_v19 = vadd.f32 %v293_v18, %v932_v9 }
 0x23d   : > { %v304_v21 = vsel %vm172_vm2, %v294_v19, -inf }
 0x23e   : > { %305 = vmax.xlane.f32.xlu0 %v304_v21 }
 0x23f   : > { %766 = vmatmul.msk.bf16.vlgmr.msrb.gmra.mxu0 %vm140_vm0, %v542_v20 }
 0x242   : > { %v295_v22 = vpop.f32.mrf.mxu2 }
 0x243   : > { %v977_v23 = vadd.f32 %v295_v22, %v932_v9 }
 0x245   : > { %v307_v24 = vsel %vm172_vm2, %v977_v23, -inf }
 0x246   : > { %308 = vmax.xlane.f32.xlu2 %v307_v24 }
 0x24a   : > { %763 = vmatmul.msk.bf16.gmra.mxu1 %vm140_vm0, %v403_v26 }
 0x24f   : > { %767 = vmatmul.msk.bf16.gmra.mxu0 %vm140_vm0, %v544_v25 }
 0x297   : > { %v240_v27 = vpop.f32.mrf.mxu1 }
 0x298   : > { %v250_v28 = vpack.c.bf16 %v240_v27, %v240_v27 }
 0x29a   : > { %255 = vst.msk [vmem:[%s988_s22] sm:$0xf] %vm254_vm3, %v250_v28 }
 0x29f   : > { %v242_v29 = vpop.f32.mrf.mxu1 }
 0x2a0   : > { %v251_v30 = vpack.c.bf16 %v242_v29, %v242_v29 }
 0x2a1   : > { %v300_v35 = vpop.xlane.xlu2 %299 }
 0x2a2   : > { %256 = vst.msk [vmem:[%s988_s22 + $0x4] sm:$0xf] %vm254_vm3, %v251_v30  ;;  %v310_v36 = vsub.f32 %v289_v7, %v300_v35 }
 0x2a4   : > { %v314_v37 = vmul.f32 1.442695, %v310_v36 }
 0x2a6   : > { %815 = vpow2.f32 %v314_v37 }
 0x2a7   : > { %v245_v31 = vpop.f32.mrf.mxu1 }
 0x2a8   : > { %v252_v32 = vpack.c.bf16 %v245_v31, %v245_v31 }
 0x2a9   : > { %v303_v41 = vpop.xlane.xlu1 %302 }
 0x2aa   : > { %257 = vst.msk [vmem:[%s988_s22 + $0x8] sm:$0xf] %vm254_vm3, %v252_v32  ;;  %v311_v45 = vsub.f32 %v291_v15, %v303_v41 }
 0x2ac   : > { %v996_v42 = vpop.eup %815  ;;  %v316_v48 = vmul.f32 1.442695, %v311_v45 }
 0x2ad   : > { %v322_v47 = vsel %vm172_vm2, %v996_v42, 0.0 }
 0x2ae   : > { %817 = vpow2.f32 %v316_v48 }
 0x2af   : > { %v247_v33 = vpop.f32.mrf.mxu1 }
 0x2b0   : > { %v253_v34 = vpack.c.bf16 %v247_v33, %v247_v33 }
 0x2b1   : > { %v306_v49 = vpop.xlane.xlu0 %305 }
 0x2b2   : > { %258 = vst.msk [vmem:[%s988_s22 + $0xc] sm:$0xf] %vm254_vm3, %v253_v34  ;;  %v312_v52 = vsub.f32 %v294_v19, %v306_v49 }
 0x2b4   : > { %v318_v54 = vmul.f32 1.442695, %v312_v52  ;;  %v1007_v55 = vpop.eup %817 }
 0x2b5   : > { %v325_v59 = vsel %vm172_vm2, %v1007_v55, 0.0 }
 0x2b6   : > { %819 = vpow2.f32 %v318_v54 }
 0x2b7   : > { %v429_v62 = vpop.f32.mrf.mxu1 }
 0x2b8   : > { %v430_v27 = vadd.f32 %v429_v62, %v932_v9 }
 0x2b9   : > { %v309_v2 = vpop.xlane.xlu2 %308 }
 0x2ba   : > { %v313_v3 = vsub.f32 %v977_v23, %v309_v2  ;;  %v439_v28 = vsel %vm172_vm2, %v430_v27, -inf }
 0x2bc   : > { %v570_v38 = vpop.f32.mrf.mxu0  ;;  %v1016_v60 = vpop.eup %819  ;;  %v320_v6 = vmul.f32 1.442695, %v313_v3 }
 0x2bd   : > { %v571_v39 = vadd.f32 %v570_v38, %v932_v9  ;;  %v328_v61 = vsel %vm172_vm2, %v1016_v60, 0.0 }
 0x2be   : > { %821 = vpow2.f32 %v320_v6 }
 0x2bf   : > { %v580_v40 = vsel %vm172_vm2, %v571_v39, -inf  ;;  %v431_v63 = vpop.f32.mrf.mxu1 }
 0x2c0   : > { %581 = vmax.xlane.f32.xlu2 %v580_v40  ;;  %v432_v4 = vadd.f32 %v431_v63, %v932_v9 }
 0x2c2   : > { %v442_v7 = vsel %vm172_vm2, %v432_v4, -inf }
 0x2c4   : > { %v572_v43 = vpop.f32.mrf.mxu0  ;;  %v1032_v11 = vpop.eup %821 }
 0x2c5   : > { %v573_v44 = vadd.f32 %v572_v43, %v932_v9  ;;  %v331_v12 = vsel %vm172_vm2, %v1032_v11, 0.0 }
 0x2c7   : > { %v583_v46 = vsel %vm172_vm2, %v573_v44, -inf  ;;  %v434_v5 = vpop.f32.mrf.mxu1 }
 0x2c8   : > { %584 = vmax.xlane.f32.xlu1 %v583_v46  ;;  %323 = vadd.xlane.f32.xlu2 %v322_v47  ;;  %v1028_v8 = vadd.f32 %v434_v5, %v932_v9 }
 0x2ca   : > { %v445_v10 = vsel %vm172_vm2, %v1028_v8, -inf }
 0x2cc   : > { %v575_v50 = vpop.f32.mrf.mxu0 }
 0x2cd   : > { %v1003_v51 = vadd.f32 %v575_v50, %v932_v9 }
 0x2cf   : > { %v586_v53 = vsel %vm172_vm2, %v1003_v51, -inf  ;;  %v436_v21 = vpop.f32.mrf.mxu1 }
 0x2d0   : > { %587 = vmax.xlane.f32.xlu1 %v586_v53  ;;  %v1041_v22 = vadd.f32 %v436_v21, %v932_v9 }
 0x2d2   : > { %v448_v24 = vsel %vm172_vm2, %v1041_v22, -inf }
 0x2d4   : > { %v577_v56 = vpop.f32.mrf.mxu0 }
 0x2d5   : > { %v1010_v57 = vadd.f32 %v577_v56, %v932_v9 }
 0x2d7   : > { %v589_v58 = vsel %vm172_vm2, %v1010_v57, -inf }
 0x2d8   : > { %590 = vmax.xlane.f32.xlu0 %v589_v58  ;;  %326 = vadd.xlane.f32.xlu1 %v325_v59 }
 0x2e0   : > { %329 = vadd.xlane.f32.xlu1 %v328_v61  ;;  %344 = vrot.lane.b32.xlu2 %v915_v1, %s880_s23 }
 0x2ec   : > { %346 = vrot.lane.b32.xlu0 %v912_v0, %s880_s23 }
 0x2f9   : > { %487 = vrot.lane.b32.xlu1 %v912_v0, %s881_s24 }
 0x316   : > { %443 = vmax.xlane.f32.xlu0 %v442_v7 }
 0x31e   : > { %446 = vmax.xlane.f32.xlu0 %v445_v10 }
 0x323   : > { %332 = vadd.xlane.f32.xlu1 %v331_v12 }
 0x333   : > { %v582_v13 = vpop.xlane.xlu2 %581 }
 0x334   : > { %v592_v14 = vsub.f32 %v571_v39, %v582_v13 }
 0x336   : > { %v596_v15 = vmul.f32 1.442695, %v592_v14 }
 0x338   : > { %823 = vpow2.f32 %v596_v15 }
 0x33b   : > { %v585_v16 = vpop.xlane.xlu1 %584  ;;  %v324_v30 = vpop.xlane.xlu2 %323 }
 0x33c   : > { %v593_v17 = vsub.f32 %v573_v44, %v585_v16 }
 0x33e   : > { %v1036_v18 = vpop.eup %823  ;;  %v598_v19 = vmul.f32 1.442695, %v593_v17 }
 0x33f   : > { %v604_v20 = vsel %vm172_vm2, %v1036_v18, 0.0 }
 0x340   : > { %825 = vpow2.f32 %v598_v19  ;;  %605 = vadd.xlane.f32.xlu2 %v604_v20 }
 0x343   : > { %v588_v26 = vpop.xlane.xlu1 %587  ;;  %v345_v35 = vpop.permute.xlu2 %344 }
 0x344   : > { %v594_v40 = vsub.f32 %v1003_v51, %v588_v26 }
 0x346   : > { %v826_v23 = vpop.eup %825  ;;  %v600_v41 = vmul.f32 1.442695, %v594_v40 }
 0x347   : > { %v607_v25 = vsel %vm172_vm2, %v826_v23, 0.0 }
 0x348   : > { %449 = vmax.xlane.f32.xlu2 %v448_v24  ;;  %608 = vadd.xlane.f32.xlu1 %v607_v25 }
 0x34b   : > { %v327_v29 = vpop.xlane.xlu1 %326  ;;  %v591_v31 = vpop.xlane.xlu0 %590 }
 0x34c   : > { %827 = vrcp.f32 %v327_v29  ;;  %v595_v7 = vsub.f32 %v1010_v57, %v591_v31 }
 0x34d   : > { %829 = vrcp.f32 %v324_v30 }
 0x34e   : > { %831 = vpow2.f32 %v600_v41 }
 0x350   : > { %440 = vmax.xlane.f32.xlu1 %v439_v28 }
 0x352   : > { %v828_v32 = vpop.eup %827 }
 0x353   : > { %v830_v34 = vpop.eup %829  ;;  %v339_v36 = vmul.f32 %v828_v32, %v1007_v55  ;;  %v330_v37 = vpop.xlane.xlu1 %329 }
 0x354   : > { %v338_v9 = vmul.f32 %v830_v34, %v996_v42  ;;  %v1054_v43 = vpop.eup %831 }
 0x355   : > { %v610_v44 = vsel %vm172_vm2, %v1054_v43, 0.0 }
 0x356   : > { %v342_v38 = vpack.c.bf16 %v339_v36, %v338_v9 }
 0x35e   : > { %v347_v33 = vpop.permute.xlu0 %346 }
 0x35f   : > { %362 = vmatpush.bf16.msra.mxu3 %v347_v33 }
 0x360   : > { %626 = vrot.lane.b32.xlu2 %v915_v1, %s882_s25 }
 0x363   : > { %363 = vmatpush.bf16.msra.mxu3 %v345_v35 }
 0x366   : > { %760 = vmatmul.msk.bf16.vlgmr.msra.gmra.mxu3 %vm172_vm2, %v342_v38 }
 0x36b   : > { %v488_v39 = vpop.permute.xlu1 %487 }
 0x36c   : > { %503 = vmatpush.bf16.msrb.mxu3 %v488_v39 }
 0x389   : > { %611 = vadd.xlane.f32.xlu2 %v610_v44  ;;  %v444_v45 = vpop.xlane.xlu0 %443 }
 0x38a   : > { %v452_v46 = vsub.f32 %v432_v4, %v444_v45 }
 0x38c   : > { %v457_v42 = vmul.f32 1.442695, %v452_v46 }
 0x38e   : > { %833 = vpow2.f32 %v457_v42 }
 0x38f   : > { %835 = vrcp.f32 %v330_v37 }
 0x391   : > { %v447_v63 = vpop.xlane.xlu0 %446 }
 0x394   : > { %v1058_v47 = vpop.eup %833 }
 0x395   : > { %v466_v48 = vsel %vm172_vm2, %v1058_v47, 0.0  ;;  %v836_v50 = vpop.eup %835 }
 0x396   : > { %v333_v49 = vpop.xlane.xlu1 %332  ;;  %467 = vadd.xlane.f32.xlu1 %v466_v48  ;;  %v340_v52 = vmul.f32 %v836_v50, %v1016_v60 }
 0x397   : > { %837 = vrcp.f32 %v333_v49 }
 0x39d   : > { %v838_v51 = vpop.eup %837 }
 0x39e   : > { %v341_v53 = vmul.f32 %v838_v51, %v1032_v11  ;;  %v602_v11 = vmul.f32 1.442695, %v595_v7 }
 0x3a0   : > { %v343_v54 = vpack.c.bf16 %v341_v53, %v340_v52 }
 0x3a2   : > { %761 = vmatmul.msk.bf16.gmra.mxu3 %vm172_vm2, %v343_v54 }
 0x3af   : > { %485 = vrot.lane.b32.xlu1 %v915_v1, %s881_s24  ;;  %v453_v1 = vsub.f32 %v1028_v8, %v447_v63 }
 0x3b1   : > { %v459_v5 = vmul.f32 1.442695, %v453_v1 }
 0x3b3   : > { %v606_v55 = vpop.xlane.xlu2 %605 }
 0x3b4   : > { %839 = vrcp.f32 %v606_v55 }
 0x3ba   : > { %v840_v58 = vpop.eup %839 }
 0x3bb   : > { %v609_v56 = vpop.xlane.xlu1 %608  ;;  %v1068_v61 = vmul.f32 %v840_v58, %v1036_v18  ;;  %v450_v16 = vpop.xlane.xlu2 %449 }
 0x3bc   : > { %841 = vrcp.f32 %v609_v56  ;;  %v454_v17 = vsub.f32 %v1041_v22, %v450_v16 }
 0x3be   : > { %v461_v18 = vmul.f32 1.442695, %v454_v17 }
 0x3c2   : > { %v842_v59 = vpop.eup %841 }
 0x3c3   : > { %v1070_v62 = vmul.f32 %v842_v59, %v826_v23  ;;  %v441_v60 = vpop.xlane.xlu1 %440  ;;  %v627_v35 = vpop.permute.xlu2 %626 }
 0x3c4   : > { %v451_v2 = vsub.f32 %v430_v27, %v441_v60 }
 0x3c5   : > { %v624_v3 = vpack.c.bf16 %v1070_v62, %v1068_v61 }
 0x3c6   : > { %v455_v4 = vmul.f32 1.442695, %v451_v2 }
 0x3c8   : > { %843 = vpow2.f32 %v455_v4 }
 0x3c9   : > { %845 = vpow2.f32 %v459_v5 }
 0x3ca   : > { %847 = vpow2.f32 %v602_v11 }
 0x3cb   : > { %849 = vpow2.f32 %v461_v18 }
 0x3ce   : > { %v844_v6 = vpop.eup %843 }
 0x3cf   : > { %v463_v10 = vsel %vm172_vm2, %v844_v6, 0.0  ;;  %v1077_v12 = vpop.eup %845 }
 0x3d0   : > { %464 = vadd.xlane.f32.xlu0 %v463_v10  ;;  %v469_v13 = vsel %vm172_vm2, %v1077_v12, 0.0  ;;  %v848_v14 = vpop.eup %847 }
 0x3d1   : > { %v613_v8 = vsel %vm172_vm2, %v848_v14, 0.0  ;;  %v850_v19 = vpop.eup %849 }
 0x3d2   : > { %v472_v20 = vsel %vm172_vm2, %v850_v19, 0.0 }
 0x3d9   : > { %470 = vadd.xlane.f32.xlu1 %v469_v13 }
 0x3e1   : > { %614 = vadd.xlane.f32.xlu1 %v613_v8 }
 0x3e4   : > { %628 = vrot.lane.b32.xlu0 %v912_v0, %s882_s25 }
 0x3e9   : > { %v365_v57 = vpop.f32.mrf.mxu3 }
 0x3ea   : > { %v375_v15 = vpack.c.bf16 %v365_v57, %v365_v57 }
 0x3f1   : > { %v367_v23 = vpop.f32.mrf.mxu3 }
 0x3f2   : > { %v376_v24 = vpack.c.bf16 %v367_v23, %v367_v23 }
 0x3fa   : > { %383 = vrot.lane.b32.xlu1 %v375_v15, %s883_s26 }
 0x3fc   : > { %v612_v37 = vpop.xlane.xlu2 %611 }
 0x409   : > { %v468_v21 = vpop.xlane.xlu1 %467 }
 0x40a   : > { %851 = vrcp.f32 %v468_v21 }
 0x40e   : > { %473 = vadd.xlane.f32.xlu0 %v472_v20 }
 0x410   : > { %v852_v29 = vpop.eup %851 }
 0x411   : > { %v480_v31 = vmul.f32 %v852_v29, %v1058_v47 }
 0x421   : > { %v486_v25 = vpop.permute.xlu1 %485 }
 0x422   : > { %385 = vrot.lane.b32.xlu0 %v376_v24, %s883_s26  ;;  %504 = vmatpush.bf16.msrb.mxu3 %v486_v25 }
 0x425   : > { %v370_v26 = vpop.f32.mrf.mxu3 }
 0x426   : > { %v377_v0 = vpack.c.bf16 %v370_v26, %v370_v26 }
 0x428   : > { %387 = vrot.lane.b32.xlu2 %v377_v0, %s883_s26 }
 0x42d   : > { %v372_v27 = vpop.f32.mrf.mxu3 }
 0x42e   : > { %v378_v28 = vpack.c.bf16 %v372_v27, %v372_v27 }
 0x430   : > { %389 = vrot.lane.b32.xlu0 %v378_v28, %s883_s26 }
 0x443   : > { %v465_v22 = vpop.xlane.xlu0 %464 }
 0x444   : > { %853 = vrcp.f32 %v465_v22 }
 0x44a   : > { %v854_v30 = vpop.eup %853 }
 0x44b   : > { %v479_v32 = vmul.f32 %v854_v30, %v844_v6 }
 0x44c   : > { %v471_v34 = vpop.xlane.xlu1 %470 }
 0x44d   : > { %v483_v33 = vpack.c.bf16 %v480_v31, %v479_v32 }
 0x44f   : > { %764 = vmatmul.msk.bf16.vlgmr.msrb.gmra.mxu3 %vm172_vm2, %v483_v33 }
 0x454   : > { %v615_v9 = vpop.xlane.xlu1 %614 }
 0x455   : > { %855 = vrcp.f32 %v615_v9 }
 0x456   : > { %v629_v36 = vpop.permute.xlu0 %628  ;;  %857 = vrcp.f32 %v612_v37 }
 0x457   : > { %644 = vmatpush.bf16.msrb.mxu2 %v629_v36  ;;  %859 = vrcp.f32 %v471_v34 }
 0x45b   : > { %645 = vmatpush.bf16.msrb.mxu2 %v627_v35  ;;  %v856_v38 = vpop.eup %855 }
 0x45c   : > { %v858_v39 = vpop.eup %857  ;;  %v623_v40 = vmul.f32 %v856_v38, %v848_v14 }
 0x45d   : > { %v622_v41 = vmul.f32 %v858_v39, %v1054_v43  ;;  %v860_v47 = vpop.eup %859 }
 0x45e   : > { %768 = vmatmul.msk.bf16.vlgmr.msrb.gmra.mxu2 %vm172_vm2, %v624_v3  ;;  %v481_v49 = vmul.f32 %v860_v47, %v1077_v12 }
 0x45f   : > { %v625_v45 = vpack.c.bf16 %v623_v40, %v622_v41 }
 0x46c   : > { %v384_v44 = vpop.permute.xlu1 %383 }
 0x46d   : > { %396 = vst.msk [vmem:[%s988_s22] sm:$0xf] %vm395_vm4, %v384_v44 }
 0x46e   : > { %769 = vmatmul.msk.bf16.gmra.mxu2 %vm172_vm2, %v625_v45 }
 0x481   : > { %v474_v46 = vpop.xlane.xlu0 %473 }
 0x482   : > { %861 = vrcp.f32 %v474_v46  ;;  %v388_v42 = vpop.permute.xlu2 %387 }
 0x483   : > { %398 = vst.msk [vmem:[%s988_s22 + $0x8] sm:$0xf] %vm395_vm4, %v388_v42 }
 0x488   : > { %v862_v48 = vpop.eup %861 }
 0x489   : > { %v482_v50 = vmul.f32 %v862_v48, %v850_v19 }
 0x48b   : > { %v484_v43 = vpack.c.bf16 %v482_v50, %v481_v49 }
 0x48d   : > { %765 = vmatmul.msk.bf16.gmra.mxu3 %vm172_vm2, %v484_v43 }
 0x494   : > { %v386_v51 = vpop.permute.xlu0 %385 }
 0x495   : > { %397 = vst.msk [vmem:[%s988_s22 + $0x4] sm:$0xf] %vm395_vm4, %v386_v51 }
 0x4a2   : > { %v390_v52 = vpop.permute.xlu0 %389 }
 0x4a3   : > { %399 = vst.msk [vmem:[%s988_s22 + $0xc] sm:$0xf] %vm395_vm4, %v390_v52 }
 0x4d2   : > { %v506_v53 = vpop.f32.mrf.mxu3 }
 0x4d3   : > { %v516_v54 = vpack.c.bf16 %v506_v53, %v506_v53 }
 0x4d5   : > { %524 = vrot.lane.b32.xlu1 %v516_v54, %s884_s27 }
 0x4da   : > { %v508_v58 = vpop.f32.mrf.mxu3 }
 0x4db   : > { %v517_v61 = vpack.c.bf16 %v508_v58, %v508_v58 }
 0x4e1   : > { %v647_v55 = vpop.f32.mrf.mxu2 }
 0x4e2   : > { %v657_v56 = vpack.c.bf16 %v647_v55, %v647_v55 }
 0x4e4   : > { %665 = vrot.lane.b32.xlu0 %v657_v56, %s885_s28 }
 0x4e9   : > { %v649_v59 = vpop.f32.mrf.mxu2 }
 0x4ea   : > { %v658_v1 = vpack.c.bf16 %v649_v59, %v649_v59 }
 0x4ec   : > { %526 = vrot.lane.b32.xlu0 %v517_v61, %s884_s27 }
 0x4f1   : > { %v652_v62 = vpop.f32.mrf.mxu2 }
 0x4f2   : > { %v659_v6 = vpack.c.bf16 %v652_v62, %v652_v62 }
 0x4f9   : > { %v654_v60 = vpop.f32.mrf.mxu2 }
 0x4fa   : > { %v660_v63 = vpack.c.bf16 %v654_v60, %v654_v60 }
 0x4fc   : > { %671 = vrot.lane.b32.xlu0 %v660_v63, %s885_s28 }
 0x510   : > { %v511_v2 = vpop.f32.mrf.mxu3 }
 0x511   : > { %v518_v3 = vpack.c.bf16 %v511_v2, %v511_v2 }
 0x513   : > { %528 = vrot.lane.b32.xlu1 %v518_v3, %s884_s27 }
 0x518   : > { %v513_v4 = vpop.f32.mrf.mxu3 }
 0x519   : > { %v519_v5 = vpack.c.bf16 %v513_v4, %v513_v4 }
 0x51b   : > { %667 = vrot.lane.b32.xlu1 %v658_v1, %s885_s28  ;;  %530 = vrot.lane.b32.xlu2 %v519_v5, %s884_s27 }
 0x523   : > { %669 = vrot.lane.b32.xlu2 %v659_v6, %s885_s28 }
 0x547   : > { %v525_v7 = vpop.permute.xlu1 %524 }
 0x548   : > { %537 = vst.msk [vmem:[%s988_s22] sm:$0xf] %vm536_vm5, %v525_v7 }
 0x556   : > { %v666_v10 = vpop.permute.xlu0 %665 }
 0x557   : > { %678 = vst.msk [vmem:[%s988_s22] sm:$0xf] %vm677_vm6, %v666_v10 }
 0x55e   : > { %v527_v11 = vpop.permute.xlu0 %526 }
 0x55f   : > { %538 = vst.msk [vmem:[%s988_s22 + $0x4] sm:$0xf] %vm536_vm5, %v527_v11 }
 0x56e   : > { %v672_v13 = vpop.permute.xlu0 %671 }
 0x575   : > { %v531_v12 = vpop.permute.xlu2 %530 }
 0x576   : > { %540 = vst.msk [vmem:[%s988_s22 + $0xc] sm:$0xf] %vm536_vm5, %v531_v12 }
 0x577   : > { %681 = vst.msk [vmem:[%s988_s22 + $0xc] sm:$0xf] %vm677_vm6, %v672_v13 }
 0x57d   : > { %v670_v8 = vpop.permute.xlu2 %669 }
 0x585   : > { %v529_v14 = vpop.permute.xlu1 %528 }
 0x586   : > { %539 = vst.msk [vmem:[%s988_s22 + $0x8] sm:$0xf] %vm536_vm5, %v529_v14 }
 0x587   : > { %680 = vst.msk [vmem:[%s988_s22 + $0x8] sm:$0xf] %vm677_vm6, %v670_v8 }
 0x58d   : > { %v668_v57 = vpop.permute.xlu1 %667 }
 0x58e   : > { %679 = vst.msk [vmem:[%s988_s22 + $0x4] sm:$0xf] %vm677_vm6, %v668_v57 }
 0x58f PF: > { %s11_s6 = sadd.s32 1, %s869_s6  }
 0x590   : > { %p8_p4 = scmp.ge.s32.totalorder %s11_s6, 4  }
 0x592   :  { %10 = sbr.rel (!%p8_p4) target bundleno = 1 (0x1), region = 54 }

// kernel: vision_transformer_forward.17
= control target key start
LH: loop header
LB: loop body
LE: loop exit
PB: predicated region body
PF: predicated region fallthrough
CT: control target
= control target key end

     0   :  { %vm66_vm0 = vcmask 261120   ;;  %vm140_vm1 = vcmask 257024   ;;  %s303_s1 = inlined_call_operand.vmem [shape: bf16[32,32], index: 1, kind: input, shape index: {}]   ;;  %s304_s2 = inlined_call_operand.vmem [shape: f32[1,32], index: 2, kind: input, shape index: {}]   ;;  %s305_s0 = inlined_call_operand.vmem [shape: bf16[64,32], index: 0, kind: input, shape index: {}]   ;;  %s306_s3 = inlined_call_operand.vmem [shape: bf16[64,32], index: 3, kind: input, shape index: {}]   ;;  %s307_s4 = inlined_call_operand.vmem [shape: bf16[64,32], index: 4, kind: output, shape index: {}]  }
   0x1   :  { %v186_v0 = vld [vmem:[%s303_s1 + $0x8] sm:$0xff]  ;;  %v185_v1 = vld [vmem:[%s303_s1] sm:$0xff]  ;;  %v183_v4 = vld [vmem:[%s305_s0 + $0x10] sm:$0xff] }
   0x2   :  { %85 = vmatpush.bf16.msra.mxu0 %v186_v0  ;;  %206 = vmatpush.bf16.msra.mxu1 %v186_v0  ;;  %v181_v2 = vld [vmem:[%s305_s0] sm:$0xff]  ;;  %v182_v3 = vld [vmem:[%s305_s0 + $0x8] sm:$0xff]  ;;  %v184_v5 = vld [vmem:[%s305_s0 + $0x18] sm:$0xff] }
   0x3   :  { %207 = vmatpush.bf16.msra.mxu2 %v186_v0  ;;  %208 = vmatpush.bf16.msra.mxu3 %v186_v0  ;;  %v188_v6 = vld [vmem:[%s306_s3] sm:$0xff]   ;;  %v203_v7 = vld [vmem:[%s306_s3 + $0x8] sm:$0xff]   ;;  %v204_v17 = vld [vmem:[%s306_s3 + $0x10] sm:$0xff]  }
   0x4   :  { %v212_v8 = vld [vmem:[%s304_s2] ss:$0 sm:$0xff]  ;;  %v189_v9 = vunpack.c.l.bf16 %v188_v6  ;;  %v193_v10 = vunpack.c.l.bf16 %v203_v7  ;;  %v205_v18 = vld [vmem:[%s306_s3 + $0x18] sm:$0xff]   ;;  %v197_v21 = vunpack.c.l.bf16 %v204_v17  ;;  %v190_v25 = vunpack.c.h.bf16 %v188_v6 }
   0x5   :  { %v201_v22 = vunpack.c.l.bf16 %v205_v18  ;;  %v194_v26 = vunpack.c.h.bf16 %v203_v7  ;;  %v198_v41 = vunpack.c.h.bf16 %v204_v17  ;;  %v202_v42 = vunpack.c.h.bf16 %v205_v18 }
   0x6   :  { %86 = vmatpush.bf16.msra.mxu0 %v185_v1  ;;  %209 = vmatpush.bf16.msra.mxu1 %v185_v1 }
   0x7   :  { %210 = vmatpush.bf16.msra.mxu2 %v185_v1  ;;  %211 = vmatpush.bf16.msra.mxu3 %v185_v1 }
   0x9   :  { %177 = vmatmul.msk.bf16.vlgmr.msra.gmra.mxu0 %vm66_vm0, %v181_v2  ;;  %178 = vmatmul.msk.bf16.vlgmr.msra.gmra.mxu1 %vm66_vm0, %v182_v3 }
   0xa   :  { %179 = vmatmul.msk.bf16.vlgmr.msra.gmra.mxu2 %vm66_vm0, %v183_v4  ;;  %180 = vmatmul.msk.bf16.vlgmr.msra.gmra.mxu3 %vm66_vm0, %v184_v5 }
  0x86   :  { %v88_v11 = vpop.f32.mrf.mxu0  ;;  %v93_v12 = vpop.f32.mrf.mxu1 }
  0x87   :  { %v89_v13 = vadd.f32 %v212_v8, %v88_v11  ;;  %v94_v14 = vadd.f32 %v212_v8, %v93_v12 }
  0x89   :  { %v124_v15 = vadd.f32 %v189_v9, %v89_v13  ;;  %v126_v16 = vadd.f32 %v193_v10, %v94_v14 }
  0x8b   :  { %v132_v19 = vpack.c.bf16 %v124_v15, %v124_v15  ;;  %v134_v20 = vpack.c.bf16 %v126_v16, %v126_v16 }
  0x8d   :  { %141 = vst.msk [vmem:[%s307_s4] sm:$0xf] %vm140_vm1, %v132_v19  ;;  %v98_v23 = vpop.f32.mrf.mxu2  ;;  %v103_v24 = vpop.f32.mrf.mxu3 }
  0x8e   :  { %143 = vst.msk [vmem:[%s307_s4 + $0x8] sm:$0xf] %vm140_vm1, %v134_v20  ;;  %v99_v27 = vadd.f32 %v212_v8, %v98_v23  ;;  %v104_v28 = vadd.f32 %v212_v8, %v103_v24  ;;  %v90_v29 = vpop.f32.mrf.mxu0  ;;  %v95_v30 = vpop.f32.mrf.mxu1 }
  0x8f   :  { %v91_v31 = vadd.f32 %v212_v8, %v90_v29  ;;  %v96_v32 = vadd.f32 %v212_v8, %v95_v30 }
  0x90   :  { %v128_v33 = vadd.f32 %v197_v21, %v99_v27  ;;  %v130_v34 = vadd.f32 %v201_v22, %v104_v28 }
  0x91   :  { %v125_v35 = vadd.f32 %v190_v25, %v91_v31  ;;  %v127_v36 = vadd.f32 %v194_v26, %v96_v32 }
  0x92   :  { %v136_v37 = vpack.c.bf16 %v128_v33, %v128_v33  ;;  %v138_v38 = vpack.c.bf16 %v130_v34, %v130_v34 }
  0x93   :  { %v133_v39 = vpack.c.bf16 %v125_v35, %v125_v35  ;;  %v135_v40 = vpack.c.bf16 %v127_v36, %v127_v36 }
  0x94   :  { %145 = vst.msk [vmem:[%s307_s4 + $0x10] sm:$0xf] %vm140_vm1, %v136_v37 }
  0x95   :  { %147 = vst.msk [vmem:[%s307_s4 + $0x18] sm:$0xf] %vm140_vm1, %v138_v38  ;;  %v100_v43 = vpop.f32.mrf.mxu2  ;;  %v105_v44 = vpop.f32.mrf.mxu3 }
  0x96   :  { %142 = vst.msk [vmem:[%s307_s4 + $0x4] sm:$0xf] %vm140_vm1, %v133_v39  ;;  %v101_v45 = vadd.f32 %v212_v8, %v100_v43  ;;  %v106_v46 = vadd.f32 %v212_v8, %v105_v44 }
  0x97   :  { %144 = vst.msk [vmem:[%s307_s4 + $0xc] sm:$0xf] %vm140_vm1, %v135_v40 }
  0x98   :  { %v129_v47 = vadd.f32 %v198_v41, %v101_v45  ;;  %v131_v48 = vadd.f32 %v202_v42, %v106_v46 }
  0x9a   :  { %v137_v49 = vpack.c.bf16 %v129_v47, %v129_v47  ;;  %v139_v50 = vpack.c.bf16 %v131_v48, %v131_v48 }
  0x9c   :  { %146 = vst.msk [vmem:[%s307_s4 + $0x14] sm:$0xf] %vm140_vm1, %v137_v49 }
  0x9d   :  { %148 = vst.msk [vmem:[%s307_s4 + $0x1c] sm:$0xf] %vm140_vm1, %v139_v50 }

// kernel: vision_transformer_forward.25
= control target key start
LH: loop header
LB: loop body
LE: loop exit
PB: predicated region body
PF: predicated region fallthrough
CT: control target
= control target key end

     0   :  { %vm34_vm0 = vcmask 261120   ;;  %v376_v20 = vmov 32.0   ;;  %s596_s0 = inlined_call_operand.vmem [shape: bf16[64,32], index: 0, kind: input, shape index: {}]   ;;  %s597_s1 = inlined_call_operand.vmem [shape: f32[1,32], index: 1, kind: input, shape index: {}]   ;;  %s598_s2 = inlined_call_operand.vmem [shape: f32[1,32], index: 2, kind: input, shape index: {}]   ;;  %s599_s3 = inlined_call_operand.vmem [shape: bf16[32,16], index: 3, kind: input, shape index: {}]   ;;  %s600_s4 = inlined_call_operand.vmem [shape: f32[64,16], index: 4, kind: output, shape index: {}]  }
   0x1   :  { %v348_v0 = vld [vmem:[%s596_s0 + $0x18] sm:$0xff]   ;;  %v347_v1 = vld [vmem:[%s596_s0 + $0x10] sm:$0xff]   ;;  %v331_v2 = vld [vmem:[%s596_s0] sm:$0xff]   ;;  %358 = vrcp.f32 %v376_v20 }
   0x2   :  { %v344_v3 = vunpack.c.l.bf16 %v348_v0  ;;  %v340_v4 = vunpack.c.l.bf16 %v347_v1  ;;  %v332_v5 = vunpack.c.l.bf16 %v331_v2  ;;  %v345_v9 = vunpack.c.h.bf16 %v348_v0  ;;  %v346_v15 = vld [vmem:[%s596_s0 + $0x8] sm:$0xff]  }
   0x3   :  { %v341_v10 = vunpack.c.h.bf16 %v347_v1  ;;  %v333_v11 = vunpack.c.h.bf16 %v331_v2  ;;  %v336_v16 = vunpack.c.l.bf16 %v346_v15  ;;  %v337_v17 = vunpack.c.h.bf16 %v346_v15 }
   0x4   :  { %v53_v6 = vsel %vm34_vm0, %v344_v3, 0.0  ;;  %v47_v7 = vsel %vm34_vm0, %v340_v4, 0.0  ;;  %v35_v8 = vsel %vm34_vm0, %v332_v5, 0.0  ;;  %v56_v12 = vsel %vm34_vm0, %v345_v9, 0.0 }
   0x5   :  { %54 = vadd.xlane.f32.xlu1 %v53_v6  ;;  %48 = vadd.xlane.f32.xlu0 %v47_v7  ;;  %v50_v13 = vsel %vm34_vm0, %v341_v10, 0.0  ;;  %v38_v14 = vsel %vm34_vm0, %v333_v11, 0.0  ;;  %v41_v18 = vsel %vm34_vm0, %v336_v16, 0.0  ;;  %v44_v19 = vsel %vm34_vm0, %v337_v17, 0.0  ;;  %v329_v7 = vld [vmem:[%s599_s3 + $0x8] sm:$0xff] }
   0x6   :  { %36 = vadd.xlane.f32.xlu2 %v35_v8  ;;  %350 = vmatpush.bf16.msra.mxu2 %v329_v7 }
   0x7   :  { %v359_v21 = vpop.eup %358  ;;  %351 = vmatpush.bf16.msra.mxu3 %v329_v7  ;;  %280 = vmatpush.bf16.msra.mxu0 %v329_v7 }
   0x8   :  { %v60_v22 = vmul.f32 32.0, %v359_v21  ;;  %vm64_vm1 = vweird.f32 %v359_v21  ;;  %349 = vmatpush.bf16.msra.mxu1 %v329_v7 }
   0xa   :  { %v61_v23 = vsub.f32 1.0, %v60_v22 }
   0xc   :  { %v62_v24 = vmul.f32 %v359_v21, %v61_v23 }
   0xd   :  { %57 = vadd.xlane.f32.xlu1 %v56_v12  ;;  %51 = vadd.xlane.f32.xlu0 %v50_v13 }
   0xe   :  { %39 = vadd.xlane.f32.xlu2 %v38_v14  ;;  %v63_v25 = vadd.f32 %v359_v21, %v62_v24 }
  0x10   :  { %v422_v26 = vsel %vm64_vm1, %v359_v21, %v63_v25 }
  0x15   :  { %42 = vadd.xlane.f32.xlu0 %v41_v18  ;;  %45 = vadd.xlane.f32.xlu1 %v44_v19 }
  0x78   :  { %v55_v27 = vpop.xlane.xlu1 %54  ;;  %v49_v28 = vpop.xlane.xlu0 %48 }
  0x79   :  { %v72_v29 = vmul.f32 %v422_v26, %v55_v27  ;;  %v70_v30 = vmul.f32 %v422_v26, %v49_v28  ;;  %v37_v31 = vpop.xlane.xlu2 %36 }
  0x7a   :  { %v66_v40 = vmul.f32 %v422_v26, %v37_v31 }
  0x7b   :  { %v426_v32 = vsub.f32 %v344_v3, %v72_v29  ;;  %v428_v33 = vsub.f32 %v340_v4, %v70_v30 }
  0x7c   :  { %v446_v48 = vsub.f32 %v332_v5, %v66_v40 }
  0x7d   :  { %v88_v34 = vmul.f32 %v426_v32, %v426_v32  ;;  %v86_v35 = vmul.f32 %v428_v33, %v428_v33 }
  0x7e   :  { %v82_v59 = vmul.f32 %v446_v48, %v446_v48 }
  0x7f   :  { %v108_v36 = vsel %vm34_vm0, %v88_v34, 0.0  ;;  %v102_v37 = vsel %vm34_vm0, %v86_v35, 0.0 }
  0x80   :  { %v58_v38 = vpop.xlane.xlu1 %57  ;;  %v52_v39 = vpop.xlane.xlu0 %51  ;;  %109 = vadd.xlane.f32.xlu1 %v108_v36  ;;  %103 = vadd.xlane.f32.xlu2 %v102_v37  ;;  %v90_v63 = vsel %vm34_vm0, %v82_v59, 0.0 }
  0x81   :  { %v73_v41 = vmul.f32 %v422_v26, %v58_v38  ;;  %v71_v42 = vmul.f32 %v422_v26, %v52_v39  ;;  %v40_v43 = vpop.xlane.xlu2 %39 }
  0x82   :  { %v67_v44 = vmul.f32 %v422_v26, %v40_v43 }
  0x83   :  { %v440_v45 = vsub.f32 %v345_v9, %v73_v41  ;;  %v442_v46 = vsub.f32 %v341_v10, %v71_v42  ;;  %v328_v10 = vld [vmem:[%s599_s3] sm:$0xff] }
  0x84   :  { %v444_v47 = vsub.f32 %v333_v11, %v67_v44  ;;  %353 = vmatpush.bf16.msra.mxu2 %v328_v10  ;;  %354 = vmatpush.bf16.msra.mxu3 %v328_v10 }
  0x85   :  { %v87_v49 = vmul.f32 %v442_v46, %v442_v46  ;;  %v89_v50 = vmul.f32 %v440_v45, %v440_v45  ;;  %281 = vmatpush.bf16.msra.mxu0 %v328_v10  ;;  %352 = vmatpush.bf16.msra.mxu1 %v328_v10 }
  0x86   :  { %v83_v51 = vmul.f32 %v444_v47, %v444_v47 }
  0x87   :  { %v105_v52 = vsel %vm34_vm0, %v87_v49, 0.0  ;;  %v111_v53 = vsel %vm34_vm0, %v89_v50, 0.0 }
  0x88   :  { %106 = vadd.xlane.f32.xlu0 %v105_v52  ;;  %v43_v54 = vpop.xlane.xlu0 %42  ;;  %112 = vadd.xlane.f32.xlu2 %v111_v53  ;;  %v93_v55 = vsel %vm34_vm0, %v83_v51, 0.0  ;;  %v46_v56 = vpop.xlane.xlu1 %45 }
  0x89   :  { %v68_v57 = vmul.f32 %v422_v26, %v43_v54  ;;  %94 = vadd.xlane.f32.xlu1 %v93_v55  ;;  %v69_v58 = vmul.f32 %v422_v26, %v46_v56 }
  0x8b   :  { %v461_v60 = vsub.f32 %v336_v16, %v68_v57  ;;  %v463_v61 = vsub.f32 %v337_v17, %v69_v58 }
  0x8d   :  { %v84_v62 = vmul.f32 %v461_v60, %v461_v60  ;;  %v85_v1 = vmul.f32 %v463_v61, %v463_v61 }
  0x8f   :  { %v96_v0 = vsel %vm34_vm0, %v84_v62, 0.0  ;;  %v99_v2 = vsel %vm34_vm0, %v85_v1, 0.0 }
  0x90   :  { %97 = vadd.xlane.f32.xlu2 %v96_v0  ;;  %91 = vadd.xlane.f32.xlu0 %v90_v63 }
  0x98   :  { %100 = vadd.xlane.f32.xlu0 %v99_v2 }
  0xf3   :  { %v110_v3 = vpop.xlane.xlu1 %109  ;;  %v104_v4 = vpop.xlane.xlu2 %103 }
  0xf4   :  { %v120_v5 = vmul.f32 %v110_v3, %v422_v26  ;;  %v118_v6 = vmul.f32 %v104_v4, %v422_v26  ;;  %v519_v3 = vld [vmem:[%s597_s1] ss:$0 sm:$0xff] }
  0xf6   :  { %v128_v8 = vadd.f32 1e-05, %v120_v5  ;;  %v126_v9 = vadd.f32 1e-05, %v118_v6 }
  0xf8   :  { %360 = vrsqrt.f32 %v128_v8  ;;  %vm196_vm2 = vweird.f32 %v128_v8  ;;  %vm176_vm5 = vweird.f32 %v126_v9 }
  0xf9   :  { %362 = vrsqrt.f32 %v126_v9 }
  0xfb   :  { %v107_v11 = vpop.xlane.xlu0 %106  ;;  %v113_v12 = vpop.xlane.xlu2 %112 }
  0xfc   :  { %v119_v13 = vmul.f32 %v107_v11, %v422_v26  ;;  %v95_v14 = vpop.xlane.xlu1 %94  ;;  %v121_v15 = vmul.f32 %v113_v12, %v422_v26 }
  0xfd   :  { %v115_v16 = vmul.f32 %v95_v14, %v422_v26 }
  0xfe   :  { %v361_v17 = vpop.eup %360  ;;  %v127_v18 = vadd.f32 1e-05, %v119_v13  ;;  %v483_v19 = vadd.f32 1e-05, %v121_v15  ;;  %v357_v15 = vld [vmem:[%s598_s2] ss:$0 sm:$0xff] }
  0xff   :  { %v363_v20 = vpop.eup %362  ;;  %v191_v21 = vmul.f32 %v361_v17, %v128_v8  ;;  %v123_v22 = vadd.f32 1e-05, %v115_v16  ;;  %vm197_vm4 = vweird.f32 %v361_v17 }
 0x100   :  { %v171_v23 = vmul.f32 %v363_v20, %v126_v9  ;;  %364 = vrsqrt.f32 %v127_v18  ;;  %vm177_vm3 = vweird.f32 %v363_v20  ;;  %vm186_vm7 = vweird.f32 %v127_v18  ;;  %vm506_vm8 = vmor %vm196_vm2, %vm197_vm4 }
 0x101   :  { %v192_v24 = vmul.f32 %v361_v17, %v191_v21  ;;  %366 = vrsqrt.f32 %v123_v22  ;;  %vm496_vm6 = vmor %vm176_vm5, %vm177_vm3  ;;  %vm146_vm9 = vweird.f32 %v123_v22  ;;  %vm206_vm12 = vweird.f32 %v483_v19 }
 0x102   :  { %v172_v25 = vmul.f32 %v363_v20, %v171_v23  ;;  %368 = vrsqrt.f32 %v483_v19 }
 0x103   :  { %v193_v27 = vmul.f32 0.5, %v192_v24  ;;  %v92_v28 = vpop.xlane.xlu0 %91  ;;  %v98_v29 = vpop.xlane.xlu2 %97 }
 0x104   :  { %v173_v30 = vmul.f32 0.5, %v172_v25  ;;  %v114_v31 = vmul.f32 %v92_v28, %v422_v26  ;;  %v116_v34 = vmul.f32 %v98_v29, %v422_v26 }
 0x105   :  { %v194_v35 = vsub.f32 1.5, %v193_v27 }
 0x106   :  { %v365_v36 = vpop.eup %364  ;;  %v174_v37 = vsub.f32 1.5, %v173_v30  ;;  %v488_v38 = vadd.f32 1e-05, %v114_v31  ;;  %v492_v41 = vadd.f32 1e-05, %v116_v34 }
 0x107   :  { %v490_v39 = vpop.eup %366  ;;  %v181_v40 = vmul.f32 %v365_v36, %v127_v18  ;;  %v195_v43 = vmul.f32 %v361_v17, %v194_v35  ;;  %vm187_vm10 = vweird.f32 %v365_v36 }
 0x108   :  { %v369_v42 = vpop.eup %368  ;;  %v175_v44 = vmul.f32 %v363_v20, %v174_v37  ;;  %v141_v49 = vmul.f32 %v490_v39, %v123_v22  ;;  %370 = vrsqrt.f32 %v488_v38  ;;  %vm147_vm11 = vweird.f32 %v490_v39  ;;  %vm188_vm14 = vmor %vm186_vm7, %vm187_vm10 }
 0x109   :  { %v182_v51 = vmul.f32 %v365_v36, %v181_v40  ;;  %v201_v52 = vmul.f32 %v369_v42, %v483_v19  ;;  %372 = vrsqrt.f32 %v492_v41  ;;  %v199_v59 = vsel %vm506_vm8, %v361_v17, %v195_v43  ;;  %vm528_vm15 = vmor %vm146_vm9, %vm147_vm11 }
 0x10a   :  { %v179_v53 = vsel %vm496_vm6, %v363_v20, %v175_v44  ;;  %v142_v54 = vmul.f32 %v490_v39, %v141_v49  ;;  %vm207_vm13 = vweird.f32 %v369_v42  ;;  %v216_v7 = vmul.f32 %v199_v59, %v426_v32 }
 0x10b   :  { %v183_v56 = vmul.f32 0.5, %v182_v51  ;;  %v202_v57 = vmul.f32 %v369_v42, %v201_v52  ;;  %v101_v58 = vpop.xlane.xlu0 %100  ;;  %v214_v0 = vmul.f32 %v179_v53, %v428_v33  ;;  %vm208_vm1 = vmor %vm206_vm12, %vm207_vm13  ;;  %vm136_vm2 = vweird.f32 %v488_v38 }
 0x10c   :  { %v143_v62 = vmul.f32 0.5, %v142_v54  ;;  %v117_v63 = vmul.f32 %v101_v58, %v422_v26  ;;  %v228_v22 = vmul.f32 %v519_v3, %v216_v7  ;;  %vm156_vm4 = vweird.f32 %v492_v41 }
 0x10d   :  { %v184_v1 = vsub.f32 1.5, %v183_v56  ;;  %v203_v2 = vmul.f32 0.5, %v202_v57  ;;  %v226_v32 = vmul.f32 %v519_v3, %v214_v0  ;;  %vm303_vm11 = vcmask 130048  }
 0x10e   :  { %v371_v4 = vpop.eup %370  ;;  %v144_v5 = vsub.f32 1.5, %v143_v62  ;;  %v125_v6 = vadd.f32 1e-05, %v117_v63 }
 0x10f   :  { %v185_v26 = vmul.f32 %v365_v36, %v184_v1  ;;  %v204_v33 = vsub.f32 1.5, %v203_v2  ;;  %v131_v8 = vmul.f32 %v371_v4, %v488_v38  ;;  %v373_v11 = vpop.eup %372  ;;  %vm137_vm3 = vweird.f32 %v371_v4 }
 0x110   :  { %v145_v9 = vmul.f32 %v490_v39, %v144_v5  ;;  %374 = vrsqrt.f32 %v125_v6  ;;  %v151_v17 = vmul.f32 %v373_v11, %v492_v41  ;;  %v238_v19 = vadd.f32 %v357_v15, %v226_v32  ;;  %vm138_vm5 = vmor %vm136_vm2, %vm137_vm3 }
 0x111   :  { %v189_v12 = vsel %vm188_vm14, %v365_v36, %v185_v26  ;;  %v205_v13 = vmul.f32 %v369_v42, %v204_v33  ;;  %v132_v14 = vmul.f32 %v371_v4, %v131_v8  ;;  %vm157_vm6 = vweird.f32 %v373_v11 }
 0x112   :  { %v215_v16 = vmul.f32 %v189_v12, %v442_v46  ;;  %v149_v18 = vsel %vm528_vm15, %v490_v39, %v145_v9  ;;  %v152_v24 = vmul.f32 %v373_v11, %v151_v17  ;;  %vm158_vm7 = vmor %vm156_vm4, %vm157_vm6  ;;  %vm166_vm9 = vweird.f32 %v125_v6 }
 0x113   :  { %v209_v20 = vsel %vm208_vm1, %v369_v42, %v205_v13  ;;  %v133_v21 = vmul.f32 0.5, %v132_v14  ;;  %v211_v28 = vmul.f32 %v149_v18, %v444_v47 }
 0x114   :  { %v217_v23 = vmul.f32 %v209_v20, %v440_v45  ;;  %v227_v25 = vmul.f32 %v519_v3, %v215_v16  ;;  %v153_v29 = vmul.f32 0.5, %v152_v24  ;;  %v240_v45 = vadd.f32 %v357_v15, %v228_v22 }
 0x115   :  { %v134_v46 = vsub.f32 1.5, %v133_v21  ;;  %v223_v44 = vmul.f32 %v519_v3, %v211_v28 }
 0x116   :  { %v375_v27 = vpop.eup %374  ;;  %v239_v30 = vadd.f32 %v357_v15, %v227_v25  ;;  %v229_v31 = vmul.f32 %v519_v3, %v217_v23  ;;  %v154_v36 = vsub.f32 1.5, %v153_v29 }
 0x117   :  { %v135_v34 = vmul.f32 %v371_v4, %v134_v46  ;;  %v161_v35 = vmul.f32 %v375_v27, %v125_v6  ;;  %vm167_vm8 = vweird.f32 %v375_v27  ;;  %v235_v54 = vadd.f32 %v357_v15, %v223_v44 }
 0x118   :  { %v244_v37 = vpack.c.bf16 %v239_v30, %v238_v19  ;;  %v241_v39 = vadd.f32 %v357_v15, %v229_v31  ;;  %v155_v43 = vmul.f32 %v373_v11, %v154_v36  ;;  %vm168_vm10 = vmor %vm166_vm9, %vm167_vm8 }
 0x119   :  { %v139_v38 = vsel %vm138_vm5, %v371_v4, %v135_v34  ;;  %v162_v40 = vmul.f32 %v375_v27, %v161_v35 }
 0x11a   :  { %v210_v42 = vmul.f32 %v139_v38, %v446_v48  ;;  %326 = vmatmul.msk.bf16.vlgmr.msra.gmra.mxu2 %vm34_vm0, %v244_v37  ;;  %v245_v47 = vpack.c.bf16 %v241_v39, %v240_v45  ;;  %v159_v50 = vsel %vm158_vm7, %v373_v11, %v155_v43 }
 0x11b   :  { %v163_v49 = vmul.f32 0.5, %v162_v40  ;;  %v212_v53 = vmul.f32 %v159_v50, %v461_v60 }
 0x11c   :  { %327 = vmatmul.msk.bf16.vlgmr.msra.gmra.mxu3 %vm34_vm0, %v245_v47  ;;  %v222_v51 = vmul.f32 %v519_v3, %v210_v42 }
 0x11d   :  { %v164_v52 = vsub.f32 1.5, %v163_v49  ;;  %v224_v58 = vmul.f32 %v519_v3, %v212_v53 }
 0x11e   :  { %v234_v48 = vadd.f32 %v357_v15, %v222_v51 }
 0x11f   :  { %v165_v55 = vmul.f32 %v375_v27, %v164_v52  ;;  %v236_v62 = vadd.f32 %v357_v15, %v224_v58 }
 0x120   :  { %v242_v56 = vpack.c.bf16 %v235_v54, %v234_v48 }
 0x121   :  { %v169_v57 = vsel %vm168_vm10, %v375_v27, %v165_v55 }
 0x122   :  { %v213_v41 = vmul.f32 %v169_v57, %v463_v61  ;;  %324 = vmatmul.msk.bf16.vlgmr.msra.gmra.mxu0 %vm34_vm0, %v242_v56 }
 0x124   :  { %v225_v59 = vmul.f32 %v519_v3, %v213_v41 }
 0x126   :  { %v237_v63 = vadd.f32 %v357_v15, %v225_v59 }
 0x128   :  { %v243_v0 = vpack.c.bf16 %v237_v63, %v236_v62 }
 0x12a   :  { %325 = vmatmul.msk.bf16.vlgmr.msra.gmra.mxu1 %vm34_vm0, %v243_v0 }
 0x19d   :  { %v293_v60 = vpop.f32.mrf.mxu2 }
 0x19e   :  { %308 = vst.msk [vmem:[%s600_s4 + $0x20] sm:$0xff] %vm303_vm11, %v293_v60 }
 0x19f   :  { %v298_v1 = vpop.f32.mrf.mxu3  ;;  %v283_v61 = vpop.f32.mrf.mxu0 }
 0x1a0   :  { %310 = vst.msk [vmem:[%s600_s4 + $0x30] sm:$0xff] %vm303_vm11, %v298_v1 }
 0x1a1   :  { %304 = vst.msk [vmem:[%s600_s4] sm:$0xff] %vm303_vm11, %v283_v61 }
 0x1a5   :  { %v295_v2 = vpop.f32.mrf.mxu2 }
 0x1a6   :  { %309 = vst.msk [vmem:[%s600_s4 + $0x28] sm:$0xff] %vm303_vm11, %v295_v2 }
 0x1a7   :  { %v300_v3 = vpop.f32.mrf.mxu3  ;;  %v285_v4 = vpop.f32.mrf.mxu0 }
 0x1a8   :  { %311 = vst.msk [vmem:[%s600_s4 + $0x38] sm:$0xff] %vm303_vm11, %v300_v3  ;;  %v288_v5 = vpop.f32.mrf.mxu1 }
 0x1a9   :  { %305 = vst.msk [vmem:[%s600_s4 + $0x8] sm:$0xff] %vm303_vm11, %v285_v4 }
 0x1aa   :  { %306 = vst.msk [vmem:[%s600_s4 + $0x10] sm:$0xff] %vm303_vm11, %v288_v5 }
 0x1b0   :  { %v290_v6 = vpop.f32.mrf.mxu1 }
 0x1b1   :  { %307 = vst.msk [vmem:[%s600_s4 + $0x18] sm:$0xff] %vm303_vm11, %v290_v6 }

// kernel: vision_transformer_forward.18
= control target key start
LH: loop header
LB: loop body
LE: loop exit
PB: predicated region body
PF: predicated region fallthrough
CT: control target
= control target key end

     0   :  { %vm37_vm0 = vcmask 261120   ;;  %v622_v20 = vmov 32.0   ;;  %s991_s0 = inlined_call_operand.vmem [shape: bf16[64,32], index: 0, kind: input, shape index: {}]   ;;  %s992_s1 = inlined_call_operand.vmem [shape: f32[1,32], index: 1, kind: input, shape index: {}]   ;;  %s993_s2 = inlined_call_operand.vmem [shape: f32[1,32], index: 2, kind: input, shape index: {}]   ;;  %s994_s4 = inlined_call_operand.vmem [shape: f32[1,128], index: 4, kind: input, shape index: {}]   ;;  %s995_s3 = inlined_call_operand.vmem [shape: bf16[32,128], index: 3, kind: input, shape index: {}]   ;;  %s996_s5 = inlined_call_operand.vmem [shape: bf16[64,128], index: 5, kind: output, shape index: {}]  }
   0x1   :  { %v558_v0 = vld [vmem:[%s991_s0 + $0x18] sm:$0xff]   ;;  %v557_v1 = vld [vmem:[%s991_s0 + $0x10] sm:$0xff]   ;;  %v521_v2 = vld [vmem:[%s991_s0] sm:$0xff]   ;;  %572 = vrcp.f32 %v622_v20 }
   0x2   :  { %v534_v3 = vunpack.c.l.bf16 %v558_v0  ;;  %v530_v4 = vunpack.c.l.bf16 %v557_v1  ;;  %v522_v5 = vunpack.c.l.bf16 %v521_v2  ;;  %v535_v9 = vunpack.c.h.bf16 %v558_v0  ;;  %v556_v15 = vld [vmem:[%s991_s0 + $0x8] sm:$0xff]  }
   0x3   :  { %v531_v10 = vunpack.c.h.bf16 %v557_v1  ;;  %v523_v11 = vunpack.c.h.bf16 %v521_v2  ;;  %v526_v16 = vunpack.c.l.bf16 %v556_v15  ;;  %v527_v17 = vunpack.c.h.bf16 %v556_v15 }
   0x4   :  { %v56_v6 = vsel %vm37_vm0, %v534_v3, 0.0  ;;  %v50_v7 = vsel %vm37_vm0, %v530_v4, 0.0  ;;  %v38_v8 = vsel %vm37_vm0, %v522_v5, 0.0  ;;  %v59_v12 = vsel %vm37_vm0, %v535_v9, 0.0 }
   0x5   :  { %57 = vadd.xlane.f32.xlu1 %v56_v6  ;;  %51 = vadd.xlane.f32.xlu0 %v50_v7  ;;  %v53_v13 = vsel %vm37_vm0, %v531_v10, 0.0  ;;  %v41_v14 = vsel %vm37_vm0, %v523_v11, 0.0  ;;  %v44_v18 = vsel %vm37_vm0, %v526_v16, 0.0  ;;  %v47_v19 = vsel %vm37_vm0, %v527_v17, 0.0  ;;  %v519_v7 = vld [vmem:[%s995_s3 + $0x8] sm:$0xff] }
   0x6   :  { %39 = vadd.xlane.f32.xlu2 %v38_v8  ;;  %563 = vmatpush.bf16.msra.mxu2 %v519_v7 }
   0x7   :  { %v573_v21 = vpop.eup %572  ;;  %564 = vmatpush.bf16.msra.mxu3 %v519_v7  ;;  %287 = vmatpush.bf16.msra.mxu0 %v519_v7 }
   0x8   :  { %v63_v22 = vmul.f32 32.0, %v573_v21  ;;  %vm67_vm1 = vweird.f32 %v573_v21  ;;  %562 = vmatpush.bf16.msra.mxu1 %v519_v7 }
   0xa   :  { %v64_v23 = vsub.f32 1.0, %v63_v22 }
   0xc   :  { %v65_v24 = vmul.f32 %v573_v21, %v64_v23 }
   0xd   :  { %60 = vadd.xlane.f32.xlu1 %v59_v12  ;;  %54 = vadd.xlane.f32.xlu0 %v53_v13 }
   0xe   :  { %42 = vadd.xlane.f32.xlu2 %v41_v14  ;;  %v66_v25 = vadd.f32 %v573_v21, %v65_v24 }
  0x10   :  { %v673_v26 = vsel %vm67_vm1, %v573_v21, %v66_v25 }
  0x15   :  { %45 = vadd.xlane.f32.xlu0 %v44_v18  ;;  %48 = vadd.xlane.f32.xlu1 %v47_v19 }
  0x78   :  { %v58_v27 = vpop.xlane.xlu1 %57  ;;  %v52_v28 = vpop.xlane.xlu0 %51 }
  0x79   :  { %v75_v29 = vmul.f32 %v673_v26, %v58_v27  ;;  %v73_v30 = vmul.f32 %v673_v26, %v52_v28  ;;  %v40_v31 = vpop.xlane.xlu2 %39 }
  0x7a   :  { %v69_v40 = vmul.f32 %v673_v26, %v40_v31 }
  0x7b   :  { %v677_v32 = vsub.f32 %v534_v3, %v75_v29  ;;  %v679_v33 = vsub.f32 %v530_v4, %v73_v30 }
  0x7c   :  { %v697_v48 = vsub.f32 %v522_v5, %v69_v40 }
  0x7d   :  { %v91_v34 = vmul.f32 %v677_v32, %v677_v32  ;;  %v89_v35 = vmul.f32 %v679_v33, %v679_v33 }
  0x7e   :  { %v85_v59 = vmul.f32 %v697_v48, %v697_v48 }
  0x7f   :  { %v111_v36 = vsel %vm37_vm0, %v91_v34, 0.0  ;;  %v105_v37 = vsel %vm37_vm0, %v89_v35, 0.0 }
  0x80   :  { %v61_v38 = vpop.xlane.xlu1 %60  ;;  %v55_v39 = vpop.xlane.xlu0 %54  ;;  %112 = vadd.xlane.f32.xlu1 %v111_v36  ;;  %106 = vadd.xlane.f32.xlu2 %v105_v37  ;;  %v93_v63 = vsel %vm37_vm0, %v85_v59, 0.0 }
  0x81   :  { %v76_v41 = vmul.f32 %v673_v26, %v61_v38  ;;  %v74_v42 = vmul.f32 %v673_v26, %v55_v39  ;;  %v43_v43 = vpop.xlane.xlu2 %42 }
  0x82   :  { %v70_v44 = vmul.f32 %v673_v26, %v43_v43 }
  0x83   :  { %v691_v45 = vsub.f32 %v535_v9, %v76_v41  ;;  %v693_v46 = vsub.f32 %v531_v10, %v74_v42  ;;  %v518_v10 = vld [vmem:[%s995_s3] sm:$0xff] }
  0x84   :  { %v695_v47 = vsub.f32 %v523_v11, %v70_v44  ;;  %566 = vmatpush.bf16.msra.mxu2 %v518_v10  ;;  %567 = vmatpush.bf16.msra.mxu3 %v518_v10 }
  0x85   :  { %v90_v49 = vmul.f32 %v693_v46, %v693_v46  ;;  %v92_v50 = vmul.f32 %v691_v45, %v691_v45  ;;  %288 = vmatpush.bf16.msra.mxu0 %v518_v10  ;;  %565 = vmatpush.bf16.msra.mxu1 %v518_v10 }
  0x86   :  { %v86_v51 = vmul.f32 %v695_v47, %v695_v47 }
  0x87   :  { %v108_v52 = vsel %vm37_vm0, %v90_v49, 0.0  ;;  %v114_v53 = vsel %vm37_vm0, %v92_v50, 0.0 }
  0x88   :  { %109 = vadd.xlane.f32.xlu0 %v108_v52  ;;  %v46_v54 = vpop.xlane.xlu0 %45  ;;  %115 = vadd.xlane.f32.xlu2 %v114_v53  ;;  %v96_v55 = vsel %vm37_vm0, %v86_v51, 0.0  ;;  %v49_v56 = vpop.xlane.xlu1 %48 }
  0x89   :  { %v71_v57 = vmul.f32 %v673_v26, %v46_v54  ;;  %97 = vadd.xlane.f32.xlu1 %v96_v55  ;;  %v72_v58 = vmul.f32 %v673_v26, %v49_v56 }
  0x8b   :  { %v712_v60 = vsub.f32 %v526_v16, %v71_v57  ;;  %v714_v61 = vsub.f32 %v527_v17, %v72_v58 }
  0x8d   :  { %v87_v62 = vmul.f32 %v712_v60, %v712_v60  ;;  %v88_v1 = vmul.f32 %v714_v61, %v714_v61 }
  0x8f   :  { %v99_v0 = vsel %vm37_vm0, %v87_v62, 0.0  ;;  %v102_v2 = vsel %vm37_vm0, %v88_v1, 0.0 }
  0x90   :  { %100 = vadd.xlane.f32.xlu2 %v99_v0  ;;  %94 = vadd.xlane.f32.xlu0 %v93_v63 }
  0x98   :  { %103 = vadd.xlane.f32.xlu0 %v102_v2 }
  0xf3   :  { %v113_v3 = vpop.xlane.xlu1 %112  ;;  %v107_v4 = vpop.xlane.xlu2 %106 }
  0xf4   :  { %v123_v5 = vmul.f32 %v113_v3, %v673_v26  ;;  %v121_v6 = vmul.f32 %v107_v4, %v673_v26  ;;  %v770_v3 = vld [vmem:[%s992_s1] ss:$0 sm:$0xff] }
  0xf6   :  { %v131_v8 = vadd.f32 1e-05, %v123_v5  ;;  %v129_v9 = vadd.f32 1e-05, %v121_v6 }
  0xf8   :  { %574 = vrsqrt.f32 %v131_v8  ;;  %vm199_vm2 = vweird.f32 %v131_v8  ;;  %vm179_vm5 = vweird.f32 %v129_v9 }
  0xf9   :  { %576 = vrsqrt.f32 %v129_v9 }
  0xfb   :  { %v110_v11 = vpop.xlane.xlu0 %109  ;;  %v116_v12 = vpop.xlane.xlu2 %115 }
  0xfc   :  { %v122_v13 = vmul.f32 %v110_v11, %v673_v26  ;;  %v98_v14 = vpop.xlane.xlu1 %97  ;;  %v124_v15 = vmul.f32 %v116_v12, %v673_v26 }
  0xfd   :  { %v118_v16 = vmul.f32 %v98_v14, %v673_v26 }
  0xfe   :  { %v575_v17 = vpop.eup %574  ;;  %v130_v18 = vadd.f32 1e-05, %v122_v13  ;;  %v734_v19 = vadd.f32 1e-05, %v124_v15  ;;  %v570_v15 = vld [vmem:[%s993_s2] ss:$0 sm:$0xff] }
  0xff   :  { %v577_v20 = vpop.eup %576  ;;  %v194_v21 = vmul.f32 %v575_v17, %v131_v8  ;;  %v126_v22 = vadd.f32 1e-05, %v118_v16  ;;  %vm200_vm4 = vweird.f32 %v575_v17 }
 0x100   :  { %v174_v23 = vmul.f32 %v577_v20, %v129_v9  ;;  %578 = vrsqrt.f32 %v130_v18  ;;  %vm180_vm3 = vweird.f32 %v577_v20  ;;  %vm189_vm7 = vweird.f32 %v130_v18  ;;  %vm757_vm8 = vmor %vm199_vm2, %vm200_vm4 }
 0x101   :  { %v195_v24 = vmul.f32 %v575_v17, %v194_v21  ;;  %580 = vrsqrt.f32 %v126_v22  ;;  %vm747_vm6 = vmor %vm179_vm5, %vm180_vm3  ;;  %vm149_vm9 = vweird.f32 %v126_v22  ;;  %vm209_vm12 = vweird.f32 %v734_v19 }
 0x102   :  { %v175_v25 = vmul.f32 %v577_v20, %v174_v23  ;;  %582 = vrsqrt.f32 %v734_v19 }
 0x103   :  { %v196_v27 = vmul.f32 0.5, %v195_v24  ;;  %v95_v28 = vpop.xlane.xlu0 %94  ;;  %v101_v29 = vpop.xlane.xlu2 %100 }
 0x104   :  { %v176_v30 = vmul.f32 0.5, %v175_v25  ;;  %v117_v31 = vmul.f32 %v95_v28, %v673_v26  ;;  %v119_v34 = vmul.f32 %v101_v29, %v673_v26 }
 0x105   :  { %v197_v35 = vsub.f32 1.5, %v196_v27 }
 0x106   :  { %v579_v36 = vpop.eup %578  ;;  %v177_v37 = vsub.f32 1.5, %v176_v30  ;;  %v739_v38 = vadd.f32 1e-05, %v117_v31  ;;  %v743_v41 = vadd.f32 1e-05, %v119_v34 }
 0x107   :  { %v741_v39 = vpop.eup %580  ;;  %v184_v40 = vmul.f32 %v579_v36, %v130_v18  ;;  %v198_v43 = vmul.f32 %v575_v17, %v197_v35  ;;  %vm190_vm10 = vweird.f32 %v579_v36 }
 0x108   :  { %v583_v42 = vpop.eup %582  ;;  %v178_v44 = vmul.f32 %v577_v20, %v177_v37  ;;  %v144_v49 = vmul.f32 %v741_v39, %v126_v22  ;;  %584 = vrsqrt.f32 %v739_v38  ;;  %vm150_vm11 = vweird.f32 %v741_v39  ;;  %vm191_vm14 = vmor %vm189_vm7, %vm190_vm10 }
 0x109   :  { %v185_v51 = vmul.f32 %v579_v36, %v184_v40  ;;  %v204_v52 = vmul.f32 %v583_v42, %v734_v19  ;;  %586 = vrsqrt.f32 %v743_v41  ;;  %v202_v59 = vsel %vm757_vm8, %v575_v17, %v198_v43  ;;  %vm779_vm15 = vmor %vm149_vm9, %vm150_vm11 }
 0x10a   :  { %v182_v53 = vsel %vm747_vm6, %v577_v20, %v178_v44  ;;  %v145_v54 = vmul.f32 %v741_v39, %v144_v49  ;;  %vm210_vm13 = vweird.f32 %v583_v42  ;;  %v219_v7 = vmul.f32 %v202_v59, %v677_v32 }
 0x10b   :  { %v186_v56 = vmul.f32 0.5, %v185_v51  ;;  %v205_v57 = vmul.f32 %v583_v42, %v204_v52  ;;  %v104_v58 = vpop.xlane.xlu0 %103  ;;  %v217_v0 = vmul.f32 %v182_v53, %v679_v33  ;;  %vm211_vm1 = vmor %vm209_vm12, %vm210_vm13  ;;  %vm139_vm2 = vweird.f32 %v739_v38 }
 0x10c   :  { %v146_v62 = vmul.f32 0.5, %v145_v54  ;;  %v120_v63 = vmul.f32 %v104_v58, %v673_v26  ;;  %v231_v22 = vmul.f32 %v770_v3, %v219_v7  ;;  %vm159_vm4 = vweird.f32 %v743_v41 }
 0x10d   :  { %v187_v1 = vsub.f32 1.5, %v186_v56  ;;  %v206_v2 = vmul.f32 0.5, %v205_v57  ;;  %v229_v32 = vmul.f32 %v770_v3, %v217_v0 }
 0x10e   :  { %v585_v4 = vpop.eup %584  ;;  %v147_v5 = vsub.f32 1.5, %v146_v62  ;;  %v128_v6 = vadd.f32 1e-05, %v120_v63 }
 0x10f   :  { %v188_v26 = vmul.f32 %v579_v36, %v187_v1  ;;  %v207_v33 = vsub.f32 1.5, %v206_v2  ;;  %v134_v8 = vmul.f32 %v585_v4, %v739_v38  ;;  %v587_v11 = vpop.eup %586  ;;  %vm140_vm3 = vweird.f32 %v585_v4 }
 0x110   :  { %v148_v9 = vmul.f32 %v741_v39, %v147_v5  ;;  %588 = vrsqrt.f32 %v128_v6  ;;  %v154_v17 = vmul.f32 %v587_v11, %v743_v41  ;;  %v241_v19 = vadd.f32 %v570_v15, %v229_v32  ;;  %vm141_vm5 = vmor %vm139_vm2, %vm140_vm3 }
 0x111   :  { %v192_v12 = vsel %vm191_vm14, %v579_v36, %v188_v26  ;;  %v208_v13 = vmul.f32 %v583_v42, %v207_v33  ;;  %v135_v14 = vmul.f32 %v585_v4, %v134_v8  ;;  %vm160_vm6 = vweird.f32 %v587_v11 }
 0x112   :  { %v218_v16 = vmul.f32 %v192_v12, %v693_v46  ;;  %v152_v18 = vsel %vm779_vm15, %v741_v39, %v148_v9  ;;  %v155_v24 = vmul.f32 %v587_v11, %v154_v17  ;;  %vm161_vm7 = vmor %vm159_vm4, %vm160_vm6  ;;  %vm169_vm9 = vweird.f32 %v128_v6 }
 0x113   :  { %v212_v20 = vsel %vm211_vm1, %v583_v42, %v208_v13  ;;  %v136_v21 = vmul.f32 0.5, %v135_v14  ;;  %v214_v28 = vmul.f32 %v152_v18, %v695_v47 }
 0x114   :  { %v220_v23 = vmul.f32 %v212_v20, %v691_v45  ;;  %v230_v25 = vmul.f32 %v770_v3, %v218_v16  ;;  %v156_v29 = vmul.f32 0.5, %v155_v24  ;;  %v243_v45 = vadd.f32 %v570_v15, %v231_v22 }
 0x115   :  { %v137_v46 = vsub.f32 1.5, %v136_v21  ;;  %v226_v44 = vmul.f32 %v770_v3, %v214_v28 }
 0x116   :  { %v589_v27 = vpop.eup %588  ;;  %v242_v30 = vadd.f32 %v570_v15, %v230_v25  ;;  %v232_v31 = vmul.f32 %v770_v3, %v220_v23  ;;  %v157_v36 = vsub.f32 1.5, %v156_v29 }
 0x117   :  { %v138_v34 = vmul.f32 %v585_v4, %v137_v46  ;;  %v164_v35 = vmul.f32 %v589_v27, %v128_v6  ;;  %vm170_vm8 = vweird.f32 %v589_v27  ;;  %v238_v54 = vadd.f32 %v570_v15, %v226_v44 }
 0x118   :  { %v247_v37 = vpack.c.bf16 %v242_v30, %v241_v19  ;;  %v244_v39 = vadd.f32 %v570_v15, %v232_v31  ;;  %v158_v43 = vmul.f32 %v587_v11, %v157_v36  ;;  %vm171_vm10 = vmor %vm169_vm9, %vm170_vm8 }
 0x119   :  { %v142_v38 = vsel %vm141_vm5, %v585_v4, %v138_v34  ;;  %v165_v40 = vmul.f32 %v589_v27, %v164_v35 }
 0x11a   :  { %v213_v42 = vmul.f32 %v142_v38, %v697_v48  ;;  %508 = vmatmul.msk.bf16.vlgmr.msra.gmra.mxu2 %vm37_vm0, %v247_v37  ;;  %v248_v47 = vpack.c.bf16 %v244_v39, %v243_v45  ;;  %v162_v50 = vsel %vm161_vm7, %v587_v11, %v158_v43 }
 0x11b   :  { %v166_v49 = vmul.f32 0.5, %v165_v40  ;;  %v215_v53 = vmul.f32 %v162_v50, %v712_v60  ;;  %v571_v60 = vld [vmem:[%s994_s4] ss:$0 sm:$0xff] }
 0x11c   :  { %509 = vmatmul.msk.bf16.vlgmr.msra.gmra.mxu3 %vm37_vm0, %v248_v47  ;;  %v225_v51 = vmul.f32 %v770_v3, %v213_v42 }
 0x11d   :  { %v167_v52 = vsub.f32 1.5, %v166_v49  ;;  %v227_v58 = vmul.f32 %v770_v3, %v215_v53 }
 0x11e   :  { %v237_v48 = vadd.f32 %v570_v15, %v225_v51 }
 0x11f   :  { %v168_v55 = vmul.f32 %v589_v27, %v167_v52  ;;  %v239_v62 = vadd.f32 %v570_v15, %v227_v58 }
 0x120   :  { %v245_v56 = vpack.c.bf16 %v238_v54, %v237_v48 }
 0x121   :  { %v172_v57 = vsel %vm171_vm10, %v589_v27, %v168_v55 }
 0x122   :  { %v216_v41 = vmul.f32 %v172_v57, %v714_v61  ;;  %506 = vmatmul.msk.bf16.vlgmr.msra.gmra.mxu0 %vm37_vm0, %v245_v56 }
 0x124   :  { %v228_v59 = vmul.f32 %v770_v3, %v216_v41 }
 0x126   :  { %v240_v63 = vadd.f32 %v570_v15, %v228_v59 }
 0x128   :  { %v246_v0 = vpack.c.bf16 %v240_v63, %v239_v62 }
 0x12a   :  { %507 = vmatmul.msk.bf16.vlgmr.msra.gmra.mxu1 %vm37_vm0, %v246_v0 }
 0x19d   :  { %v300_v1 = vpop.f32.mrf.mxu2 }
 0x19e   :  { %v818_v2 = vadd.f32 %v571_v60, %v300_v1 }
 0x19f   :  { %v305_v4 = vpop.f32.mrf.mxu3  ;;  %v290_v61 = vpop.f32.mrf.mxu0 }
 0x1a0   :  { %v514_v5 = vmul.f32 -1.702, %v818_v2  ;;  %v821_v6 = vadd.f32 %v571_v60, %v305_v4  ;;  %v823_v7 = vadd.f32 %v571_v60, %v290_v61 }
 0x1a2   :  { %v334_v3 = vmul.f32 1.442695, %v514_v5  ;;  %v516_v26 = vmul.f32 -1.702, %v821_v6  ;;  %v510_v33 = vmul.f32 -1.702, %v823_v7 }
 0x1a4   :  { %590 = vpow2.f32 %v334_v3  ;;  %v338_v8 = vmul.f32 1.442695, %v516_v26  ;;  %v326_v9 = vmul.f32 1.442695, %v510_v33 }
 0x1a5   :  { %v302_v10 = vpop.f32.mrf.mxu2 }
 0x1a6   :  { %592 = vpow2.f32 %v338_v8  ;;  %v827_v11 = vadd.f32 %v571_v60, %v302_v10 }
 0x1a7   :  { %594 = vpow2.f32 %v326_v9  ;;  %v307_v12 = vpop.f32.mrf.mxu3  ;;  %v292_v13 = vpop.f32.mrf.mxu0 }
 0x1a8   :  { %v515_v14 = vmul.f32 -1.702, %v827_v11  ;;  %v830_v32 = vadd.f32 %v571_v60, %v307_v12  ;;  %v832_v15 = vadd.f32 %v571_v60, %v292_v13  ;;  %v295_v16 = vpop.f32.mrf.mxu1 }
 0x1a9   :  { %v834_v17 = vadd.f32 %v571_v60, %v295_v16 }
 0x1aa   :  { %v591_v18 = vpop.eup %590  ;;  %v336_v20 = vmul.f32 1.442695, %v515_v14  ;;  %v517_v21 = vmul.f32 -1.702, %v830_v32  ;;  %v511_v22 = vmul.f32 -1.702, %v832_v15 }
 0x1ab   :  { %v838_v23 = vadd.f32 1.0, %v591_v18  ;;  %v512_v19 = vmul.f32 -1.702, %v834_v17 }
 0x1ac   :  { %v593_v24 = vpop.eup %592  ;;  %596 = vpow2.f32 %v336_v20  ;;  %v340_v25 = vmul.f32 1.442695, %v517_v21  ;;  %v328_v46 = vmul.f32 1.442695, %v511_v22 }
 0x1ad   :  { %v595_v27 = vpop.eup %594  ;;  %598 = vrcp.f32 %v838_v23  ;;  %v842_v28 = vadd.f32 1.0, %v593_v24  ;;  %v330_v30 = vmul.f32 1.442695, %v512_v19  ;;  %v421_v45 = vand.u32 2147483648, %v838_v23 }
 0x1ae   :  { %v844_v29 = vadd.f32 1.0, %v595_v27  ;;  %600 = vpow2.f32 %v340_v25  ;;  %v419_v40 = vand.u32 2147483647, %v838_v23  ;;  %vm415_vm0 = vweird.f32 %v838_v23 }
 0x1af   :  { %602 = vpow2.f32 %v328_v46  ;;  %v422_v51 = vor.u32 1.1754944e-38, %v421_v45  ;;  %v449_v53 = vand.u32 2147483647, %v842_v28  ;;  %v451_v48 = vand.u32 2147483648, %v842_v28 }
 0x1b0   :  { %604 = vrcp.f32 %v842_v28  ;;  %v297_v34 = vpop.f32.mrf.mxu1  ;;  %v361_v56 = vand.u32 2147483648, %v844_v29  ;;  %vm877_vm11 = vcmp.eq.f32.partialorder %v419_v40, 8.507059e+37  ;;  %vm445_vm12 = vweird.f32 %v842_v28 }
 0x1b1   :  { %606 = vrcp.f32 %v844_v29  ;;  %v857_v42 = vadd.f32 %v571_v60, %v297_v34  ;;  %vm355_vm13 = vweird.f32 %v844_v29  ;;  %v359_v61 = vand.u32 2147483647, %v844_v29 }
 0x1b2   :  { %v597_v31 = vpop.eup %596  ;;  %608 = vpow2.f32 %v330_v30  ;;  %v452_v5 = vor.u32 1.1754944e-38, %v451_v48  ;;  %v362_v26 = vor.u32 1.1754944e-38, %v361_v56  ;;  %vm894_vm1 = vcmp.eq.f32.partialorder %v449_v53, 8.507059e+37 }
 0x1b3   :  { %v848_v35 = vpop.eup %598  ;;  %v851_v36 = vadd.f32 1.0, %v597_v31  ;;  %v513_v59 = vmul.f32 -1.702, %v857_v42  ;;  %vm916_vm6 = vcmp.eq.f32.partialorder %v359_v61, 8.507059e+37 }
 0x1b4   :  { %v601_v37 = vpop.eup %600  ;;  %v411_v39 = vmul.f32 %v848_v35, %v838_v23  ;;  %vm416_vm14 = vweird.f32 %v848_v35 }
 0x1b5   :  { %v603_v38 = vpop.eup %602  ;;  %610 = vrcp.f32 %v851_v36  ;;  %v862_v44 = vadd.f32 1.0, %v601_v37  ;;  %v434_v58 = vand.u32 2147483647, %v851_v36  ;;  %v436_v0 = vand.u32 2147483648, %v851_v36  ;;  %vm905_vm4 = vmor %vm415_vm0, %vm416_vm14 }
 0x1b6   :  { %v859_v43 = vpop.eup %604  ;;  %v412_v47 = vsub.f32 1.0, %v411_v39  ;;  %v864_v49 = vadd.f32 1.0, %v603_v38  ;;  %vm430_vm2 = vweird.f32 %v851_v36  ;;  %v332_v10 = vmul.f32 1.442695, %v513_v59 }
 0x1b7   :  { %v866_v50 = vpop.eup %606  ;;  %v441_v52 = vmul.f32 %v859_v43, %v842_v28  ;;  %612 = vrcp.f32 %v862_v44  ;;  %vm446_vm15 = vweird.f32 %v859_v43  ;;  %vm899_vm3 = vcmp.eq.f32.partialorder %v434_v58, 8.507059e+37 }
 0x1b8   :  { %v413_v54 = vmul.f32 %v848_v35, %v412_v47  ;;  %v351_v55 = vmul.f32 %v866_v50, %v844_v29  ;;  %v609_v62 = vpop.eup %608  ;;  %614 = vrcp.f32 %v864_v49  ;;  %vm356_vm5 = vweird.f32 %v866_v50  ;;  %vm928_vm9 = vmor %vm445_vm12, %vm446_vm15 }
 0x1b9   :  { %v442_v41 = vsub.f32 1.0, %v441_v52  ;;  %v437_v16 = vor.u32 1.1754944e-38, %v436_v0  ;;  %v910_v18 = vadd.f32 1.0, %v609_v62  ;;  %vm460_vm7 = vweird.f32 %v862_v44  ;;  %vm941_vm10 = vmor %vm355_vm13, %vm356_vm5 }
 0x1ba   :  { %v352_v63 = vsub.f32 1.0, %v351_v55  ;;  %v414_v1 = vadd.f32 %v848_v35, %v413_v54  ;;  %v464_v30 = vand.u32 2147483647, %v862_v44  ;;  %v466_v31 = vand.u32 2147483648, %v862_v44 }
 0x1bb   :  { %v611_v60 = vpop.eup %610  ;;  %v443_v4 = vmul.f32 %v859_v43, %v442_v41  ;;  %616 = vrcp.f32 %v910_v18  ;;  %vm370_vm0 = vweird.f32 %v864_v49  ;;  %v376_v37 = vand.u32 2147483648, %v864_v49 }
 0x1bc   :  { %v353_v3 = vmul.f32 %v866_v50, %v352_v63  ;;  %v426_v33 = vmul.f32 %v611_v60, %v851_v36  ;;  %v418_v20 = vsel %vm905_vm4, %v848_v35, %v414_v1  ;;  %vm431_vm8 = vweird.f32 %v611_v60 }
 0x1bd   :  { %v613_v12 = vpop.eup %612  ;;  %v444_v21 = vadd.f32 %v859_v43, %v443_v4  ;;  %v423_v35 = vsel %vm877_vm11, %v422_v51, %v418_v20  ;;  %vm432_vm11 = vmor %vm430_vm2, %vm431_vm8  ;;  %v374_v51 = vand.u32 2147483647, %v864_v49  ;;  %618 = vpow2.f32 %v332_v10 }
 0x1be   :  { %v427_v14 = vsub.f32 1.0, %v426_v33  ;;  %v456_v23 = vmul.f32 %v613_v12, %v862_v44  ;;  %v615_v24 = vpop.eup %614  ;;  %v354_v25 = vadd.f32 %v866_v50, %v353_v3  ;;  %vm461_vm12 = vweird.f32 %v613_v12 }
 0x1bf   :  { %v366_v34 = vmul.f32 %v615_v24, %v864_v49  ;;  %v448_v39 = vsel %vm928_vm9, %v859_v43, %v444_v21  ;;  %vm371_vm13 = vweird.f32 %v615_v24  ;;  %v474_v36 = vmul.f32 %v423_v35, %v818_v2  ;;  %vm462_vm14 = vmor %vm460_vm7, %vm461_vm12 }
 0x1c0   :  { %v428_v46 = vmul.f32 %v611_v60, %v427_v14  ;;  %v457_v27 = vsub.f32 1.0, %v456_v23  ;;  %v358_v29 = vsel %vm941_vm10, %v866_v50, %v354_v25  ;;  %v453_v54 = vsel %vm894_vm1, %v452_v5, %v448_v39  ;;  %vm372_vm2 = vmor %vm370_vm0, %vm371_vm13 }
 0x1c1   :  { %v367_v40 = vsub.f32 1.0, %v366_v34  ;;  %v617_v43 = vpop.eup %616  ;;  %v467_v50 = vor.u32 1.1754944e-38, %v466_v31  ;;  %vm465_vm15 = vcmp.eq.f32.partialorder %v464_v30, 8.507059e+37  ;;  %v377_v41 = vor.u32 1.1754944e-38, %v376_v37 }
 0x1c2   :  { %v429_v45 = vadd.f32 %v611_v60, %v428_v46  ;;  %v458_v38 = vmul.f32 %v613_v12, %v457_v27  ;;  %v363_v58 = vsel %vm916_vm6, %v362_v26, %v358_v29  ;;  %v381_v2 = vmul.f32 %v617_v43, %v910_v18 }
 0x1c3   :  { %v368_v48 = vmul.f32 %v615_v24, %v367_v40  ;;  %vm375_vm1 = vcmp.eq.f32.partialorder %v374_v51, 8.507059e+37  ;;  %v619_v0 = vpop.eup %618  ;;  %v470_v1 = vmul.f32 %v363_v58, %v823_v7  ;;  %v391_v33 = vand.u32 2147483648, %v910_v18 }
 0x1c4   :  { %v433_v47 = vsel %vm432_vm11, %v611_v60, %v429_v45  ;;  %v459_v53 = vadd.f32 %v613_v12, %v458_v38  ;;  %v345_v61 = vadd.f32 1.0, %v619_v0  ;;  %v382_v5 = vsub.f32 1.0, %v381_v2 }
 0x1c5   :  { %v438_v52 = vsel %vm899_vm3, %v437_v16, %v433_v47  ;;  %v369_v57 = vadd.f32 %v615_v24, %v368_v48  ;;  %vm386_vm3 = vweird.f32 %v617_v43  ;;  %vm385_vm4 = vweird.f32 %v910_v18 }
 0x1c6   :  { %v475_v55 = vmul.f32 %v438_v52, %v827_v11  ;;  %v463_v56 = vsel %vm462_vm14, %v613_v12, %v459_v53  ;;  %v476_v11 = vmul.f32 %v453_v54, %v821_v6  ;;  %620 = vrcp.f32 %v345_v61  ;;  %vm387_vm5 = vmor %vm385_vm4, %vm386_vm3 }
 0x1c7   :  { %v468_v62 = vsel %vm465_vm15, %v467_v50, %v463_v56  ;;  %v373_v63 = vsel %vm372_vm2, %v615_v24, %v369_v57  ;;  %v406_v9 = vand.u32 2147483648, %v345_v61  ;;  %v404_v13 = vand.u32 2147483647, %v345_v61 }
 0x1c8   :  { %v549_v59 = vpack.c.bf16 %v475_v55, %v474_v36  ;;  %v477_v44 = vmul.f32 %v468_v62, %v830_v32  ;;  %v378_v60 = vsel %vm375_vm1, %v377_v41, %v373_v63  ;;  %v383_v32 = vmul.f32 %v617_v43, %v382_v5 }
 0x1c9   :  { %v471_v49 = vmul.f32 %v378_v60, %v832_v15  ;;  %v389_v15 = vand.u32 2147483647, %v910_v18  ;;  %v392_v14 = vor.u32 1.1754944e-38, %v391_v33  ;;  %vm400_vm8 = vweird.f32 %v345_v61 }
 0x1ca   :  { %560 = vst [vmem:[%s996_s5 + $0x10] sm:$0xff] %v549_v59   ;;  %v554_v4 = vpack.c.bf16 %v477_v44, %v476_v11  ;;  %v384_v26 = vadd.f32 %v617_v43, %v383_v32  ;;  %v407_v21 = vor.u32 1.1754944e-38, %v406_v9  ;;  %vm405_vm10 = vcmp.eq.f32.partialorder %v404_v13, 8.507059e+37 }
 0x1cb   :  { %v539_v6 = vpack.c.bf16 %v471_v49, %v470_v1  ;;  %vm390_vm7 = vcmp.eq.f32.partialorder %v389_v15, 8.507059e+37 }
 0x1cc   :  { %561 = vst [vmem:[%s996_s5 + $0x18] sm:$0xff] %v554_v4   ;;  %v621_v3 = vpop.eup %620  ;;  %v388_v10 = vsel %vm387_vm5, %v617_v43, %v384_v26 }
 0x1cd   :  { %540 = vst [vmem:[%s996_s5] sm:$0xff] %v539_v6   ;;  %v396_v7 = vmul.f32 %v621_v3, %v345_v61  ;;  %vm401_vm6 = vweird.f32 %v621_v3  ;;  %v393_v20 = vsel %vm390_vm7, %v392_v14, %v388_v10 }
 0x1ce   :  { %vm402_vm9 = vmor %vm400_vm8, %vm401_vm6  ;;  %v472_v24 = vmul.f32 %v393_v20, %v834_v17 }
 0x1cf   :  { %v397_v8 = vsub.f32 1.0, %v396_v7 }
 0x1d1   :  { %v398_v12 = vmul.f32 %v621_v3, %v397_v8 }
 0x1d3   :  { %v399_v16 = vadd.f32 %v621_v3, %v398_v12 }
 0x1d5   :  { %v403_v22 = vsel %vm402_vm9, %v621_v3, %v399_v16 }
 0x1d6   :  { %v408_v23 = vsel %vm405_vm10, %v407_v21, %v403_v22 }
 0x1d7   :  { %v473_v18 = vmul.f32 %v408_v23, %v857_v42 }
 0x1d9   :  { %v544_v25 = vpack.c.bf16 %v473_v18, %v472_v24 }
 0x1db   :  { %559 = vst [vmem:[%s996_s5 + $0x8] sm:$0xff] %v544_v25  }

// kernel: vision_transformer_forward.19
= control target key start
LH: loop header
LB: loop body
LE: loop exit
PB: predicated region body
PF: predicated region fallthrough
CT: control target
= control target key end

     0   :  { %vm178_vm0 = vcmask 257024   ;;  %s403_s1 = inlined_call_operand.vmem [shape: bf16[128,32], index: 1, kind: input, shape index: {}]   ;;  %s404_s2 = inlined_call_operand.vmem [shape: f32[1,32], index: 2, kind: input, shape index: {}]   ;;  %s405_s0 = inlined_call_operand.vmem [shape: bf16[64,128], index: 0, kind: input, shape index: {}]   ;;  %s406_s3 = inlined_call_operand.vmem [shape: bf16[64,32], index: 3, kind: input, shape index: {}]   ;;  %s407_s4 = inlined_call_operand.vmem [shape: bf16[64,32], index: 4, kind: output, shape index: {}]  }
   0x1   :  { %v250_v0 = vld [vmem:[%s403_s1 + $0x38] sm:$0xff]  ;;  %v249_v1 = vld [vmem:[%s403_s1 + $0x30] sm:$0xff]  ;;  %v248_v2 = vld [vmem:[%s403_s1 + $0x28] sm:$0xff] }
   0x2   :  { %117 = vmatpush.bf16.msra.mxu0 %v250_v0  ;;  %270 = vmatpush.bf16.msra.mxu1 %v250_v0  ;;  %v247_v3 = vld [vmem:[%s403_s1 + $0x20] sm:$0xff]  ;;  %v246_v4 = vld [vmem:[%s403_s1 + $0x18] sm:$0xff]  ;;  %v245_v5 = vld [vmem:[%s403_s1 + $0x10] sm:$0xff] }
   0x3   :  { %271 = vmatpush.bf16.msra.mxu2 %v250_v0  ;;  %272 = vmatpush.bf16.msra.mxu3 %v250_v0  ;;  %v244_v6 = vld [vmem:[%s403_s1 + $0x8] sm:$0xff]  ;;  %v243_v7 = vld [vmem:[%s403_s1] sm:$0xff]  ;;  %v241_v10 = vld [vmem:[%s405_s0 + $0x10] sm:$0xff] }
   0x4   :  { %v239_v8 = vld [vmem:[%s405_s0] sm:$0xff]  ;;  %v240_v9 = vld [vmem:[%s405_s0 + $0x8] sm:$0xff]  ;;  %v242_v11 = vld [vmem:[%s405_s0 + $0x18] sm:$0xff] }
   0x5   :  { %v252_v12 = vld [vmem:[%s406_s3] sm:$0xff]   ;;  %v267_v13 = vld [vmem:[%s406_s3 + $0x8] sm:$0xff]   ;;  %v268_v23 = vld [vmem:[%s406_s3 + $0x10] sm:$0xff]  }
   0x6   :  { %118 = vmatpush.bf16.msra.mxu0 %v249_v1  ;;  %273 = vmatpush.bf16.msra.mxu1 %v249_v1  ;;  %v294_v14 = vld [vmem:[%s404_s2] ss:$0 sm:$0xff]  ;;  %v253_v15 = vunpack.c.l.bf16 %v252_v12  ;;  %v257_v16 = vunpack.c.l.bf16 %v267_v13  ;;  %v269_v24 = vld [vmem:[%s406_s3 + $0x18] sm:$0xff]   ;;  %v261_v27 = vunpack.c.l.bf16 %v268_v23  ;;  %v254_v31 = vunpack.c.h.bf16 %v252_v12 }
   0x7   :  { %274 = vmatpush.bf16.msra.mxu2 %v249_v1  ;;  %275 = vmatpush.bf16.msra.mxu3 %v249_v1  ;;  %v265_v28 = vunpack.c.l.bf16 %v269_v24  ;;  %v258_v32 = vunpack.c.h.bf16 %v267_v13  ;;  %v262_v47 = vunpack.c.h.bf16 %v268_v23  ;;  %v266_v48 = vunpack.c.h.bf16 %v269_v24 }
   0xa   :  { %119 = vmatpush.bf16.msra.mxu0 %v248_v2  ;;  %276 = vmatpush.bf16.msra.mxu1 %v248_v2 }
   0xb   :  { %277 = vmatpush.bf16.msra.mxu2 %v248_v2  ;;  %278 = vmatpush.bf16.msra.mxu3 %v248_v2 }
   0xe   :  { %120 = vmatpush.bf16.msra.mxu0 %v247_v3  ;;  %279 = vmatpush.bf16.msra.mxu1 %v247_v3 }
   0xf   :  { %280 = vmatpush.bf16.msra.mxu2 %v247_v3  ;;  %281 = vmatpush.bf16.msra.mxu3 %v247_v3 }
  0x12   :  { %121 = vmatpush.bf16.msra.mxu0 %v246_v4  ;;  %282 = vmatpush.bf16.msra.mxu1 %v246_v4 }
  0x13   :  { %283 = vmatpush.bf16.msra.mxu2 %v246_v4  ;;  %284 = vmatpush.bf16.msra.mxu3 %v246_v4 }
  0x16   :  { %122 = vmatpush.bf16.msra.mxu0 %v245_v5  ;;  %285 = vmatpush.bf16.msra.mxu1 %v245_v5 }
  0x17   :  { %286 = vmatpush.bf16.msra.mxu2 %v245_v5  ;;  %287 = vmatpush.bf16.msra.mxu3 %v245_v5 }
  0x1a   :  { %123 = vmatpush.bf16.msra.mxu0 %v244_v6  ;;  %288 = vmatpush.bf16.msra.mxu1 %v244_v6 }
  0x1b   :  { %289 = vmatpush.bf16.msra.mxu2 %v244_v6  ;;  %290 = vmatpush.bf16.msra.mxu3 %v244_v6 }
  0x1e   :  { %124 = vmatpush.bf16.msra.mxu0 %v243_v7  ;;  %291 = vmatpush.bf16.msra.mxu1 %v243_v7 }
  0x1f   :  { %292 = vmatpush.bf16.msra.mxu2 %v243_v7  ;;  %293 = vmatpush.bf16.msra.mxu3 %v243_v7 }
  0x21   :  { %125 = vmatmul.bf16.vlgmr.msra.gmra.mxu0 %v239_v8  ;;  %130 = vmatmul.bf16.vlgmr.msra.gmra.mxu1 %v240_v9 }
  0x22   :  { %135 = vmatmul.bf16.vlgmr.msra.gmra.mxu2 %v241_v10  ;;  %140 = vmatmul.bf16.vlgmr.msra.gmra.mxu3 %v242_v11 }
  0x9e   :  { %v126_v17 = vpop.f32.mrf.mxu0  ;;  %v131_v18 = vpop.f32.mrf.mxu1 }
  0x9f   :  { %v127_v19 = vadd.f32 %v294_v14, %v126_v17  ;;  %v132_v20 = vadd.f32 %v294_v14, %v131_v18 }
  0xa1   :  { %v162_v21 = vadd.f32 %v253_v15, %v127_v19  ;;  %v164_v22 = vadd.f32 %v257_v16, %v132_v20 }
  0xa3   :  { %v170_v25 = vpack.c.bf16 %v162_v21, %v162_v21  ;;  %v172_v26 = vpack.c.bf16 %v164_v22, %v164_v22 }
  0xa5   :  { %179 = vst.msk [vmem:[%s407_s4] sm:$0xf] %vm178_vm0, %v170_v25  ;;  %v136_v29 = vpop.f32.mrf.mxu2  ;;  %v141_v30 = vpop.f32.mrf.mxu3 }
  0xa6   :  { %181 = vst.msk [vmem:[%s407_s4 + $0x8] sm:$0xf] %vm178_vm0, %v172_v26  ;;  %v137_v33 = vadd.f32 %v294_v14, %v136_v29  ;;  %v142_v34 = vadd.f32 %v294_v14, %v141_v30  ;;  %v128_v35 = vpop.f32.mrf.mxu0  ;;  %v133_v36 = vpop.f32.mrf.mxu1 }
  0xa7   :  { %v129_v37 = vadd.f32 %v294_v14, %v128_v35  ;;  %v134_v38 = vadd.f32 %v294_v14, %v133_v36 }
  0xa8   :  { %v166_v39 = vadd.f32 %v261_v27, %v137_v33  ;;  %v168_v40 = vadd.f32 %v265_v28, %v142_v34 }
  0xa9   :  { %v163_v41 = vadd.f32 %v254_v31, %v129_v37  ;;  %v165_v42 = vadd.f32 %v258_v32, %v134_v38 }
  0xaa   :  { %v174_v43 = vpack.c.bf16 %v166_v39, %v166_v39  ;;  %v176_v44 = vpack.c.bf16 %v168_v40, %v168_v40 }
  0xab   :  { %v171_v45 = vpack.c.bf16 %v163_v41, %v163_v41  ;;  %v173_v46 = vpack.c.bf16 %v165_v42, %v165_v42 }
  0xac   :  { %183 = vst.msk [vmem:[%s407_s4 + $0x10] sm:$0xf] %vm178_vm0, %v174_v43 }
  0xad   :  { %185 = vst.msk [vmem:[%s407_s4 + $0x18] sm:$0xf] %vm178_vm0, %v176_v44  ;;  %v138_v49 = vpop.f32.mrf.mxu2  ;;  %v143_v50 = vpop.f32.mrf.mxu3 }
  0xae   :  { %180 = vst.msk [vmem:[%s407_s4 + $0x4] sm:$0xf] %vm178_vm0, %v171_v45  ;;  %v139_v51 = vadd.f32 %v294_v14, %v138_v49  ;;  %v144_v52 = vadd.f32 %v294_v14, %v143_v50 }
  0xaf   :  { %182 = vst.msk [vmem:[%s407_s4 + $0xc] sm:$0xf] %vm178_vm0, %v173_v46 }
  0xb0   :  { %v167_v53 = vadd.f32 %v262_v47, %v139_v51  ;;  %v169_v54 = vadd.f32 %v266_v48, %v144_v52 }
  0xb2   :  { %v175_v55 = vpack.c.bf16 %v167_v53, %v167_v53  ;;  %v177_v56 = vpack.c.bf16 %v169_v54, %v169_v54 }
  0xb4   :  { %184 = vst.msk [vmem:[%s407_s4 + $0x14] sm:$0xf] %vm178_vm0, %v175_v55 }
  0xb5   :  { %186 = vst.msk [vmem:[%s407_s4 + $0x1c] sm:$0xf] %vm178_vm0, %v177_v56 }

</bundles_post_ra>
